<compile_context>
chip_gen: v7x
topology: tpu7x:2x2x1
jax: 0.10.0
libtpu: 0.0.40
codegen_flags: <defaults>
</compile_context>

<pallas_src>
import jax
import jax.numpy as jnp
from jax.experimental import pallas as pl
from jax.experimental.pallas import tpu as pltpu

BN_EPS = 1e-5
LEAKY_SLOPE = 0.2
NUM_HIDDEN_LAYERS = 4
HIDDEN = 512


def domain_classifier_kernel(x_ref, w_ref, g_ref, beta_ref, w5_ref, b5_ref,
                             out_ref):
    # x_ref:    (B, 512)        f32   input                       (VMEM)
    # w_ref:    (4, 512, 512)   bf16  hidden-layer weights        (VMEM, 2 MiB)
    # g_ref:    (4, 1, 512)     f32   BN gammas                   (VMEM)
    # beta_ref: (4, 1, 512)     f32   BN betas                    (VMEM)
    # w5_ref:   (1, 512)        bf16  head weight                 (VMEM)
    # b5_ref:   (1, 1)          f32   head bias                   (SMEM scalar)
    # out_ref:  (1, B)          f32   sigmoid probabilities, lane-dense row
    h = x_ref[...].astype(jnp.bfloat16)                       # (B, 512) bf16

    for l in range(NUM_HIDDEN_LAYERS):                        # static unroll
        # Linear(512 -> 512): bf16 x bf16 -> f32 accumulate on the MXU.
        # Hidden bias omitted: training-mode BN mean-subtraction cancels it.
        z = jnp.dot(h, w_ref[l], preferred_element_type=jnp.float32)  # (B,512)

        # BatchNorm1d (training mode: batch mean, biased variance), fused, f32.
        mean = jnp.mean(z, axis=0, keepdims=True)             # (1, 512)
        zc = z - mean
        var = jnp.mean(zc * zc, axis=0, keepdims=True)        # (1, 512)
        scale = g_ref[l] * jax.lax.rsqrt(var + BN_EPS)        # gamma folded in
        a = zc * scale + beta_ref[l]

        # LeakyReLU(0.2) == max(a, 0.2*a) for slope in (0,1); carry as bf16.
        h = jnp.maximum(a, LEAKY_SLOPE * a).astype(jnp.bfloat16)

    # Head: Linear(512 -> 1) + Sigmoid.  Contract feature dims of (1,512) and
    # (B,512) directly -> lane-dense (1, B) logit row, no materialized transpose.
    logit = jax.lax.dot_general(
        w5_ref[...], h,
        dimension_numbers=(((1,), (1,)), ((), ())),
        preferred_element_type=jnp.float32) + b5_ref[0, 0]    # (1, B) f32
    out_ref[...] = 1.0 / (1.0 + jnp.exp(-logit))              # sigmoid


@jax.jit
def domain_classifier(x, w_stack, gamma_stack, beta_stack, w5, b5):
    B = x.shape[0]
    out_row = pl.pallas_call(
        domain_classifier_kernel,
        out_shape=jax.ShapeDtypeStruct((1, B), jnp.float32),
        in_specs=[
            pl.BlockSpec(memory_space=pltpu.MemorySpace.VMEM),  # x
            pl.BlockSpec(memory_space=pltpu.MemorySpace.VMEM),  # w_stack (2 MiB)
            pl.BlockSpec(memory_space=pltpu.MemorySpace.VMEM),  # gamma_stack
            pl.BlockSpec(memory_space=pltpu.MemorySpace.VMEM),  # beta_stack
            pl.BlockSpec(memory_space=pltpu.MemorySpace.VMEM),  # w5
            pl.BlockSpec(memory_space=pltpu.MemorySpace.SMEM),  # b5 scalar
        ],
        out_specs=pl.BlockSpec(memory_space=pltpu.MemorySpace.VMEM),
    )(x, w_stack, gamma_stack, beta_stack, w5, b5)
    return out_row.T                                          # (B, 1)


def init_params(key):
    """Deterministic synthetic parameters matching DomainClassifier shapes.

    Hidden-layer Linear biases are intentionally omitted: with training-mode
    BatchNorm immediately after each Linear they have zero effect on the
    forward output.
    """
    keys = jax.random.split(key, NUM_HIDDEN_LAYERS + 4)
    w_stack = jnp.stack([
        (jax.random.normal(keys[i], (HIDDEN, HIDDEN), jnp.float32) *
         (1.0 / jnp.sqrt(HIDDEN))).astype(jnp.bfloat16)
        for i in range(NUM_HIDDEN_LAYERS)
    ])                                                        # (4,512,512) bf16
    gamma_stack = 1.0 + 0.05 * jax.random.normal(
        keys[NUM_HIDDEN_LAYERS], (NUM_HIDDEN_LAYERS, 1, HIDDEN), jnp.float32)
    beta_stack = 0.05 * jax.random.normal(
        keys[NUM_HIDDEN_LAYERS + 1], (NUM_HIDDEN_LAYERS, 1, HIDDEN), jnp.float32)
    w5 = (jax.random.normal(keys[-2], (1, HIDDEN), jnp.float32) *
          (1.0 / jnp.sqrt(HIDDEN))).astype(jnp.bfloat16)      # (1, 512) bf16
    b5 = jax.random.normal(keys[-1], (1, 1), jnp.float32) * 0.01
    return w_stack, gamma_stack, beta_stack, w5, b5


def reference_forward(x, w_stack, gamma_stack, beta_stack, w5, b5):
    """Pure-JAX f32 reference (same bf16 weights, f32 activations)."""
    h = x
    for l in range(NUM_HIDDEN_LAYERS):
        z = h @ w_stack[l].astype(jnp.float32)
        mean = jnp.mean(z, axis=0, keepdims=True)
        var = jnp.mean((z - mean) ** 2, axis=0, keepdims=True)
        a = (z - mean) * jax.lax.rsqrt(var + BN_EPS) * gamma_stack[l] + beta_stack[l]
        h = jnp.where(a >= 0.0, a, LEAKY_SLOPE * a)
    logit = h @ w5.astype(jnp.float32).T + b5[0, 0]
    return jax.nn.sigmoid(logit)                              # (B, 1)


if __name__ == "__main__":
    key = jax.random.PRNGKey(0)
    k_x, k_p = jax.random.split(key)

    B = 8  # small sublane-aligned batch for the demo
    x = jax.random.normal(k_x, (B, HIDDEN), jnp.float32)
    params = init_params(k_p)

    y = domain_classifier(x, *params)
    y = jax.block_until_ready(y)

    assert y.shape == (B, 1)
    assert bool(jnp.all(jnp.isfinite(y)))
    assert bool(jnp.all((y >= 0.0) & (y <= 1.0)))

    # Loose tolerance: kernel carries activations in bf16, reference in f32.
    y_ref = reference_forward(x, *params)
    assert bool(jnp.allclose(y, y_ref, atol=3e-2)), float(jnp.max(jnp.abs(y - y_ref)))

    print("KERNEL_OK")
</pallas_src>

<mosaic_0001>
module attributes {stable_mosaic.version = 11 : i64} {
  func.func @domain_classifier_kernel(%arg0: memref<8x512xf32, #tpu.memory_space<vmem>>, %arg1: memref<4x512x512xbf16, #tpu.memory_space<vmem>>, %arg2: memref<4x1x512xf32, #tpu.memory_space<vmem>>, %arg3: memref<4x1x512xf32, #tpu.memory_space<vmem>>, %arg4: memref<1x512xbf16, #tpu.memory_space<vmem>>, %arg5: memref<1x1xf32, #tpu.memory_space<smem>>, %arg6: memref<1x8xf32, #tpu.memory_space<vmem>>) attributes {dimension_semantics = [], scalar_prefetch = 0 : i64, scratch_operands = 0 : i64, tpu.core_type = #tpu.core_type<tc>} {
    %c0 = arith.constant 0 : index
    %c0_0 = arith.constant 0 : index
    %0 = vector.load %arg0[%c0, %c0_0] : memref<8x512xf32, #tpu.memory_space<vmem>>, vector<8x512xf32>
    %1 = arith.truncf %0 : vector<8x512xf32> to vector<8x512xbf16>
    %c0_1 = arith.constant 0 : index
    %c0_2 = arith.constant 0 : index
    %c0_3 = arith.constant 0 : index
    %2 = vector.load %arg1[%c0_1, %c0_2, %c0_3] : memref<4x512x512xbf16, #tpu.memory_space<vmem>>, vector<1x512x512xbf16>
    %3 = vector.shape_cast %2 : vector<1x512x512xbf16> to vector<512x512xbf16>
    %cst = arith.constant dense<0.000000e+00> : vector<8x512xf32>
    %4 = tpu.matmul %1, %3, %cst {dimension_numbers = #tpu.dot_dimension_numbers<[1], [0], [0], [1], [0, 0, 1, 1], [], []>} : vector<8x512xbf16>, vector<512x512xbf16>, vector<8x512xf32> -> vector<8x512xf32>
    %cst_4 = arith.constant dense<0.000000e+00> : vector<512xf32>
    %5 = vector.multi_reduction <add>, %4, %cst_4 [0] : vector<8x512xf32> to vector<512xf32>
    %6 = vector.shape_cast %5 : vector<512xf32> to vector<1x512xf32>
    %cst_5 = arith.constant 8.000000e+00 : f32
    %7 = vector.broadcast %cst_5 : f32 to vector<1x512xf32>
    %8 = arith.divf %6, %7 : vector<1x512xf32>
    %9 = vector.broadcast %8 : vector<1x512xf32> to vector<8x512xf32>
    %10 = arith.subf %4, %9 : vector<8x512xf32>
    %11 = arith.mulf %10, %10 : vector<8x512xf32>
    %cst_6 = arith.constant dense<0.000000e+00> : vector<512xf32>
    %12 = vector.multi_reduction <add>, %11, %cst_6 [0] : vector<8x512xf32> to vector<512xf32>
    %13 = vector.shape_cast %12 : vector<512xf32> to vector<1x512xf32>
    %cst_7 = arith.constant 8.000000e+00 : f32
    %14 = vector.broadcast %cst_7 : f32 to vector<1x512xf32>
    %15 = arith.divf %13, %14 : vector<1x512xf32>
    %c0_8 = arith.constant 0 : index
    %c0_9 = arith.constant 0 : index
    %c0_10 = arith.constant 0 : index
    %16 = vector.load %arg2[%c0_8, %c0_9, %c0_10] : memref<4x1x512xf32, #tpu.memory_space<vmem>>, vector<1x1x512xf32>
    %17 = vector.shape_cast %16 : vector<1x1x512xf32> to vector<1x512xf32>
    %cst_11 = arith.constant 9.99999974E-6 : f32
    %18 = vector.broadcast %cst_11 : f32 to vector<1x512xf32>
    %19 = arith.addf %15, %18 : vector<1x512xf32>
    %20 = math.rsqrt %19 : vector<1x512xf32>
    %21 = arith.mulf %17, %20 : vector<1x512xf32>
    %22 = vector.broadcast %21 : vector<1x512xf32> to vector<8x512xf32>
    %23 = arith.mulf %10, %22 : vector<8x512xf32>
    %c0_12 = arith.constant 0 : index
    %c0_13 = arith.constant 0 : index
    %c0_14 = arith.constant 0 : index
    %24 = vector.load %arg3[%c0_12, %c0_13, %c0_14] : memref<4x1x512xf32, #tpu.memory_space<vmem>>, vector<1x1x512xf32>
    %25 = vector.shape_cast %24 : vector<1x1x512xf32> to vector<1x512xf32>
    %26 = vector.broadcast %25 : vector<1x512xf32> to vector<8x512xf32>
    %27 = arith.addf %23, %26 : vector<8x512xf32>
    %cst_15 = arith.constant 2.000000e-01 : f32
    %28 = vector.broadcast %cst_15 : f32 to vector<8x512xf32>
    %29 = arith.mulf %28, %27 : vector<8x512xf32>
    %30 = arith.maximumf %27, %29 : vector<8x512xf32>
    %31 = arith.truncf %30 : vector<8x512xf32> to vector<8x512xbf16>
    %c1 = arith.constant 1 : index
    %c0_16 = arith.constant 0 : index
    %c0_17 = arith.constant 0 : index
    %32 = vector.load %arg1[%c1, %c0_16, %c0_17] : memref<4x512x512xbf16, #tpu.memory_space<vmem>>, vector<1x512x512xbf16>
    %33 = vector.shape_cast %32 : vector<1x512x512xbf16> to vector<512x512xbf16>
    %cst_18 = arith.constant dense<0.000000e+00> : vector<8x512xf32>
    %34 = tpu.matmul %31, %33, %cst_18 {dimension_numbers = #tpu.dot_dimension_numbers<[1], [0], [0], [1], [0, 0, 1, 1], [], []>} : vector<8x512xbf16>, vector<512x512xbf16>, vector<8x512xf32> -> vector<8x512xf32>
    %cst_19 = arith.constant dense<0.000000e+00> : vector<512xf32>
    %35 = vector.multi_reduction <add>, %34, %cst_19 [0] : vector<8x512xf32> to vector<512xf32>
    %36 = vector.shape_cast %35 : vector<512xf32> to vector<1x512xf32>
    %cst_20 = arith.constant 8.000000e+00 : f32
    %37 = vector.broadcast %cst_20 : f32 to vector<1x512xf32>
    %38 = arith.divf %36, %37 : vector<1x512xf32>
    %39 = vector.broadcast %38 : vector<1x512xf32> to vector<8x512xf32>
    %40 = arith.subf %34, %39 : vector<8x512xf32>
    %41 = arith.mulf %40, %40 : vector<8x512xf32>
    %cst_21 = arith.constant dense<0.000000e+00> : vector<512xf32>
    %42 = vector.multi_reduction <add>, %41, %cst_21 [0] : vector<8x512xf32> to vector<512xf32>
    %43 = vector.shape_cast %42 : vector<512xf32> to vector<1x512xf32>
    %cst_22 = arith.constant 8.000000e+00 : f32
    %44 = vector.broadcast %cst_22 : f32 to vector<1x512xf32>
    %45 = arith.divf %43, %44 : vector<1x512xf32>
    %c1_23 = arith.constant 1 : index
    %c0_24 = arith.constant 0 : index
    %c0_25 = arith.constant 0 : index
    %46 = vector.load %arg2[%c1_23, %c0_24, %c0_25] : memref<4x1x512xf32, #tpu.memory_space<vmem>>, vector<1x1x512xf32>
    %47 = vector.shape_cast %46 : vector<1x1x512xf32> to vector<1x512xf32>
    %cst_26 = arith.constant 9.99999974E-6 : f32
    %48 = vector.broadcast %cst_26 : f32 to vector<1x512xf32>
    %49 = arith.addf %45, %48 : vector<1x512xf32>
    %50 = math.rsqrt %49 : vector<1x512xf32>
    %51 = arith.mulf %47, %50 : vector<1x512xf32>
    %52 = vector.broadcast %51 : vector<1x512xf32> to vector<8x512xf32>
    %53 = arith.mulf %40, %52 : vector<8x512xf32>
    %c1_27 = arith.constant 1 : index
    %c0_28 = arith.constant 0 : index
    %c0_29 = arith.constant 0 : index
    %54 = vector.load %arg3[%c1_27, %c0_28, %c0_29] : memref<4x1x512xf32, #tpu.memory_space<vmem>>, vector<1x1x512xf32>
    %55 = vector.shape_cast %54 : vector<1x1x512xf32> to vector<1x512xf32>
    %56 = vector.broadcast %55 : vector<1x512xf32> to vector<8x512xf32>
    %57 = arith.addf %53, %56 : vector<8x512xf32>
    %cst_30 = arith.constant 2.000000e-01 : f32
    %58 = vector.broadcast %cst_30 : f32 to vector<8x512xf32>
    %59 = arith.mulf %58, %57 : vector<8x512xf32>
    %60 = arith.maximumf %57, %59 : vector<8x512xf32>
    %61 = arith.truncf %60 : vector<8x512xf32> to vector<8x512xbf16>
    %c2 = arith.constant 2 : index
    %c0_31 = arith.constant 0 : index
    %c0_32 = arith.constant 0 : index
    %62 = vector.load %arg1[%c2, %c0_31, %c0_32] : memref<4x512x512xbf16, #tpu.memory_space<vmem>>, vector<1x512x512xbf16>
    %63 = vector.shape_cast %62 : vector<1x512x512xbf16> to vector<512x512xbf16>
    %cst_33 = arith.constant dense<0.000000e+00> : vector<8x512xf32>
    %64 = tpu.matmul %61, %63, %cst_33 {dimension_numbers = #tpu.dot_dimension_numbers<[1], [0], [0], [1], [0, 0, 1, 1], [], []>} : vector<8x512xbf16>, vector<512x512xbf16>, vector<8x512xf32> -> vector<8x512xf32>
    %cst_34 = arith.constant dense<0.000000e+00> : vector<512xf32>
    %65 = vector.multi_reduction <add>, %64, %cst_34 [0] : vector<8x512xf32> to vector<512xf32>
    %66 = vector.shape_cast %65 : vector<512xf32> to vector<1x512xf32>
    %cst_35 = arith.constant 8.000000e+00 : f32
    %67 = vector.broadcast %cst_35 : f32 to vector<1x512xf32>
    %68 = arith.divf %66, %67 : vector<1x512xf32>
    %69 = vector.broadcast %68 : vector<1x512xf32> to vector<8x512xf32>
    %70 = arith.subf %64, %69 : vector<8x512xf32>
    %71 = arith.mulf %70, %70 : vector<8x512xf32>
    %cst_36 = arith.constant dense<0.000000e+00> : vector<512xf32>
    %72 = vector.multi_reduction <add>, %71, %cst_36 [0] : vector<8x512xf32> to vector<512xf32>
    %73 = vector.shape_cast %72 : vector<512xf32> to vector<1x512xf32>
    %cst_37 = arith.constant 8.000000e+00 : f32
    %74 = vector.broadcast %cst_37 : f32 to vector<1x512xf32>
    %75 = arith.divf %73, %74 : vector<1x512xf32>
    %c2_38 = arith.constant 2 : index
    %c0_39 = arith.constant 0 : index
    %c0_40 = arith.constant 0 : index
    %76 = vector.load %arg2[%c2_38, %c0_39, %c0_40] : memref<4x1x512xf32, #tpu.memory_space<vmem>>, vector<1x1x512xf32>
    %77 = vector.shape_cast %76 : vector<1x1x512xf32> to vector<1x512xf32>
    %cst_41 = arith.constant 9.99999974E-6 : f32
    %78 = vector.broadcast %cst_41 : f32 to vector<1x512xf32>
    %79 = arith.addf %75, %78 : vector<1x512xf32>
    %80 = math.rsqrt %79 : vector<1x512xf32>
    %81 = arith.mulf %77, %80 : vector<1x512xf32>
    %82 = vector.broadcast %81 : vector<1x512xf32> to vector<8x512xf32>
    %83 = arith.mulf %70, %82 : vector<8x512xf32>
    %c2_42 = arith.constant 2 : index
    %c0_43 = arith.constant 0 : index
    %c0_44 = arith.constant 0 : index
    %84 = vector.load %arg3[%c2_42, %c0_43, %c0_44] : memref<4x1x512xf32, #tpu.memory_space<vmem>>, vector<1x1x512xf32>
    %85 = vector.shape_cast %84 : vector<1x1x512xf32> to vector<1x512xf32>
    %86 = vector.broadcast %85 : vector<1x512xf32> to vector<8x512xf32>
    %87 = arith.addf %83, %86 : vector<8x512xf32>
    %cst_45 = arith.constant 2.000000e-01 : f32
    %88 = vector.broadcast %cst_45 : f32 to vector<8x512xf32>
    %89 = arith.mulf %88, %87 : vector<8x512xf32>
    %90 = arith.maximumf %87, %89 : vector<8x512xf32>
    %91 = arith.truncf %90 : vector<8x512xf32> to vector<8x512xbf16>
    %c3 = arith.constant 3 : index
    %c0_46 = arith.constant 0 : index
    %c0_47 = arith.constant 0 : index
    %92 = vector.load %arg1[%c3, %c0_46, %c0_47] : memref<4x512x512xbf16, #tpu.memory_space<vmem>>, vector<1x512x512xbf16>
    %93 = vector.shape_cast %92 : vector<1x512x512xbf16> to vector<512x512xbf16>
    %cst_48 = arith.constant dense<0.000000e+00> : vector<8x512xf32>
    %94 = tpu.matmul %91, %93, %cst_48 {dimension_numbers = #tpu.dot_dimension_numbers<[1], [0], [0], [1], [0, 0, 1, 1], [], []>} : vector<8x512xbf16>, vector<512x512xbf16>, vector<8x512xf32> -> vector<8x512xf32>
    %cst_49 = arith.constant dense<0.000000e+00> : vector<512xf32>
    %95 = vector.multi_reduction <add>, %94, %cst_49 [0] : vector<8x512xf32> to vector<512xf32>
    %96 = vector.shape_cast %95 : vector<512xf32> to vector<1x512xf32>
    %cst_50 = arith.constant 8.000000e+00 : f32
    %97 = vector.broadcast %cst_50 : f32 to vector<1x512xf32>
    %98 = arith.divf %96, %97 : vector<1x512xf32>
    %99 = vector.broadcast %98 : vector<1x512xf32> to vector<8x512xf32>
    %100 = arith.subf %94, %99 : vector<8x512xf32>
    %101 = arith.mulf %100, %100 : vector<8x512xf32>
    %cst_51 = arith.constant dense<0.000000e+00> : vector<512xf32>
    %102 = vector.multi_reduction <add>, %101, %cst_51 [0] : vector<8x512xf32> to vector<512xf32>
    %103 = vector.shape_cast %102 : vector<512xf32> to vector<1x512xf32>
    %cst_52 = arith.constant 8.000000e+00 : f32
    %104 = vector.broadcast %cst_52 : f32 to vector<1x512xf32>
    %105 = arith.divf %103, %104 : vector<1x512xf32>
    %c3_53 = arith.constant 3 : index
    %c0_54 = arith.constant 0 : index
    %c0_55 = arith.constant 0 : index
    %106 = vector.load %arg2[%c3_53, %c0_54, %c0_55] : memref<4x1x512xf32, #tpu.memory_space<vmem>>, vector<1x1x512xf32>
    %107 = vector.shape_cast %106 : vector<1x1x512xf32> to vector<1x512xf32>
    %cst_56 = arith.constant 9.99999974E-6 : f32
    %108 = vector.broadcast %cst_56 : f32 to vector<1x512xf32>
    %109 = arith.addf %105, %108 : vector<1x512xf32>
    %110 = math.rsqrt %109 : vector<1x512xf32>
    %111 = arith.mulf %107, %110 : vector<1x512xf32>
    %112 = vector.broadcast %111 : vector<1x512xf32> to vector<8x512xf32>
    %113 = arith.mulf %100, %112 : vector<8x512xf32>
    %c3_57 = arith.constant 3 : index
    %c0_58 = arith.constant 0 : index
    %c0_59 = arith.constant 0 : index
    %114 = vector.load %arg3[%c3_57, %c0_58, %c0_59] : memref<4x1x512xf32, #tpu.memory_space<vmem>>, vector<1x1x512xf32>
    %115 = vector.shape_cast %114 : vector<1x1x512xf32> to vector<1x512xf32>
    %116 = vector.broadcast %115 : vector<1x512xf32> to vector<8x512xf32>
    %117 = arith.addf %113, %116 : vector<8x512xf32>
    %cst_60 = arith.constant 2.000000e-01 : f32
    %118 = vector.broadcast %cst_60 : f32 to vector<8x512xf32>
    %119 = arith.mulf %118, %117 : vector<8x512xf32>
    %120 = arith.maximumf %117, %119 : vector<8x512xf32>
    %121 = arith.truncf %120 : vector<8x512xf32> to vector<8x512xbf16>
    %c0_61 = arith.constant 0 : index
    %c0_62 = arith.constant 0 : index
    %122 = vector.load %arg4[%c0_61, %c0_62] : memref<1x512xbf16, #tpu.memory_space<vmem>>, vector<1x512xbf16>
    %cst_63 = arith.constant dense<0.000000e+00> : vector<1x8xf32>
    %123 = tpu.matmul %122, %121, %cst_63 {dimension_numbers = #tpu.dot_dimension_numbers<[1], [1], [0], [0], [0, 0, 1, 0], [], []>} : vector<1x512xbf16>, vector<8x512xbf16>, vector<1x8xf32> -> vector<1x8xf32>
    %c0_64 = arith.constant 0 : index
    %c0_65 = arith.constant 0 : index
    %124 = memref.load %arg5[%c0_64, %c0_65] : memref<1x1xf32, #tpu.memory_space<smem>>
    %125 = vector.broadcast %124 : f32 to vector<1x8xf32>
    %126 = arith.addf %123, %125 : vector<1x8xf32>
    %cst_66 = arith.constant 0.000000e+00 : f32
    %127 = vector.broadcast %cst_66 : f32 to vector<1x8xf32>
    %128 = arith.subf %127, %126 : vector<1x8xf32>
    %129 = math.exp %128 : vector<1x8xf32>
    %cst_67 = arith.constant 1.000000e+00 : f32
    %130 = vector.broadcast %cst_67 : f32 to vector<1x8xf32>
    %131 = arith.addf %130, %129 : vector<1x8xf32>
    %cst_68 = arith.constant 1.000000e+00 : f32
    %132 = vector.broadcast %cst_68 : f32 to vector<1x8xf32>
    %133 = arith.divf %132, %131 : vector<1x8xf32>
    %c0_69 = arith.constant 0 : index
    %c0_70 = arith.constant 0 : index
    %134 = vector.load %arg6[%c0_69, %c0_70] : memref<1x8xf32, #tpu.memory_space<vmem>>, vector<1x8xf32>
    tpu.vector_store %arg6[%c0_69, %c0_70], %133 {strides = array<i32>} : memref<1x8xf32, #tpu.memory_space<vmem>>, vector<1x8xf32>,
    return
  }
}

</mosaic_0001>

<bundles_post_ra>
// kernel: domain_classifier.1
= control target key start
LH: loop header
LB: loop body
LE: loop exit
PB: predicated region body
PF: predicated region fallthrough
CT: control target
= control target key end

     0   :  { %12 = vsyncpa [#allocation4], 0  ;;  %s6404_s0 = inlined_call_operand.hbm [shape: f32[8,512], index: 0, kind: input, shape index: {}]   ;;  %s6405_s1 = inlined_call_operand.hbm [shape: bf16[4,512,512], index: 1, kind: input, shape index: {}]   ;;  %s6406_s2 = inlined_call_operand.hbm [shape: f32[4,1,512], index: 2, kind: input, shape index: {}]   ;;  %s6407_s3 = inlined_call_operand.hbm [shape: f32[4,1,512], index: 3, kind: input, shape index: {}]   ;;  %s6408_s4 = inlined_call_operand.hbm [shape: bf16[1,512], index: 4, kind: input, shape index: {}]   ;;  %s6409_s5 = inlined_call_operand.<no memory space> [shape: f32[1,1], index: 5, kind: input, shape index: {}]   ;;  %s6410_s6 = inlined_call_operand.hbm [shape: f32[1,8], index: 6, kind: output, shape index: {}]  }
   0x1   :  { %13 = vsyncpa [#allocation7], 0 }
   0x2   :  { %14 = vsyncpa [#allocation10], 0 }
   0x3   :  { %15 = vsyncpa [#allocation5], 0  ;;  %s6139_s21 = smov [#allocation6]   ;;  %s5999_s25 = scalar_lea.hbm %s6405_s1, 65536 }
   0x4   :  { %s31_s22 = sshll.u32 %s6139_s21, 4  ;;  %p6000_p0 = scmp.ne.s32.totalorder %s6405_s1, %s5999_s25  ;;  %s32_s22 = int_to_ptr.vmem [resolvable:$true] %s31_s22 }
   0x5   :  { %p6003_p1 = scmp.lt.u32.totalorder %s5999_s25, %s6405_s1 }
   0x7   :  { %p6005_p2 = pnand %p6003_p1, %p6000_p0 }
   0x9   :  { %6008 = shalt.err (!%p6005_p2)
}
   0xa   :  { %s6009_s30 = scalar_lea.vmem %s32_s22, 65536  ;;  %p6014_p4 = scmp.lt.s32.totalorder %s32_s22, %s32_s22 }
   0xb   :  { %p6010_p3 = scmp.ne.s32.totalorder %s32_s22, %s6009_s30  ;;  %p6015_p5 = scmp.lt.s32.totalorder %s6009_s30, %s6009_s30 }
   0xd   :  { %p6016_p6 = por %p6015_p5, %p6014_p4 }
   0xf   :  { %p6017_p7 = pnand %p6016_p6, %p6010_p3 }
  0x11   :  { %6020 = shalt.err (!%p6017_p7)
}
  0x12   :  { %s6140_s7 = smov 256   ;;  %s6141_s8 = smov 16  }
  0x13   :  { %37 = dma.hbm_to_vmem [thread:$0]  %s6405_s1, 65536, %s32_s22, [#allocation7], %s6140_s7, %s6140_s7, %s6141_s8  }
  0x14   :  { %s6142_s11 = smov [#allocation9]   ;;  %s6143_s13 = smov [#allocation3]  }
  0x15   :  { %s55_s12 = sshll.u32 %s6142_s11, 4  ;;  %s22_s14 = sshll.u32 %s6143_s13, 4  ;;  %s56_s12 = int_to_ptr.vmem [resolvable:$true] %s55_s12  ;;  %s23_s14 = int_to_ptr.vmem [resolvable:$true] %s22_s14 }
  0x16   :  { %s6021_s17 = scalar_lea.hbm %s6407_s3, 256 }
  0x17   :  { %p6022_p8 = scmp.ne.s32.totalorder %s6407_s3, %s6021_s17  ;;  %p6025_p9 = scmp.lt.u32.totalorder %s6021_s17, %s6407_s3 }
  0x19   :  { %p6027_p10 = pnand %p6025_p9, %p6022_p8 }
  0x1b   :  { %6030 = shalt.err (!%p6027_p10)
}
  0x1c   :  { %s6031_s1 = scalar_lea.vmem %s56_s12, 256  ;;  %p6036_p12 = scmp.lt.s32.totalorder %s56_s12, %s56_s12 }
  0x1d   :  { %p6032_p11 = scmp.ne.s32.totalorder %s56_s12, %s6031_s1  ;;  %p6037_p13 = scmp.lt.s32.totalorder %s6031_s1, %s6031_s1 }
  0x1f   :  { %p6038_p0 = por %p6037_p13, %p6036_p12 }
  0x21   :  { %p6039_p1 = pnand %p6038_p0, %p6032_p11 }
  0x23   :  { %6042 = shalt.err (!%p6039_p1)
}
  0x24   :  { %s6144_s22 = smov 64   ;;  %s6145_s23 = smov 4  }
  0x25   :  { %61 = dma.hbm_to_vmem [thread:$0]  %s6407_s3, 256, %s56_s12, [#allocation10], %s6144_s22, %s6144_s22, %s6145_s23  }
  0x26   :  { %s6043_s28 = scalar_lea.hbm %s6404_s0, 512 }
  0x27   :  { %p6044_p2 = scmp.ne.s32.totalorder %s6404_s0, %s6043_s28  ;;  %p6047_p3 = scmp.lt.u32.totalorder %s6043_s28, %s6404_s0 }
  0x29   :  { %p6049_p4 = pnand %p6047_p3, %p6044_p2 }
  0x2b   :  { %6052 = shalt.err (!%p6049_p4)
}
  0x2c   :  { %s6053_s9 = scalar_lea.vmem %s23_s14, 512  ;;  %p6058_p6 = scmp.lt.s32.totalorder %s23_s14, %s23_s14 }
  0x2d   :  { %p6054_p5 = scmp.ne.s32.totalorder %s23_s14, %s6053_s9  ;;  %p6059_p7 = scmp.lt.s32.totalorder %s6053_s9, %s6053_s9 }
  0x2f   :  { %p6060_p8 = por %p6059_p7, %p6058_p6 }
  0x31   :  { %p6061_p9 = pnand %p6060_p8, %p6054_p5 }
  0x33   :  { %6064 = shalt.err (!%p6061_p9)
}
  0x34   :  { %25 = dma.hbm_to_vmem [thread:$0]  %s6404_s0, 512, %s23_s14, [#allocation4]  }
  0x35   :  { %s6146_s11 = smov [#allocation8]   ;;  %s6147_s13 = smov [#allocation11]  }
  0x36   :  { %s43_s12 = sshll.u32 %s6146_s11, 4  ;;  %s68_s15 = sshll.u32 %s6147_s13, 4  ;;  %s44_s12 = int_to_ptr.vmem [resolvable:$true] %s43_s12  ;;  %s69_s15 = int_to_ptr.vmem [resolvable:$true] %s68_s15 }
  0x37   :  { %s6065_s18 = scalar_lea.hbm %s6406_s2, 256 }
  0x38   :  { %p6066_p10 = scmp.ne.s32.totalorder %s6406_s2, %s6065_s18  ;;  %p6069_p11 = scmp.lt.u32.totalorder %s6065_s18, %s6406_s2 }
  0x3a   :  { %p6071_p12 = pnand %p6069_p11, %p6066_p10 }
  0x3c   :  { %6074 = shalt.err (!%p6071_p12)
}
  0x3d   :  { %s6075_s0 = scalar_lea.vmem %s44_s12, 256  ;;  %p6080_p0 = scmp.lt.s32.totalorder %s44_s12, %s44_s12 }
  0x3e   :  { %p6076_p13 = scmp.ne.s32.totalorder %s44_s12, %s6075_s0  ;;  %p6081_p1 = scmp.lt.s32.totalorder %s6075_s0, %s6075_s0 }
  0x40   :  { %p6082_p2 = por %p6081_p1, %p6080_p0 }
  0x42   :  { %p6083_p3 = pnand %p6082_p2, %p6076_p13 }
  0x44   :  { %6086 = shalt.err (!%p6083_p3)
}
  0x45   :  { %49 = dma.hbm_to_vmem [thread:$0]  %s6406_s2, 256, %s44_s12, [#allocation7], %s6144_s22, %s6144_s22, %s6145_s23  }
  0x46   :  { %s6087_s27 = scalar_lea.hbm %s6408_s4, 64 }
  0x47   :  { %p6088_p4 = scmp.ne.s32.totalorder %s6408_s4, %s6087_s27  ;;  %p6091_p5 = scmp.lt.u32.totalorder %s6087_s27, %s6408_s4 }
  0x49   :  { %p6093_p6 = pnand %p6091_p5, %p6088_p4 }
  0x4b   :  { %6096 = shalt.err (!%p6093_p6)
}
  0x4c   :  { %s6097_s8 = scalar_lea.vmem %s69_s15, 64  ;;  %p6102_p8 = scmp.lt.s32.totalorder %s69_s15, %s69_s15 }
  0x4d   :  { %p6098_p7 = scmp.ne.s32.totalorder %s69_s15, %s6097_s8  ;;  %p6103_p9 = scmp.lt.s32.totalorder %s6097_s8, %s6097_s8 }
  0x4f   :  { %p6104_p10 = por %p6103_p9, %p6102_p8 }
  0x51   :  { %p6105_p11 = pnand %p6104_p10, %p6098_p7 }
  0x53   :  { %6108 = shalt.err (!%p6105_p11)
}
  0x54   :  { %71 = dma.hbm_to_vmem [thread:$0]  %s6408_s4, 64, %s69_s15, [#allocation10]  }
  0x55   :  { %6131 = dma.done.wait [#allocation4], 512  }
  0x56   :  { %6132 = vsyncadd [#allocation4], 4294966784 }
  0x57   :  { %6133 = dma.done.wait [#allocation7], 65792  }
  0x58   :  { %6134 = vsyncadd [#allocation7], 4294901504 }
  0x59   :  { %6135 = dma.done.wait [#allocation10], 320  }
  0x5a   :  { %6136 = vsyncadd [#allocation10], 4294966976  ;;  %v5195_v0 = vld [vmem:[#allocation6 + $0x4] ss:$16 sps:$4 sm:$0xff]   ;;  %v5197_v1 = vld [vmem:[#allocation6 + $0xc] ss:$16 sps:$4 sm:$0xff]  }
  0x5b   :  { %866 = vmatprep.subr.bf16.mxu0 %v5195_v0  ;;  %v5199_v2 = vld [vmem:[#allocation6] ss:$16 sps:$4 sm:$0xff]   ;;  %v5200_v3 = vld [vmem:[#allocation6 + $0x8] ss:$16 sps:$4 sm:$0xff]   ;;  %948 = vmatprep.subr.bf16.mxu1 %v5197_v1  ;;  %v5201_v4 = vld [vmem:[#allocation6 + $0x24] ss:$16 sps:$4 sm:$0xff]  }
  0x5c   :  { %867 = vmatpush1.bf16.msra.mxu0 %v5199_v2  ;;  %949 = vmatpush1.bf16.msra.mxu1 %v5200_v3  ;;  %v5203_v5 = vld [vmem:[#allocation6 + $0x2c] ss:$16 sps:$4 sm:$0xff]   ;;  %v5205_v6 = vld [vmem:[#allocation6 + $0x20] ss:$16 sps:$4 sm:$0xff]   ;;  %v5206_v7 = vld [vmem:[#allocation6 + $0x28] ss:$16 sps:$4 sm:$0xff]  }
  0x5d   :  { %868 = vmatprep.subr.bf16.mxu0 %v5201_v4  ;;  %950 = vmatprep.subr.bf16.mxu1 %v5203_v5  ;;  %v5207_v8 = vld [vmem:[#allocation6 + $0x44] ss:$16 sps:$4 sm:$0xff]   ;;  %v5209_v9 = vld [vmem:[#allocation6 + $0x4c] ss:$16 sps:$4 sm:$0xff]   ;;  %v5211_v10 = vld [vmem:[#allocation6 + $0x40] ss:$16 sps:$4 sm:$0xff]  }
  0x5e   :  { %v5212_v11 = vld [vmem:[#allocation6 + $0x48] ss:$16 sps:$4 sm:$0xff]   ;;  %v5213_v12 = vld [vmem:[#allocation6 + $0x64] ss:$16 sps:$4 sm:$0xff]   ;;  %v5215_v13 = vld [vmem:[#allocation6 + $0x6c] ss:$16 sps:$4 sm:$0xff]  }
  0x5f   :  { %v5217_v14 = vld [vmem:[#allocation6 + $0x60] ss:$16 sps:$4 sm:$0xff]   ;;  %v5218_v15 = vld [vmem:[#allocation6 + $0x68] ss:$16 sps:$4 sm:$0xff]   ;;  %v5219_v16 = vld [vmem:[#allocation6 + $0x84] ss:$16 sps:$4 sm:$0xff]  }
  0x60   :  { %869 = vmatpush1.bf16.msra.mxu0 %v5205_v6  ;;  %951 = vmatpush1.bf16.msra.mxu1 %v5206_v7  ;;  %v5221_v17 = vld [vmem:[#allocation6 + $0x8c] ss:$16 sps:$4 sm:$0xff]   ;;  %v5223_v18 = vld [vmem:[#allocation6 + $0x80] ss:$16 sps:$4 sm:$0xff]   ;;  %v5224_v19 = vld [vmem:[#allocation6 + $0x88] ss:$16 sps:$4 sm:$0xff]  }
  0x61   :  { %870 = vmatprep.subr.bf16.mxu0 %v5207_v8  ;;  %952 = vmatprep.subr.bf16.mxu1 %v5209_v9  ;;  %v5225_v20 = vld [vmem:[#allocation6 + $0xa4] ss:$16 sps:$4 sm:$0xff]   ;;  %v5227_v21 = vld [vmem:[#allocation6 + $0xac] ss:$16 sps:$4 sm:$0xff]   ;;  %v5229_v22 = vld [vmem:[#allocation6 + $0xa0] ss:$16 sps:$4 sm:$0xff]  }
  0x62   :  { %v5230_v23 = vld [vmem:[#allocation6 + $0xa8] ss:$16 sps:$4 sm:$0xff]   ;;  %v5231_v24 = vld [vmem:[#allocation6 + $0xc4] ss:$16 sps:$4 sm:$0xff]   ;;  %v5233_v25 = vld [vmem:[#allocation6 + $0xcc] ss:$16 sps:$4 sm:$0xff]  }
  0x63   :  { %v5235_v26 = vld [vmem:[#allocation6 + $0xc0] ss:$16 sps:$4 sm:$0xff]   ;;  %v5236_v27 = vld [vmem:[#allocation6 + $0xc8] ss:$16 sps:$4 sm:$0xff]   ;;  %v5237_v28 = vld [vmem:[#allocation6 + $0xe4] ss:$16 sps:$4 sm:$0xff]  }
  0x64   :  { %871 = vmatpush1.bf16.msra.mxu0 %v5211_v10  ;;  %953 = vmatpush1.bf16.msra.mxu1 %v5212_v11  ;;  %v5239_v29 = vld [vmem:[#allocation6 + $0xec] ss:$16 sps:$4 sm:$0xff]   ;;  %v5241_v30 = vld [vmem:[#allocation6 + $0xe0] ss:$16 sps:$4 sm:$0xff]   ;;  %v5242_v31 = vld [vmem:[#allocation6 + $0xe8] ss:$16 sps:$4 sm:$0xff]  }
  0x65   :  { %872 = vmatprep.subr.bf16.mxu0 %v5213_v12  ;;  %954 = vmatprep.subr.bf16.mxu1 %v5215_v13  ;;  %v5243_v32 = vld [vmem:[#allocation6 + $0x104] ss:$16 sps:$4 sm:$0xff]   ;;  %v5245_v33 = vld [vmem:[#allocation6 + $0x10c] ss:$16 sps:$4 sm:$0xff]   ;;  %v5247_v34 = vld [vmem:[#allocation6 + $0x100] ss:$16 sps:$4 sm:$0xff]  }
  0x66   :  { %v5248_v35 = vld [vmem:[#allocation6 + $0x108] ss:$16 sps:$4 sm:$0xff]   ;;  %v5249_v36 = vld [vmem:[#allocation6 + $0x124] ss:$16 sps:$4 sm:$0xff]   ;;  %v5251_v37 = vld [vmem:[#allocation6 + $0x12c] ss:$16 sps:$4 sm:$0xff]  }
  0x67   :  { %v5253_v38 = vld [vmem:[#allocation6 + $0x120] ss:$16 sps:$4 sm:$0xff]   ;;  %v5254_v39 = vld [vmem:[#allocation6 + $0x128] ss:$16 sps:$4 sm:$0xff]   ;;  %v5255_v40 = vld [vmem:[#allocation6 + $0x144] ss:$16 sps:$4 sm:$0xff]  }
  0x68   :  { %873 = vmatpush1.bf16.msra.mxu0 %v5217_v14  ;;  %955 = vmatpush1.bf16.msra.mxu1 %v5218_v15  ;;  %v5257_v41 = vld [vmem:[#allocation6 + $0x14c] ss:$16 sps:$4 sm:$0xff]   ;;  %v5259_v42 = vld [vmem:[#allocation6 + $0x140] ss:$16 sps:$4 sm:$0xff]   ;;  %v5260_v43 = vld [vmem:[#allocation6 + $0x148] ss:$16 sps:$4 sm:$0xff]  }
  0x69   :  { %874 = vmatprep.subr.bf16.mxu0 %v5219_v16  ;;  %956 = vmatprep.subr.bf16.mxu1 %v5221_v17  ;;  %v5261_v44 = vld [vmem:[#allocation6 + $0x164] ss:$16 sps:$4 sm:$0xff]   ;;  %v5263_v45 = vld [vmem:[#allocation6 + $0x16c] ss:$16 sps:$4 sm:$0xff]   ;;  %v5265_v47 = vld [vmem:[#allocation6 + $0x160] ss:$16 sps:$4 sm:$0xff]  }
  0x6a   :  { %v91_v46 = vld [vmem:[#allocation3 + $0x8] sm:$0xff]  ;;  %v5267_v50 = vld [vmem:[#allocation6 + $0x184] ss:$16 sps:$4 sm:$0xff]   ;;  %v5271_v52 = vld [vmem:[#allocation6 + $0x180] ss:$16 sps:$4 sm:$0xff]   ;;  %s6149_s9 = smov [#allocation12]  }
  0x6b   :  { %v95_v48 = vpack.c.bf16 %v91_v46, %v91_v46  ;;  %v5266_v49 = vld [vmem:[#allocation6 + $0x168] ss:$16 sps:$4 sm:$0xff]   ;;  %v5269_v51 = vld [vmem:[#allocation6 + $0x18c] ss:$16 sps:$4 sm:$0xff]   ;;  %v5273_v54 = vld [vmem:[#allocation6 + $0x1a4] ss:$16 sps:$4 sm:$0xff]  }
  0x6c   :  { %875 = vmatpush1.bf16.msra.mxu0 %v5223_v18  ;;  %957 = vmatpush1.bf16.msra.mxu1 %v5224_v19  ;;  %v5272_v53 = vld [vmem:[#allocation6 + $0x188] ss:$16 sps:$4 sm:$0xff]   ;;  %v5275_v55 = vld [vmem:[#allocation6 + $0x1ac] ss:$16 sps:$4 sm:$0xff]   ;;  %v5277_v56 = vld [vmem:[#allocation6 + $0x1a0] ss:$16 sps:$4 sm:$0xff]  }
  0x6d   :  { %876 = vmatprep.subr.bf16.mxu0 %v5225_v20  ;;  %958 = vmatprep.subr.bf16.mxu1 %v5227_v21  ;;  %v5278_v57 = vld [vmem:[#allocation6 + $0x1a8] ss:$16 sps:$4 sm:$0xff]   ;;  %v5279_v58 = vld [vmem:[#allocation6 + $0x1c4] ss:$16 sps:$4 sm:$0xff]   ;;  %v5281_v59 = vld [vmem:[#allocation6 + $0x1cc] ss:$16 sps:$4 sm:$0xff]  }
  0x6e   :  { %898 = vmatprep.mubr.bf16.mxu0 %v95_v48  ;;  %980 = vmatprep.mubr.bf16.mxu1 %v95_v48  ;;  %v5283_v60 = vld [vmem:[#allocation6 + $0x1c0] ss:$16 sps:$4 sm:$0xff]   ;;  %v5284_v61 = vld [vmem:[#allocation6 + $0x1c8] ss:$16 sps:$4 sm:$0xff]   ;;  %v5285_v62 = vld [vmem:[#allocation6 + $0x1e4] ss:$16 sps:$4 sm:$0xff]  }
  0x6f   :  { %v5287_v63 = vld [vmem:[#allocation6 + $0x1ec] ss:$16 sps:$4 sm:$0xff]   ;;  %v5289_v0 = vld [vmem:[#allocation6 + $0x1e0] ss:$16 sps:$4 sm:$0xff]   ;;  %v5290_v1 = vld [vmem:[#allocation6 + $0x1e8] ss:$16 sps:$4 sm:$0xff]  }
  0x70   :  { %877 = vmatpush1.bf16.msra.mxu0 %v5229_v22  ;;  %959 = vmatpush1.bf16.msra.mxu1 %v5230_v23  ;;  %v90_v2 = vld [vmem:[#allocation3] sm:$0xff]  ;;  %v5296_v4 = vld [vmem:[#allocation6 + $0x20c] ss:$16 sps:$4 sm:$0xff]   ;;  %v5294_v7 = vld [vmem:[#allocation6 + $0x208] ss:$16 sps:$4 sm:$0xff]   ;;  %s4626_s3 = sshll.u32 %s6149_s9, 4  ;;  %s4627_s3 = int_to_ptr.vmem [resolvable:$true] %s4626_s3 }
  0x71   :  { %878 = vmatprep.subr.bf16.mxu0 %v5231_v24  ;;  %960 = vmatprep.subr.bf16.mxu1 %v5233_v25  ;;  %v5293_v3 = vld [vmem:[#allocation6 + $0x204] ss:$16 sps:$4 sm:$0xff]   ;;  %v94_v5 = vpack.c.bf16 %v90_v2, %v90_v2  ;;  %v5291_v6 = vld [vmem:[#allocation6 + $0x200] ss:$16 sps:$4 sm:$0xff]   ;;  %v5302_v9 = vld [vmem:[#allocation6 + $0x22c] ss:$16 sps:$4 sm:$0xff]   ;;  %p6114_p13 = scmp.lt.s32.totalorder %s4627_s3, %s4627_s3 }
  0x72   :  { %v5299_v8 = vld [vmem:[#allocation6 + $0x224] ss:$16 sps:$4 sm:$0xff]   ;;  %v5297_v10 = vld [vmem:[#allocation6 + $0x220] ss:$16 sps:$4 sm:$0xff]   ;;  %v5300_v11 = vld [vmem:[#allocation6 + $0x228] ss:$16 sps:$4 sm:$0xff]  }
  0x73   :  { %v5305_v12 = vld [vmem:[#allocation6 + $0x244] ss:$16 sps:$4 sm:$0xff]   ;;  %v5308_v13 = vld [vmem:[#allocation6 + $0x24c] ss:$16 sps:$4 sm:$0xff]   ;;  %v5303_v14 = vld [vmem:[#allocation6 + $0x240] ss:$16 sps:$4 sm:$0xff]  }
  0x74   :  { %879 = vmatpush1.bf16.msra.mxu0 %v5235_v26  ;;  %961 = vmatpush1.bf16.msra.mxu1 %v5236_v27  ;;  %v5306_v15 = vld [vmem:[#allocation6 + $0x248] ss:$16 sps:$4 sm:$0xff]   ;;  %v5311_v16 = vld [vmem:[#allocation6 + $0x264] ss:$16 sps:$4 sm:$0xff]   ;;  %v5314_v17 = vld [vmem:[#allocation6 + $0x26c] ss:$16 sps:$4 sm:$0xff]  }
  0x75   :  { %880 = vmatprep.subr.bf16.mxu0 %v5237_v28  ;;  %962 = vmatprep.subr.bf16.mxu1 %v5239_v29  ;;  %v5309_v18 = vld [vmem:[#allocation6 + $0x260] ss:$16 sps:$4 sm:$0xff]   ;;  %v5312_v19 = vld [vmem:[#allocation6 + $0x268] ss:$16 sps:$4 sm:$0xff]   ;;  %v5317_v20 = vld [vmem:[#allocation6 + $0x284] ss:$16 sps:$4 sm:$0xff]  }
  0x76   :  { %v5320_v21 = vld [vmem:[#allocation6 + $0x28c] ss:$16 sps:$4 sm:$0xff]   ;;  %v5315_v22 = vld [vmem:[#allocation6 + $0x280] ss:$16 sps:$4 sm:$0xff]   ;;  %v5318_v23 = vld [vmem:[#allocation6 + $0x288] ss:$16 sps:$4 sm:$0xff]  }
  0x77   :  { %v5323_v24 = vld [vmem:[#allocation6 + $0x2a4] ss:$16 sps:$4 sm:$0xff]   ;;  %v5326_v25 = vld [vmem:[#allocation6 + $0x2ac] ss:$16 sps:$4 sm:$0xff]   ;;  %v5321_v26 = vld [vmem:[#allocation6 + $0x2a0] ss:$16 sps:$4 sm:$0xff]  }
  0x78   :  { %881 = vmatpush1.bf16.msra.mxu0 %v5241_v30  ;;  %963 = vmatpush1.bf16.msra.mxu1 %v5242_v31  ;;  %v5324_v27 = vld [vmem:[#allocation6 + $0x2a8] ss:$16 sps:$4 sm:$0xff]   ;;  %v5329_v28 = vld [vmem:[#allocation6 + $0x2c4] ss:$16 sps:$4 sm:$0xff]   ;;  %v5332_v29 = vld [vmem:[#allocation6 + $0x2cc] ss:$16 sps:$4 sm:$0xff]  }
  0x79   :  { %882 = vmatprep.subr.bf16.mxu0 %v5243_v32  ;;  %964 = vmatprep.subr.bf16.mxu1 %v5245_v33  ;;  %v5327_v30 = vld [vmem:[#allocation6 + $0x2c0] ss:$16 sps:$4 sm:$0xff]   ;;  %v5330_v31 = vld [vmem:[#allocation6 + $0x2c8] ss:$16 sps:$4 sm:$0xff]   ;;  %v5335_v33 = vld [vmem:[#allocation6 + $0x2e4] ss:$16 sps:$4 sm:$0xff]  }
  0x7a   :  { %v93_v32 = vld [vmem:[#allocation3 + $0x18] sm:$0xff]  ;;  %v5353_v46 = vld [vmem:[#allocation6 + $0x344] ss:$16 sps:$4 sm:$0xff]   ;;  %v5351_v48 = vld [vmem:[#allocation6 + $0x340] ss:$16 sps:$4 sm:$0xff]   ;;  %vm4618_vm0 = vcmask 57344  }
  0x7b   :  { %v5383_v2 = vld [vmem:[#allocation6 + $0x3e4] ss:$16 sps:$4 sm:$0xff]   ;;  %s6113_s10 = scalar_lea.vmem %s4627_s3, 32 }
  0x7c   :  { %883 = vmatpush1.bf16.msra.mxu0 %v5247_v34  ;;  %965 = vmatpush1.bf16.msra.mxu1 %v5248_v35  ;;  %v5338_v34 = vld [vmem:[#allocation6 + $0x2ec] ss:$16 sps:$4 sm:$0xff]   ;;  %v97_v35 = vpack.c.bf16 %v93_v32, %v93_v32  ;;  %v5425_v32 = vld [vmem:[#allocation6 + $0x4c4] ss:$16 sps:$4 sm:$0xff]  }
  0x7d   :  { %884 = vmatprep.subr.bf16.mxu0 %v5249_v36  ;;  %966 = vmatprep.subr.bf16.mxu1 %v5251_v37  ;;  %v5333_v36 = vld [vmem:[#allocation6 + $0x2e0] ss:$16 sps:$4 sm:$0xff]   ;;  %v5336_v37 = vld [vmem:[#allocation6 + $0x2e8] ss:$16 sps:$4 sm:$0xff]  }
  0x80   :  { %885 = vmatpush1.bf16.msra.mxu0 %v5253_v38  ;;  %967 = vmatpush1.bf16.msra.mxu1 %v5254_v39  ;;  %v5341_v38 = vld [vmem:[#allocation6 + $0x304] ss:$16 sps:$4 sm:$0xff]   ;;  %v5344_v39 = vld [vmem:[#allocation6 + $0x30c] ss:$16 sps:$4 sm:$0xff]  }
  0x81   :  { %886 = vmatprep.subr.bf16.mxu0 %v5255_v40  ;;  %968 = vmatprep.subr.bf16.mxu1 %v5257_v41  ;;  %v5339_v40 = vld [vmem:[#allocation6 + $0x300] ss:$16 sps:$4 sm:$0xff]   ;;  %v5342_v41 = vld [vmem:[#allocation6 + $0x308] ss:$16 sps:$4 sm:$0xff]  }
  0x84   :  { %887 = vmatpush1.bf16.msra.mxu0 %v5259_v42  ;;  %969 = vmatpush1.bf16.msra.mxu1 %v5260_v43  ;;  %v5347_v42 = vld [vmem:[#allocation6 + $0x324] ss:$16 sps:$4 sm:$0xff]   ;;  %v5350_v43 = vld [vmem:[#allocation6 + $0x32c] ss:$16 sps:$4 sm:$0xff]  }
  0x85   :  { %888 = vmatprep.subr.bf16.mxu0 %v5261_v44  ;;  %970 = vmatprep.subr.bf16.mxu1 %v5263_v45  ;;  %v5345_v44 = vld [vmem:[#allocation6 + $0x320] ss:$16 sps:$4 sm:$0xff]   ;;  %v5348_v45 = vld [vmem:[#allocation6 + $0x328] ss:$16 sps:$4 sm:$0xff]  }
  0x88   :  { %889 = vmatpush1.bf16.msra.mxu0 %v5265_v47  ;;  %971 = vmatpush1.bf16.msra.mxu1 %v5266_v49  ;;  %v5356_v47 = vld [vmem:[#allocation6 + $0x34c] ss:$16 sps:$4 sm:$0xff]   ;;  %v5354_v49 = vld [vmem:[#allocation6 + $0x348] ss:$16 sps:$4 sm:$0xff]  }
  0x89   :  { %890 = vmatprep.subr.bf16.mxu0 %v5267_v50  ;;  %972 = vmatprep.subr.bf16.mxu1 %v5269_v51  ;;  %v5359_v50 = vld [vmem:[#allocation6 + $0x364] ss:$16 sps:$4 sm:$0xff]   ;;  %v5362_v51 = vld [vmem:[#allocation6 + $0x36c] ss:$16 sps:$4 sm:$0xff]  }
  0x8c   :  { %891 = vmatpush1.bf16.msra.mxu0 %v5271_v52  ;;  %973 = vmatpush1.bf16.msra.mxu1 %v5272_v53  ;;  %v5357_v52 = vld [vmem:[#allocation6 + $0x360] ss:$16 sps:$4 sm:$0xff]   ;;  %v5360_v53 = vld [vmem:[#allocation6 + $0x368] ss:$16 sps:$4 sm:$0xff]  }
  0x8d   :  { %892 = vmatprep.subr.bf16.mxu0 %v5273_v54  ;;  %974 = vmatprep.subr.bf16.mxu1 %v5275_v55  ;;  %v5365_v54 = vld [vmem:[#allocation6 + $0x384] ss:$16 sps:$4 sm:$0xff]   ;;  %v5368_v55 = vld [vmem:[#allocation6 + $0x38c] ss:$16 sps:$4 sm:$0xff]  }
  0x90   :  { %893 = vmatpush1.bf16.msra.mxu0 %v5277_v56  ;;  %975 = vmatpush1.bf16.msra.mxu1 %v5278_v57  ;;  %v5363_v56 = vld [vmem:[#allocation6 + $0x380] ss:$16 sps:$4 sm:$0xff]   ;;  %v5366_v57 = vld [vmem:[#allocation6 + $0x388] ss:$16 sps:$4 sm:$0xff]  }
  0x91   :  { %894 = vmatprep.subr.bf16.mxu0 %v5279_v58  ;;  %976 = vmatprep.subr.bf16.mxu1 %v5281_v59  ;;  %v5371_v58 = vld [vmem:[#allocation6 + $0x3a4] ss:$16 sps:$4 sm:$0xff]   ;;  %v5374_v59 = vld [vmem:[#allocation6 + $0x3ac] ss:$16 sps:$4 sm:$0xff]  }
  0x94   :  { %895 = vmatpush1.bf16.msra.mxu0 %v5283_v60  ;;  %977 = vmatpush1.bf16.msra.mxu1 %v5284_v61  ;;  %v5369_v60 = vld [vmem:[#allocation6 + $0x3a0] ss:$16 sps:$4 sm:$0xff]   ;;  %v5372_v61 = vld [vmem:[#allocation6 + $0x3a8] ss:$16 sps:$4 sm:$0xff]  }
  0x95   :  { %896 = vmatprep.subr.bf16.mxu0 %v5285_v62  ;;  %978 = vmatprep.subr.bf16.mxu1 %v5287_v63  ;;  %v5377_v62 = vld [vmem:[#allocation6 + $0x3c4] ss:$16 sps:$4 sm:$0xff]   ;;  %v5380_v63 = vld [vmem:[#allocation6 + $0x3cc] ss:$16 sps:$4 sm:$0xff]  }
  0x98   :  { %897 = vmatpush1.bf16.msra.mxu0 %v5289_v0  ;;  %979 = vmatpush1.bf16.msra.mxu1 %v5290_v1  ;;  %v5375_v0 = vld [vmem:[#allocation6 + $0x3c0] ss:$16 sps:$4 sm:$0xff]   ;;  %v5378_v1 = vld [vmem:[#allocation6 + $0x3c8] ss:$16 sps:$4 sm:$0xff]  }
  0x99   :  { %907 = vmatprep.subr.bf16.mxu0 %v5293_v3  ;;  %989 = vmatprep.subr.bf16.mxu1 %v5296_v4  ;;  %v5386_v3 = vld [vmem:[#allocation6 + $0x3ec] ss:$16 sps:$4 sm:$0xff]   ;;  %v5381_v4 = vld [vmem:[#allocation6 + $0x3e0] ss:$16 sps:$4 sm:$0xff]  }
  0x9b   :  { %899 = vmatmul.mubr.bf16.vlgmr.msra.gmra.mrb[0].mxu0 %v94_v5  ;;  %981 = vmatmul.mubr.bf16.vlgmr.msra.gmra.mrb[0].mxu1 %v94_v5  ;;  %v5384_v5 = vld [vmem:[#allocation6 + $0x3e8] ss:$16 sps:$4 sm:$0xff]  }
  0x9c   :  { %908 = vmatpush1.bf16.msra.mxu0 %v5291_v6  ;;  %990 = vmatpush1.bf16.msra.mxu1 %v5294_v7  ;;  %v92_v6 = vld [vmem:[#allocation3 + $0x10] sm:$0xff] }
  0x9d   :  { %909 = vmatprep.subr.bf16.mxu0 %v5299_v8  ;;  %991 = vmatprep.subr.bf16.mxu1 %v5302_v9  ;;  %v96_v7 = vpack.c.bf16 %v92_v6, %v92_v6  ;;  %v5389_v8 = vld [vmem:[#allocation6 + $0x404] ss:$16 sps:$4 sm:$0xff]   ;;  %v5392_v9 = vld [vmem:[#allocation6 + $0x40c] ss:$16 sps:$4 sm:$0xff]   ;;  %v5477_v6 = vld [vmem:[#allocation6 + $0x5e0] ss:$16 sps:$4 sm:$0xff]  }
  0x9e   :  { %939 = vmatprep.mubr.bf16.mxu0 %v97_v35  ;;  %1021 = vmatprep.mubr.bf16.mxu1 %v97_v35  ;;  %v5426_v35 = vld [vmem:[#allocation6 + $0x4c8] ss:$16 sps:$4 sm:$0xff]  }
  0xa0   :  { %910 = vmatpush1.bf16.msra.mxu0 %v5297_v10  ;;  %992 = vmatpush1.bf16.msra.mxu1 %v5300_v11  ;;  %v5387_v10 = vld [vmem:[#allocation6 + $0x400] ss:$16 sps:$4 sm:$0xff]   ;;  %v5390_v11 = vld [vmem:[#allocation6 + $0x408] ss:$16 sps:$4 sm:$0xff]  }
  0xa1   :  { %911 = vmatprep.subr.bf16.mxu0 %v5305_v12  ;;  %993 = vmatprep.subr.bf16.mxu1 %v5308_v13  ;;  %v5395_v12 = vld [vmem:[#allocation6 + $0x424] ss:$16 sps:$4 sm:$0xff]   ;;  %v5398_v13 = vld [vmem:[#allocation6 + $0x42c] ss:$16 sps:$4 sm:$0xff]  }
  0xa4   :  { %912 = vmatpush1.bf16.msra.mxu0 %v5303_v14  ;;  %994 = vmatpush1.bf16.msra.mxu1 %v5306_v15  ;;  %v5393_v14 = vld [vmem:[#allocation6 + $0x420] ss:$16 sps:$4 sm:$0xff]   ;;  %v5396_v15 = vld [vmem:[#allocation6 + $0x428] ss:$16 sps:$4 sm:$0xff]  }
  0xa5   :  { %913 = vmatprep.subr.bf16.mxu0 %v5311_v16  ;;  %995 = vmatprep.subr.bf16.mxu1 %v5314_v17  ;;  %v5401_v16 = vld [vmem:[#allocation6 + $0x444] ss:$16 sps:$4 sm:$0xff]   ;;  %v5404_v17 = vld [vmem:[#allocation6 + $0x44c] ss:$16 sps:$4 sm:$0xff]  }
  0xa8   :  { %914 = vmatpush1.bf16.msra.mxu0 %v5309_v18  ;;  %996 = vmatpush1.bf16.msra.mxu1 %v5312_v19  ;;  %v5399_v18 = vld [vmem:[#allocation6 + $0x440] ss:$16 sps:$4 sm:$0xff]   ;;  %v5402_v19 = vld [vmem:[#allocation6 + $0x448] ss:$16 sps:$4 sm:$0xff]  }
  0xa9   :  { %915 = vmatprep.subr.bf16.mxu0 %v5317_v20  ;;  %997 = vmatprep.subr.bf16.mxu1 %v5320_v21  ;;  %v5407_v20 = vld [vmem:[#allocation6 + $0x464] ss:$16 sps:$4 sm:$0xff]   ;;  %v5410_v21 = vld [vmem:[#allocation6 + $0x46c] ss:$16 sps:$4 sm:$0xff]  }
  0xac   :  { %916 = vmatpush1.bf16.msra.mxu0 %v5315_v22  ;;  %998 = vmatpush1.bf16.msra.mxu1 %v5318_v23  ;;  %v5405_v22 = vld [vmem:[#allocation6 + $0x460] ss:$16 sps:$4 sm:$0xff]   ;;  %v5408_v23 = vld [vmem:[#allocation6 + $0x468] ss:$16 sps:$4 sm:$0xff]  }
  0xad   :  { %917 = vmatprep.subr.bf16.mxu0 %v5323_v24  ;;  %999 = vmatprep.subr.bf16.mxu1 %v5326_v25  ;;  %v5413_v24 = vld [vmem:[#allocation6 + $0x484] ss:$16 sps:$4 sm:$0xff]   ;;  %v5416_v25 = vld [vmem:[#allocation6 + $0x48c] ss:$16 sps:$4 sm:$0xff]  }
  0xb0   :  { %918 = vmatpush1.bf16.msra.mxu0 %v5321_v26  ;;  %1000 = vmatpush1.bf16.msra.mxu1 %v5324_v27  ;;  %v5411_v26 = vld [vmem:[#allocation6 + $0x480] ss:$16 sps:$4 sm:$0xff]   ;;  %v5414_v27 = vld [vmem:[#allocation6 + $0x488] ss:$16 sps:$4 sm:$0xff]  }
  0xb1   :  { %919 = vmatprep.subr.bf16.mxu0 %v5329_v28  ;;  %1001 = vmatprep.subr.bf16.mxu1 %v5332_v29  ;;  %v5419_v28 = vld [vmem:[#allocation6 + $0x4a4] ss:$16 sps:$4 sm:$0xff]   ;;  %v5422_v29 = vld [vmem:[#allocation6 + $0x4ac] ss:$16 sps:$4 sm:$0xff]  }
  0xb4   :  { %920 = vmatpush1.bf16.msra.mxu0 %v5327_v30  ;;  %1002 = vmatpush1.bf16.msra.mxu1 %v5330_v31  ;;  %v5417_v30 = vld [vmem:[#allocation6 + $0x4a0] ss:$16 sps:$4 sm:$0xff]   ;;  %v5420_v31 = vld [vmem:[#allocation6 + $0x4a8] ss:$16 sps:$4 sm:$0xff]  }
  0xb5   :  { %921 = vmatprep.subr.bf16.mxu0 %v5335_v33  ;;  %1003 = vmatprep.subr.bf16.mxu1 %v5338_v34  ;;  %v5428_v33 = vld [vmem:[#allocation6 + $0x4cc] ss:$16 sps:$4 sm:$0xff]   ;;  %v5423_v34 = vld [vmem:[#allocation6 + $0x4c0] ss:$16 sps:$4 sm:$0xff]  }
  0xb8   :  { %922 = vmatpush1.bf16.msra.mxu0 %v5333_v36  ;;  %1004 = vmatpush1.bf16.msra.mxu1 %v5336_v37  ;;  %v5431_v36 = vld [vmem:[#allocation6 + $0x4e4] ss:$16 sps:$4 sm:$0xff]   ;;  %v5434_v37 = vld [vmem:[#allocation6 + $0x4ec] ss:$16 sps:$4 sm:$0xff]  }
  0xb9   :  { %923 = vmatprep.subr.bf16.mxu0 %v5341_v38  ;;  %1005 = vmatprep.subr.bf16.mxu1 %v5344_v39  ;;  %v5429_v38 = vld [vmem:[#allocation6 + $0x4e0] ss:$16 sps:$4 sm:$0xff]   ;;  %v5432_v39 = vld [vmem:[#allocation6 + $0x4e8] ss:$16 sps:$4 sm:$0xff]  }
  0xbc   :  { %924 = vmatpush1.bf16.msra.mxu0 %v5339_v40  ;;  %1006 = vmatpush1.bf16.msra.mxu1 %v5342_v41  ;;  %v5437_v40 = vld [vmem:[#allocation6 + $0x504] ss:$16 sps:$4 sm:$0xff]   ;;  %v5440_v41 = vld [vmem:[#allocation6 + $0x50c] ss:$16 sps:$4 sm:$0xff]  }
  0xbd   :  { %925 = vmatprep.subr.bf16.mxu0 %v5347_v42  ;;  %1007 = vmatprep.subr.bf16.mxu1 %v5350_v43  ;;  %v5435_v42 = vld [vmem:[#allocation6 + $0x500] ss:$16 sps:$4 sm:$0xff]   ;;  %v5438_v43 = vld [vmem:[#allocation6 + $0x508] ss:$16 sps:$4 sm:$0xff]  }
  0xc0   :  { %926 = vmatpush1.bf16.msra.mxu0 %v5345_v44  ;;  %1008 = vmatpush1.bf16.msra.mxu1 %v5348_v45  ;;  %v5443_v44 = vld [vmem:[#allocation6 + $0x524] ss:$16 sps:$4 sm:$0xff]   ;;  %v5446_v45 = vld [vmem:[#allocation6 + $0x52c] ss:$16 sps:$4 sm:$0xff]  }
  0xc1   :  { %927 = vmatprep.subr.bf16.mxu0 %v5353_v46  ;;  %1009 = vmatprep.subr.bf16.mxu1 %v5356_v47  ;;  %v5441_v46 = vld [vmem:[#allocation6 + $0x520] ss:$16 sps:$4 sm:$0xff]   ;;  %v5444_v47 = vld [vmem:[#allocation6 + $0x528] ss:$16 sps:$4 sm:$0xff]  }
  0xc4   :  { %928 = vmatpush1.bf16.msra.mxu0 %v5351_v48  ;;  %1010 = vmatpush1.bf16.msra.mxu1 %v5354_v49  ;;  %v5449_v48 = vld [vmem:[#allocation6 + $0x544] ss:$16 sps:$4 sm:$0xff]   ;;  %v5452_v49 = vld [vmem:[#allocation6 + $0x54c] ss:$16 sps:$4 sm:$0xff]  }
  0xc5   :  { %929 = vmatprep.subr.bf16.mxu0 %v5359_v50  ;;  %1011 = vmatprep.subr.bf16.mxu1 %v5362_v51  ;;  %v5447_v50 = vld [vmem:[#allocation6 + $0x540] ss:$16 sps:$4 sm:$0xff]   ;;  %v5450_v51 = vld [vmem:[#allocation6 + $0x548] ss:$16 sps:$4 sm:$0xff]  }
  0xc8   :  { %930 = vmatpush1.bf16.msra.mxu0 %v5357_v52  ;;  %1012 = vmatpush1.bf16.msra.mxu1 %v5360_v53  ;;  %v5455_v52 = vld [vmem:[#allocation6 + $0x564] ss:$16 sps:$4 sm:$0xff]   ;;  %v5458_v53 = vld [vmem:[#allocation6 + $0x56c] ss:$16 sps:$4 sm:$0xff]  }
  0xc9   :  { %931 = vmatprep.subr.bf16.mxu0 %v5365_v54  ;;  %1013 = vmatprep.subr.bf16.mxu1 %v5368_v55  ;;  %v5453_v54 = vld [vmem:[#allocation6 + $0x560] ss:$16 sps:$4 sm:$0xff]   ;;  %v5456_v55 = vld [vmem:[#allocation6 + $0x568] ss:$16 sps:$4 sm:$0xff]  }
  0xcc   :  { %932 = vmatpush1.bf16.msra.mxu0 %v5363_v56  ;;  %1014 = vmatpush1.bf16.msra.mxu1 %v5366_v57  ;;  %v5461_v56 = vld [vmem:[#allocation6 + $0x584] ss:$16 sps:$4 sm:$0xff]   ;;  %v5464_v57 = vld [vmem:[#allocation6 + $0x58c] ss:$16 sps:$4 sm:$0xff]  }
  0xcd   :  { %933 = vmatprep.subr.bf16.mxu0 %v5371_v58  ;;  %1015 = vmatprep.subr.bf16.mxu1 %v5374_v59  ;;  %v5459_v58 = vld [vmem:[#allocation6 + $0x580] ss:$16 sps:$4 sm:$0xff]   ;;  %v5462_v59 = vld [vmem:[#allocation6 + $0x588] ss:$16 sps:$4 sm:$0xff]  }
  0xd0   :  { %934 = vmatpush1.bf16.msra.mxu0 %v5369_v60  ;;  %1016 = vmatpush1.bf16.msra.mxu1 %v5372_v61  ;;  %v5467_v60 = vld [vmem:[#allocation6 + $0x5a4] ss:$16 sps:$4 sm:$0xff]   ;;  %v5470_v61 = vld [vmem:[#allocation6 + $0x5ac] ss:$16 sps:$4 sm:$0xff]  }
  0xd1   :  { %935 = vmatprep.subr.bf16.mxu0 %v5377_v62  ;;  %1017 = vmatprep.subr.bf16.mxu1 %v5380_v63  ;;  %v5465_v62 = vld [vmem:[#allocation6 + $0x5a0] ss:$16 sps:$4 sm:$0xff]   ;;  %v5468_v63 = vld [vmem:[#allocation6 + $0x5a8] ss:$16 sps:$4 sm:$0xff]  }
  0xd4   :  { %936 = vmatpush1.bf16.msra.mxu0 %v5375_v0  ;;  %1018 = vmatpush1.bf16.msra.mxu1 %v5378_v1  ;;  %v5471_v0 = vld [vmem:[#allocation6 + $0x5c0] ss:$16 sps:$4 sm:$0xff]   ;;  %v5473_v1 = vld [vmem:[#allocation6 + $0x5c4] ss:$16 sps:$4 sm:$0xff]  }
  0xd5   :  { %937 = vmatprep.subr.bf16.mxu0 %v5383_v2  ;;  %1019 = vmatprep.subr.bf16.mxu1 %v5386_v3  ;;  %v5474_v2 = vld [vmem:[#allocation6 + $0x5c8] ss:$16 sps:$4 sm:$0xff]   ;;  %v5476_v3 = vld [vmem:[#allocation6 + $0x5cc] ss:$16 sps:$4 sm:$0xff]  }
  0xd8   :  { %938 = vmatpush1.bf16.msra.mxu0 %v5381_v4  ;;  %1020 = vmatpush1.bf16.msra.mxu1 %v5384_v5  ;;  %v5479_v4 = vld [vmem:[#allocation6 + $0x5e4] ss:$16 sps:$4 sm:$0xff]   ;;  %v5482_v5 = vld [vmem:[#allocation6 + $0x5ec] ss:$16 sps:$4 sm:$0xff]  }
  0xd9   :  { %1966 = vmatprep.subr.bf16.mxu0 %v5389_v8  ;;  %2048 = vmatprep.subr.bf16.mxu1 %v5392_v9  ;;  %v5485_v8 = vld [vmem:[#allocation6 + $0x604] ss:$16 sps:$4 sm:$0xff]   ;;  %v5488_v9 = vld [vmem:[#allocation6 + $0x60c] ss:$16 sps:$4 sm:$0xff]  }
  0xdb   :  { %940 = vmatmul.mubr.bf16.vlgmr.msra.gmra.mrb[0].mxu0 %v96_v7  ;;  %1022 = vmatmul.mubr.bf16.vlgmr.msra.gmra.mrb[0].mxu1 %v96_v7  ;;  %v5480_v7 = vld [vmem:[#allocation6 + $0x5e8] ss:$16 sps:$4 sm:$0xff]  }
  0xdc   :  { %1967 = vmatpush1.bf16.msra.mxu0 %v5387_v10  ;;  %2049 = vmatpush1.bf16.msra.mxu1 %v5390_v11 }
  0xdd   :  { %1968 = vmatprep.subr.bf16.mxu0 %v5395_v12  ;;  %2050 = vmatprep.subr.bf16.mxu1 %v5398_v13 }
  0xe0   :  { %1969 = vmatpush1.bf16.msra.mxu0 %v5393_v14  ;;  %2051 = vmatpush1.bf16.msra.mxu1 %v5396_v15 }
  0xe1   :  { %1970 = vmatprep.subr.bf16.mxu0 %v5401_v16  ;;  %2052 = vmatprep.subr.bf16.mxu1 %v5404_v17 }
  0xe4   :  { %1971 = vmatpush1.bf16.msra.mxu0 %v5399_v18  ;;  %2053 = vmatpush1.bf16.msra.mxu1 %v5402_v19 }
  0xe5   :  { %1972 = vmatprep.subr.bf16.mxu0 %v5407_v20  ;;  %2054 = vmatprep.subr.bf16.mxu1 %v5410_v21 }
  0xe8   :  { %1973 = vmatpush1.bf16.msra.mxu0 %v5405_v22  ;;  %2055 = vmatpush1.bf16.msra.mxu1 %v5408_v23 }
  0xe9   :  { %1974 = vmatprep.subr.bf16.mxu0 %v5413_v24  ;;  %2056 = vmatprep.subr.bf16.mxu1 %v5416_v25 }
  0xec   :  { %1975 = vmatpush1.bf16.msra.mxu0 %v5411_v26  ;;  %2057 = vmatpush1.bf16.msra.mxu1 %v5414_v27 }
  0xed   :  { %1976 = vmatprep.subr.bf16.mxu0 %v5419_v28  ;;  %2058 = vmatprep.subr.bf16.mxu1 %v5422_v29 }
  0xf0   :  { %1977 = vmatpush1.bf16.msra.mxu0 %v5417_v30  ;;  %2059 = vmatpush1.bf16.msra.mxu1 %v5420_v31 }
  0xf1   :  { %1978 = vmatprep.subr.bf16.mxu0 %v5425_v32  ;;  %2060 = vmatprep.subr.bf16.mxu1 %v5428_v33 }
  0xf4   :  { %1979 = vmatpush1.bf16.msra.mxu0 %v5423_v34  ;;  %2061 = vmatpush1.bf16.msra.mxu1 %v5426_v35 }
  0xf5   :  { %1980 = vmatprep.subr.bf16.mxu0 %v5431_v36  ;;  %2062 = vmatprep.subr.bf16.mxu1 %v5434_v37 }
  0xf8   :  { %1981 = vmatpush1.bf16.msra.mxu0 %v5429_v38  ;;  %2063 = vmatpush1.bf16.msra.mxu1 %v5432_v39 }
  0xf9   :  { %1982 = vmatprep.subr.bf16.mxu0 %v5437_v40  ;;  %2064 = vmatprep.subr.bf16.mxu1 %v5440_v41 }
  0xfc   :  { %1983 = vmatpush1.bf16.msra.mxu0 %v5435_v42  ;;  %2065 = vmatpush1.bf16.msra.mxu1 %v5438_v43 }
  0xfd   :  { %1984 = vmatprep.subr.bf16.mxu0 %v5443_v44  ;;  %2066 = vmatprep.subr.bf16.mxu1 %v5446_v45 }
 0x100   :  { %1985 = vmatpush1.bf16.msra.mxu0 %v5441_v46  ;;  %2067 = vmatpush1.bf16.msra.mxu1 %v5444_v47 }
 0x101   :  { %1986 = vmatprep.subr.bf16.mxu0 %v5449_v48  ;;  %2068 = vmatprep.subr.bf16.mxu1 %v5452_v49 }
 0x104   :  { %1987 = vmatpush1.bf16.msra.mxu0 %v5447_v50  ;;  %2069 = vmatpush1.bf16.msra.mxu1 %v5450_v51 }
 0x105   :  { %1988 = vmatprep.subr.bf16.mxu0 %v5455_v52  ;;  %2070 = vmatprep.subr.bf16.mxu1 %v5458_v53 }
 0x108   :  { %1989 = vmatpush1.bf16.msra.mxu0 %v5453_v54  ;;  %2071 = vmatpush1.bf16.msra.mxu1 %v5456_v55 }
 0x109   :  { %1990 = vmatprep.subr.bf16.mxu0 %v5461_v56  ;;  %2072 = vmatprep.subr.bf16.mxu1 %v5464_v57 }
 0x10c   :  { %1991 = vmatpush1.bf16.msra.mxu0 %v5459_v58  ;;  %2073 = vmatpush1.bf16.msra.mxu1 %v5462_v59 }
 0x10d   :  { %1992 = vmatprep.subr.bf16.mxu0 %v5467_v60  ;;  %2074 = vmatprep.subr.bf16.mxu1 %v5470_v61 }
 0x110   :  { %1993 = vmatpush1.bf16.msra.mxu0 %v5465_v62  ;;  %2075 = vmatpush1.bf16.msra.mxu1 %v5468_v63 }
 0x111   :  { %1994 = vmatprep.subr.bf16.mxu0 %v5473_v1  ;;  %2076 = vmatprep.subr.bf16.mxu1 %v5476_v3 }
 0x114   :  { %1995 = vmatpush1.bf16.msra.mxu0 %v5471_v0  ;;  %2077 = vmatpush1.bf16.msra.mxu1 %v5474_v2 }
 0x115   :  { %1996 = vmatprep.subr.bf16.mxu0 %v5479_v4  ;;  %2078 = vmatprep.subr.bf16.mxu1 %v5482_v5 }
 0x118   :  { %1997 = vmatpush1.bf16.msra.mxu0 %v5477_v6  ;;  %2079 = vmatpush1.bf16.msra.mxu1 %v5480_v7 }
 0x119   :  { %2007 = vmatprep.subr.bf16.mxu0 %v5485_v8  ;;  %2089 = vmatprep.subr.bf16.mxu1 %v5488_v9 }
 0x1ae   :  { %v941_v10 = vpop.f32.mrb[0].mxu0  ;;  %v1023_v11 = vpop.f32.mrb[0].mxu1 }
 0x1af   :  { %v1030_v12 = vrot.slane %v941_v10, 4  ;;  %v1042_v13 = vrot.slane %v1023_v11, 4  ;;  %v943_v14 = vpop.f32.mrb[1].mxu0  ;;  %v1025_v15 = vpop.f32.mrb[1].mxu1 }
 0x1b0   :  { %v1036_v16 = vrot.slane %v943_v14, 4  ;;  %v1048_v17 = vrot.slane %v1025_v15, 4  ;;  %v945_v18 = vpop.f32.mrb[2].mxu0  ;;  %v1027_v19 = vpop.f32.mrb[2].mxu1 }
 0x1b1   :  { %v1031_v20 = vadd.f32 %v1030_v12, %v941_v10  ;;  %v1043_v21 = vadd.f32 %v1042_v13, %v1023_v11  ;;  %v946_v22 = vpop.f32.mrb[3].mxu0  ;;  %v1028_v23 = vpop.f32.mrb[3].mxu1 }
 0x1b2   :  { %v1037_v24 = vadd.f32 %v1036_v16, %v943_v14  ;;  %v1049_v25 = vadd.f32 %v1048_v17, %v1025_v15  ;;  %v6148_v22 = vmov 1966171168  }
 0x1b3   :  { %v1032_v26 = vrot.slane %v1031_v20, 2  ;;  %v1044_v27 = vrot.slane %v1043_v21, 2  ;;  %v1111_v23 = vunpack.c.l.s4 %v6148_v22  ;;  %v5507_v22 = vld [vmem:[#allocation6 + $0x680] ss:$16 sps:$4 sm:$0xff]  }
 0x1b4   :  { %v1038_v28 = vrot.slane %v1037_v24, 2  ;;  %v1050_v29 = vrot.slane %v1049_v25, 2 }
 0x1b5   :  { %v1033_v30 = vadd.f32 %v1032_v26, %v1031_v20  ;;  %v1045_v31 = vadd.f32 %v1044_v27, %v1043_v21 }
 0x1b6   :  { %v1039_v32 = vadd.f32 %v1038_v28, %v1037_v24  ;;  %v1051_v33 = vadd.f32 %v1050_v29, %v1049_v25  ;;  %v1113_v24 = vlaneseq  ;;  %v1112_v25 = vunpack.c.0.s8 %v1111_v23  ;;  %v5510_v23 = vld [vmem:[#allocation6 + $0x688] ss:$16 sps:$4 sm:$0xff]  }
 0x1b7   :  { %v1034_v34 = vrot.slane %v1033_v30, 1  ;;  %v1046_v35 = vrot.slane %v1045_v31, 1 }
 0x1b8   :  { %v1040_v36 = vrot.slane %v1039_v32, 1  ;;  %v1052_v37 = vrot.slane %v1051_v33, 1  ;;  %v1114_v26 = vshrl.u32 %v1113_v24, 7  ;;  %v5515_v24 = vld [vmem:[#allocation6 + $0x6a4] ss:$16 sps:$4 sm:$0xff]  }
 0x1b9   :  { %v1035_v38 = vadd.f32 %v1034_v34, %v1033_v30  ;;  %v1047_v39 = vadd.f32 %v1046_v35, %v1045_v31 }
 0x1ba   :  { %v1041_v40 = vadd.f32 %v1040_v36, %v1039_v32  ;;  %v1053_v41 = vadd.f32 %v1052_v37, %v1051_v33  ;;  %v6267_v29 = vsub.s32 %v1112_v25, %v1114_v26  ;;  %v1095_v37 = vld [vmem:[#allocation8] sm:$0xf]  ;;  %v5518_v25 = vld [vmem:[#allocation6 + $0x6ac] ss:$16 sps:$4 sm:$0xff]  }
 0x1bb   :  { %v1055_v42 = vmul.f32 0.125, %v1035_v38  ;;  %v1057_v43 = vmul.f32 0.125, %v1047_v39  ;;  %v6271_v38 = vsub.s32 3, %v1114_v26 }
 0x1bc   :  { %v1056_v44 = vmul.f32 0.125, %v1041_v40  ;;  %v1058_v45 = vmul.f32 0.125, %v1053_v41  ;;  %v6274_v40 = vsub.s32 1, %v1114_v26  ;;  %v1159_v41 = vld [vmem:[#allocation9] sm:$0xf] }
 0x1bd   :  { %v6251_v46 = vsub.f32 %v941_v10, %v1055_v42  ;;  %v6253_v47 = vsub.f32 %v1023_v11, %v1057_v43  ;;  %v6276_v42 = vsub.s32 0, %v1114_v26  ;;  %v6278_v43 = vsub.s32 2, %v1114_v26  ;;  %v5513_v26 = vld [vmem:[#allocation6 + $0x6a0] ss:$16 sps:$4 sm:$0xff]  }
 0x1be   :  { %v6255_v48 = vsub.f32 %v943_v14, %v1056_v44  ;;  %v6257_v49 = vsub.f32 %v1025_v15, %v1058_v45  ;;  %v1168_v45 = vrot.slane %v1159_v41, %v6274_v40 }
 0x1bf   :  { %v1063_v50 = vmul.f32 %v6251_v46, %v6251_v46  ;;  %v1065_v51 = vmul.f32 %v6253_v47, %v6253_v47 }
 0x1c0   :  { %v1064_v52 = vmul.f32 %v6255_v48, %v6255_v48  ;;  %v1066_v53 = vmul.f32 %v6257_v49, %v6257_v49 }
 0x1c1   :  { %v1067_v54 = vrot.slane %v1063_v50, 4  ;;  %v1079_v55 = vrot.slane %v1065_v51, 4 }
 0x1c2   :  { %v1073_v56 = vrot.slane %v1064_v52, 4  ;;  %v1085_v57 = vrot.slane %v1066_v53, 4 }
 0x1c3   :  { %v1068_v58 = vadd.f32 %v1067_v54, %v1063_v50  ;;  %v1080_v59 = vadd.f32 %v1079_v55, %v1065_v51  ;;  %v1164_v50 = vrot.slane %v1159_v41, %v6276_v42  ;;  %v1176_v51 = vrot.slane %v1159_v41, %v6271_v38 }
 0x1c4   :  { %v1074_v60 = vadd.f32 %v1073_v56, %v1064_v52  ;;  %v1086_v61 = vadd.f32 %v1085_v57, %v1066_v53  ;;  %v1172_v52 = vrot.slane %v1159_v41, %v6278_v43  ;;  %v5531_v41 = vld [vmem:[#allocation6 + $0x700] ss:$16 sps:$4 sm:$0xff]  }
 0x1c5   :  { %v1069_v62 = vrot.slane %v1068_v58, 2  ;;  %v1081_v63 = vrot.slane %v1080_v59, 2 }
 0x1c6   :  { %v1075_v0 = vrot.slane %v1074_v60, 2  ;;  %v1087_v1 = vrot.slane %v1086_v61, 2 }
 0x1c7   :  { %v1070_v2 = vadd.f32 %v1069_v62, %v1068_v58  ;;  %v1082_v3 = vadd.f32 %v1081_v63, %v1080_v59 }
 0x1c8   :  { %v1076_v4 = vadd.f32 %v1075_v0, %v1074_v60  ;;  %v1088_v5 = vadd.f32 %v1087_v1, %v1086_v61 }
 0x1c9   :  { %v1071_v6 = vrot.slane %v1070_v2, 1  ;;  %v1083_v7 = vrot.slane %v1082_v3, 1 }
 0x1ca   :  { %v1077_v8 = vrot.slane %v1076_v4, 1  ;;  %v1089_v9 = vrot.slane %v1088_v5, 1 }
 0x1cb   :  { %v1072_v10 = vadd.f32 %v1071_v6, %v1070_v2  ;;  %v1084_v11 = vadd.f32 %v1083_v7, %v1082_v3 }
 0x1cc   :  { %v1078_v12 = vadd.f32 %v1077_v8, %v1076_v4  ;;  %v1090_v13 = vadd.f32 %v1089_v9, %v1088_v5  ;;  %v5483_v8 = vld [vmem:[#allocation6 + $0x600] ss:$16 sps:$4 sm:$0xff]  }
 0x1cd   :  { %v1091_v14 = vmul.f32 0.125, %v1072_v10  ;;  %v1093_v15 = vmul.f32 0.125, %v1084_v11  ;;  %v5489_v10 = vld [vmem:[#allocation6 + $0x620] ss:$16 sps:$4 sm:$0xff]   ;;  %v5492_v11 = vld [vmem:[#allocation6 + $0x628] ss:$16 sps:$4 sm:$0xff]  }
 0x1ce   :  { %v1092_v16 = vmul.f32 0.125, %v1078_v12  ;;  %v1094_v17 = vmul.f32 0.125, %v1090_v13  ;;  %v5497_v12 = vld [vmem:[#allocation6 + $0x644] ss:$16 sps:$4 sm:$0xff]   ;;  %v5500_v13 = vld [vmem:[#allocation6 + $0x64c] ss:$16 sps:$4 sm:$0xff]  }
 0x1cf   :  { %v1096_v18 = vadd.f32 1e-05, %v1091_v14  ;;  %v1098_v19 = vadd.f32 1e-05, %v1093_v15  ;;  %v5495_v14 = vld [vmem:[#allocation6 + $0x640] ss:$16 sps:$4 sm:$0xff]  }
 0x1d0   :  { %v1097_v20 = vadd.f32 1e-05, %v1092_v16  ;;  %v1099_v21 = vadd.f32 1e-05, %v1094_v17  ;;  %v5498_v15 = vld [vmem:[#allocation6 + $0x648] ss:$16 sps:$4 sm:$0xff]  }
 0x1d1   :  { %5963 = vrsqrt.f32 %v1096_v18  ;;  %v5503_v16 = vld [vmem:[#allocation6 + $0x664] ss:$16 sps:$4 sm:$0xff]   ;;  %v5506_v17 = vld [vmem:[#allocation6 + $0x66c] ss:$16 sps:$4 sm:$0xff]   ;;  %v5501_v18 = vld [vmem:[#allocation6 + $0x660] ss:$16 sps:$4 sm:$0xff]  }
 0x1d2   :  { %5965 = vrsqrt.f32 %v1098_v19  ;;  %v5504_v19 = vld [vmem:[#allocation6 + $0x668] ss:$16 sps:$4 sm:$0xff]  }
 0x1d3   :  { %5967 = vrsqrt.f32 %v1097_v20  ;;  %v5509_v20 = vld [vmem:[#allocation6 + $0x684] ss:$16 sps:$4 sm:$0xff]  }
 0x1d4   :  { %5969 = vrsqrt.f32 %v1099_v21  ;;  %v5512_v21 = vld [vmem:[#allocation6 + $0x68c] ss:$16 sps:$4 sm:$0xff]  }
 0x1db   :  { %v5964_v27 = vpop.eup %5963 }
 0x1dc   :  { %v5966_v28 = vpop.eup %5965 }
 0x1dd   :  { %v5968_v30 = vpop.eup %5967 }
 0x1de   :  { %v5970_v31 = vpop.eup %5969  ;;  %v1108_v32 = vcombine.low %v5964_v27, %v5968_v30  ;;  %v5516_v27 = vld [vmem:[#allocation6 + $0x6a8] ss:$16 sps:$4 sm:$0xff]   ;;  %v5524_v30 = vld [vmem:[#allocation6 + $0x6cc] ss:$16 sps:$4 sm:$0xff]  }
 0x1df   :  { %v1109_v33 = vcombine.low %v5966_v28, %v5970_v31  ;;  %v5521_v28 = vld [vmem:[#allocation6 + $0x6c4] ss:$16 sps:$4 sm:$0xff]   ;;  %v5519_v31 = vld [vmem:[#allocation6 + $0x6c0] ss:$16 sps:$4 sm:$0xff]  }
 0x1e0   :  { %v1116_v34 = vrot.slane %v1108_v32, %v6267_v29  ;;  %v5522_v32 = vld [vmem:[#allocation6 + $0x6c8] ss:$16 sps:$4 sm:$0xff]  }
 0x1e1   :  { %v1123_v35 = vrot.slane %v1109_v33, %v6267_v29  ;;  %v5527_v33 = vld [vmem:[#allocation6 + $0x6e4] ss:$16 sps:$4 sm:$0xff]  }
 0x1e3   :  { %v1124_v36 = vcombine.low %v1116_v34, %v1123_v35  ;;  %v5530_v34 = vld [vmem:[#allocation6 + $0x6ec] ss:$16 sps:$4 sm:$0xff]   ;;  %v5525_v35 = vld [vmem:[#allocation6 + $0x6e0] ss:$16 sps:$4 sm:$0xff]  }
 0x1e5   :  { %v1131_v39 = vrot.slane %v1124_v36, %v6267_v29  ;;  %v5528_v36 = vld [vmem:[#allocation6 + $0x6e8] ss:$16 sps:$4 sm:$0xff]  }
 0x1e7   :  { %v1133_v44 = vmul.f32 %v1131_v39, %v1095_v37  ;;  %v5533_v37 = vld [vmem:[#allocation6 + $0x704] ss:$16 sps:$4 sm:$0xff]   ;;  %v5536_v39 = vld [vmem:[#allocation6 + $0x70c] ss:$16 sps:$4 sm:$0xff]  }
 0x1e9   :  { %v1150_v53 = vrot.slane %v1133_v44, %v6271_v38  ;;  %v1142_v54 = vrot.slane %v1133_v44, %v6274_v40  ;;  %v1138_v55 = vrot.slane %v1133_v44, %v6276_v42  ;;  %v1146_v56 = vrot.slane %v1133_v44, %v6278_v43  ;;  %v5534_v44 = vld [vmem:[#allocation6 + $0x708] ss:$16 sps:$4 sm:$0xff]  }
 0x1eb   :  { %v1158_v57 = vmul.f32 %v1150_v53, %v6257_v49  ;;  %v1156_v58 = vmul.f32 %v1142_v54, %v6255_v48  ;;  %v1155_v59 = vmul.f32 %v1138_v55, %v6251_v46  ;;  %v1157_v60 = vmul.f32 %v1146_v56, %v6253_v47  ;;  %v5486_v49 = vld [vmem:[#allocation6 + $0x608] ss:$16 sps:$4 sm:$0xff]   ;;  %v5491_v46 = vld [vmem:[#allocation6 + $0x624] ss:$16 sps:$4 sm:$0xff]   ;;  %v5494_v48 = vld [vmem:[#allocation6 + $0x62c] ss:$16 sps:$4 sm:$0xff]  }
 0x1ec   :  { %v5545_v53 = vld [vmem:[#allocation6 + $0x744] ss:$16 sps:$4 sm:$0xff]   ;;  %v5548_v54 = vld [vmem:[#allocation6 + $0x74c] ss:$16 sps:$4 sm:$0xff]   ;;  %v5543_v55 = vld [vmem:[#allocation6 + $0x740] ss:$16 sps:$4 sm:$0xff]  }
 0x1ed   :  { %v1182_v61 = vadd.f32 %v1168_v45, %v1156_v58  ;;  %v1181_v62 = vadd.f32 %v1164_v50, %v1155_v59  ;;  %v1184_v63 = vadd.f32 %v1176_v51, %v1158_v57  ;;  %v6292_v0 = vadd.f32 %v1172_v52, %v1157_v60  ;;  %v5539_v45 = vld [vmem:[#allocation6 + $0x724] ss:$16 sps:$4 sm:$0xff]   ;;  %v5542_v50 = vld [vmem:[#allocation6 + $0x72c] ss:$16 sps:$4 sm:$0xff]   ;;  %v5537_v51 = vld [vmem:[#allocation6 + $0x720] ss:$16 sps:$4 sm:$0xff]  }
 0x1ee   :  { %v5540_v52 = vld [vmem:[#allocation6 + $0x728] ss:$16 sps:$4 sm:$0xff]   ;;  %v5551_v57 = vld [vmem:[#allocation6 + $0x764] ss:$16 sps:$4 sm:$0xff]   ;;  %v5554_v58 = vld [vmem:[#allocation6 + $0x76c] ss:$16 sps:$4 sm:$0xff]  }
 0x1ef   :  { %v1186_v1 = vmul.f32 0.2, %v1182_v61  ;;  %v1185_v2 = vmul.f32 0.2, %v1181_v62  ;;  %v1188_v3 = vmul.f32 0.2, %v1184_v63 }
 0x1f0   :  { %v5546_v56 = vld [vmem:[#allocation6 + $0x748] ss:$16 sps:$4 sm:$0xff]   ;;  %v5549_v59 = vld [vmem:[#allocation6 + $0x760] ss:$16 sps:$4 sm:$0xff]  }
 0x1f1   :  { %v1190_v4 = vmax.f32 %v1182_v61, %v1186_v1  ;;  %v1189_v5 = vmax.f32 %v1181_v62, %v1185_v2  ;;  %v1192_v6 = vmax.f32 %v1184_v63, %v1188_v3  ;;  %v5552_v60 = vld [vmem:[#allocation6 + $0x768] ss:$16 sps:$4 sm:$0xff]   ;;  %v5557_v61 = vld [vmem:[#allocation6 + $0x784] ss:$16 sps:$4 sm:$0xff]   ;;  %v5560_v62 = vld [vmem:[#allocation6 + $0x78c] ss:$16 sps:$4 sm:$0xff]  }
 0x1f2   :  { %v5555_v63 = vld [vmem:[#allocation6 + $0x780] ss:$16 sps:$4 sm:$0xff]   ;;  %v5558_v1 = vld [vmem:[#allocation6 + $0x788] ss:$16 sps:$4 sm:$0xff]   ;;  %v5563_v2 = vld [vmem:[#allocation6 + $0x7a4] ss:$16 sps:$4 sm:$0xff]  }
 0x1f3   :  { %v1194_v7 = vpack.c.bf16 %v1190_v4, %v1190_v4  ;;  %v1193_v9 = vpack.c.bf16 %v1189_v5, %v1189_v5  ;;  %v1196_v47 = vpack.c.bf16 %v1192_v6, %v1192_v6  ;;  %v5566_v3 = vld [vmem:[#allocation6 + $0x7ac] ss:$16 sps:$4 sm:$0xff]   ;;  %v5561_v4 = vld [vmem:[#allocation6 + $0x7a0] ss:$16 sps:$4 sm:$0xff]   ;;  %v5564_v5 = vld [vmem:[#allocation6 + $0x7a8] ss:$16 sps:$4 sm:$0xff]  }
 0x1f4   :  { %v5569_v6 = vld [vmem:[#allocation6 + $0x7c4] ss:$16 sps:$4 sm:$0xff]  }
 0x1f5   :  { %1998 = vmatprep.mubr.bf16.mxu0 %v1194_v7  ;;  %2080 = vmatprep.mubr.bf16.mxu1 %v1194_v7  ;;  %v5572_v7 = vld [vmem:[#allocation6 + $0x7cc] ss:$16 sps:$4 sm:$0xff]  }
 0x1f6   :  { %1999 = vmatmul.mubr.bf16.vlgmr.msra.gmra.mrb[4].mxu0 %v1193_v9  ;;  %2081 = vmatmul.mubr.bf16.vlgmr.msra.gmra.mrb[4].mxu1 %v1193_v9  ;;  %v5575_v9 = vld [vmem:[#allocation6 + $0x7e4] ss:$16 sps:$4 sm:$0xff]  }
 0x1f7   :  { %2008 = vmatpush1.bf16.msra.mxu0 %v5483_v8  ;;  %2090 = vmatpush1.bf16.msra.mxu1 %v5486_v49  ;;  %v5567_v8 = vld [vmem:[#allocation6 + $0x7c0] ss:$16 sps:$4 sm:$0xff]   ;;  %v5570_v49 = vld [vmem:[#allocation6 + $0x7c8] ss:$16 sps:$4 sm:$0xff]  }
 0x1f8   :  { %2039 = vmatprep.mubr.bf16.mxu0 %v1196_v47  ;;  %2121 = vmatprep.mubr.bf16.mxu1 %v1196_v47  ;;  %v5573_v47 = vld [vmem:[#allocation6 + $0x7e0] ss:$16 sps:$4 sm:$0xff]  }
 0x1f9   :  { %2009 = vmatprep.subr.bf16.mxu0 %v5491_v46  ;;  %2091 = vmatprep.subr.bf16.mxu1 %v5494_v48  ;;  %v5578_v46 = vld [vmem:[#allocation6 + $0x7ec] ss:$16 sps:$4 sm:$0xff]   ;;  %v1187_v48 = vmul.f32 0.2, %v6292_v0 }
 0x1fb   :  { %2010 = vmatpush1.bf16.msra.mxu0 %v5489_v10  ;;  %2092 = vmatpush1.bf16.msra.mxu1 %v5492_v11  ;;  %v5576_v10 = vld [vmem:[#allocation6 + $0x7e8] ss:$16 sps:$4 sm:$0xff]   ;;  %v1191_v11 = vmax.f32 %v6292_v0, %v1187_v48  ;;  %v5593_v0 = vld [vmem:[#allocation6 + $0x844] ss:$16 sps:$4 sm:$0xff]   ;;  %v5657_v48 = vld [vmem:[#allocation6 + $0x9a0] ss:$16 sps:$4 sm:$0xff]  }
 0x1fc   :  { %2011 = vmatprep.subr.bf16.mxu0 %v5497_v12  ;;  %2093 = vmatprep.subr.bf16.mxu1 %v5500_v13  ;;  %v5581_v13 = vld [vmem:[#allocation6 + $0x804] ss:$16 sps:$4 sm:$0xff]  }
 0x1fd   :  { %v1195_v12 = vpack.c.bf16 %v1191_v11, %v1191_v11  ;;  %v5665_v11 = vld [vmem:[#allocation6 + $0x9c4] ss:$16 sps:$4 sm:$0xff]  }
 0x1ff   :  { %2012 = vmatpush1.bf16.msra.mxu0 %v5495_v14  ;;  %2094 = vmatpush1.bf16.msra.mxu1 %v5498_v15  ;;  %v5584_v14 = vld [vmem:[#allocation6 + $0x80c] ss:$16 sps:$4 sm:$0xff]   ;;  %v5579_v15 = vld [vmem:[#allocation6 + $0x800] ss:$16 sps:$4 sm:$0xff]  }
 0x200   :  { %2013 = vmatprep.subr.bf16.mxu0 %v5503_v16  ;;  %2095 = vmatprep.subr.bf16.mxu1 %v5506_v17  ;;  %v5582_v16 = vld [vmem:[#allocation6 + $0x808] ss:$16 sps:$4 sm:$0xff]   ;;  %v5587_v17 = vld [vmem:[#allocation6 + $0x824] ss:$16 sps:$4 sm:$0xff]  }
 0x203   :  { %2014 = vmatpush1.bf16.msra.mxu0 %v5501_v18  ;;  %2096 = vmatpush1.bf16.msra.mxu1 %v5504_v19  ;;  %v5590_v18 = vld [vmem:[#allocation6 + $0x82c] ss:$16 sps:$4 sm:$0xff]   ;;  %v5585_v19 = vld [vmem:[#allocation6 + $0x820] ss:$16 sps:$4 sm:$0xff]  }
 0x204   :  { %2015 = vmatprep.subr.bf16.mxu0 %v5509_v20  ;;  %2097 = vmatprep.subr.bf16.mxu1 %v5512_v21  ;;  %v5588_v20 = vld [vmem:[#allocation6 + $0x828] ss:$16 sps:$4 sm:$0xff]   ;;  %v5596_v21 = vld [vmem:[#allocation6 + $0x84c] ss:$16 sps:$4 sm:$0xff]  }
 0x207   :  { %2016 = vmatpush1.bf16.msra.mxu0 %v5507_v22  ;;  %2098 = vmatpush1.bf16.msra.mxu1 %v5510_v23  ;;  %v5591_v22 = vld [vmem:[#allocation6 + $0x840] ss:$16 sps:$4 sm:$0xff]   ;;  %v5594_v23 = vld [vmem:[#allocation6 + $0x848] ss:$16 sps:$4 sm:$0xff]  }
 0x208   :  { %2017 = vmatprep.subr.bf16.mxu0 %v5515_v24  ;;  %2099 = vmatprep.subr.bf16.mxu1 %v5518_v25  ;;  %v5599_v24 = vld [vmem:[#allocation6 + $0x864] ss:$16 sps:$4 sm:$0xff]   ;;  %v5602_v25 = vld [vmem:[#allocation6 + $0x86c] ss:$16 sps:$4 sm:$0xff]  }
 0x20b   :  { %2018 = vmatpush1.bf16.msra.mxu0 %v5513_v26  ;;  %2100 = vmatpush1.bf16.msra.mxu1 %v5516_v27  ;;  %v5597_v26 = vld [vmem:[#allocation6 + $0x860] ss:$16 sps:$4 sm:$0xff]   ;;  %v5600_v27 = vld [vmem:[#allocation6 + $0x868] ss:$16 sps:$4 sm:$0xff]  }
 0x20c   :  { %2019 = vmatprep.subr.bf16.mxu0 %v5521_v28  ;;  %2101 = vmatprep.subr.bf16.mxu1 %v5524_v30  ;;  %v5605_v28 = vld [vmem:[#allocation6 + $0x884] ss:$16 sps:$4 sm:$0xff]   ;;  %v5608_v30 = vld [vmem:[#allocation6 + $0x88c] ss:$16 sps:$4 sm:$0xff]  }
 0x20f   :  { %2020 = vmatpush1.bf16.msra.mxu0 %v5519_v31  ;;  %2102 = vmatpush1.bf16.msra.mxu1 %v5522_v32  ;;  %v5603_v31 = vld [vmem:[#allocation6 + $0x880] ss:$16 sps:$4 sm:$0xff]   ;;  %v5606_v32 = vld [vmem:[#allocation6 + $0x888] ss:$16 sps:$4 sm:$0xff]  }
 0x210   :  { %2021 = vmatprep.subr.bf16.mxu0 %v5527_v33  ;;  %2103 = vmatprep.subr.bf16.mxu1 %v5530_v34  ;;  %v5611_v33 = vld [vmem:[#allocation6 + $0x8a4] ss:$16 sps:$4 sm:$0xff]   ;;  %v5614_v34 = vld [vmem:[#allocation6 + $0x8ac] ss:$16 sps:$4 sm:$0xff]  }
 0x213   :  { %2022 = vmatpush1.bf16.msra.mxu0 %v5525_v35  ;;  %2104 = vmatpush1.bf16.msra.mxu1 %v5528_v36  ;;  %v5609_v35 = vld [vmem:[#allocation6 + $0x8a0] ss:$16 sps:$4 sm:$0xff]   ;;  %v5612_v36 = vld [vmem:[#allocation6 + $0x8a8] ss:$16 sps:$4 sm:$0xff]  }
 0x214   :  { %2023 = vmatprep.subr.bf16.mxu0 %v5533_v37  ;;  %2105 = vmatprep.subr.bf16.mxu1 %v5536_v39  ;;  %v5617_v37 = vld [vmem:[#allocation6 + $0x8c4] ss:$16 sps:$4 sm:$0xff]   ;;  %v5620_v39 = vld [vmem:[#allocation6 + $0x8cc] ss:$16 sps:$4 sm:$0xff]  }
 0x217   :  { %2024 = vmatpush1.bf16.msra.mxu0 %v5531_v41  ;;  %2106 = vmatpush1.bf16.msra.mxu1 %v5534_v44  ;;  %v5615_v41 = vld [vmem:[#allocation6 + $0x8c0] ss:$16 sps:$4 sm:$0xff]   ;;  %v5618_v44 = vld [vmem:[#allocation6 + $0x8c8] ss:$16 sps:$4 sm:$0xff]  }
 0x218   :  { %2025 = vmatprep.subr.bf16.mxu0 %v5539_v45  ;;  %2107 = vmatprep.subr.bf16.mxu1 %v5542_v50  ;;  %v5623_v45 = vld [vmem:[#allocation6 + $0x8e4] ss:$16 sps:$4 sm:$0xff]   ;;  %v5626_v50 = vld [vmem:[#allocation6 + $0x8ec] ss:$16 sps:$4 sm:$0xff]  }
 0x21b   :  { %2026 = vmatpush1.bf16.msra.mxu0 %v5537_v51  ;;  %2108 = vmatpush1.bf16.msra.mxu1 %v5540_v52  ;;  %v5621_v51 = vld [vmem:[#allocation6 + $0x8e0] ss:$16 sps:$4 sm:$0xff]   ;;  %v5624_v52 = vld [vmem:[#allocation6 + $0x8e8] ss:$16 sps:$4 sm:$0xff]  }
 0x21c   :  { %2027 = vmatprep.subr.bf16.mxu0 %v5545_v53  ;;  %2109 = vmatprep.subr.bf16.mxu1 %v5548_v54  ;;  %v5629_v53 = vld [vmem:[#allocation6 + $0x904] ss:$16 sps:$4 sm:$0xff]   ;;  %v5632_v54 = vld [vmem:[#allocation6 + $0x90c] ss:$16 sps:$4 sm:$0xff]  }
 0x21f   :  { %2028 = vmatpush1.bf16.msra.mxu0 %v5543_v55  ;;  %2110 = vmatpush1.bf16.msra.mxu1 %v5546_v56  ;;  %v5627_v55 = vld [vmem:[#allocation6 + $0x900] ss:$16 sps:$4 sm:$0xff]   ;;  %v5630_v56 = vld [vmem:[#allocation6 + $0x908] ss:$16 sps:$4 sm:$0xff]  }
 0x220   :  { %2029 = vmatprep.subr.bf16.mxu0 %v5551_v57  ;;  %2111 = vmatprep.subr.bf16.mxu1 %v5554_v58  ;;  %v5635_v57 = vld [vmem:[#allocation6 + $0x924] ss:$16 sps:$4 sm:$0xff]   ;;  %v5638_v58 = vld [vmem:[#allocation6 + $0x92c] ss:$16 sps:$4 sm:$0xff]  }
 0x223   :  { %2030 = vmatpush1.bf16.msra.mxu0 %v5549_v59  ;;  %2112 = vmatpush1.bf16.msra.mxu1 %v5552_v60  ;;  %v5633_v59 = vld [vmem:[#allocation6 + $0x920] ss:$16 sps:$4 sm:$0xff]   ;;  %v5636_v60 = vld [vmem:[#allocation6 + $0x928] ss:$16 sps:$4 sm:$0xff]  }
 0x224   :  { %2031 = vmatprep.subr.bf16.mxu0 %v5557_v61  ;;  %2113 = vmatprep.subr.bf16.mxu1 %v5560_v62  ;;  %v5641_v61 = vld [vmem:[#allocation6 + $0x944] ss:$16 sps:$4 sm:$0xff]   ;;  %v5644_v62 = vld [vmem:[#allocation6 + $0x94c] ss:$16 sps:$4 sm:$0xff]  }
 0x227   :  { %2032 = vmatpush1.bf16.msra.mxu0 %v5555_v63  ;;  %2114 = vmatpush1.bf16.msra.mxu1 %v5558_v1  ;;  %v5639_v63 = vld [vmem:[#allocation6 + $0x940] ss:$16 sps:$4 sm:$0xff]   ;;  %v5642_v1 = vld [vmem:[#allocation6 + $0x948] ss:$16 sps:$4 sm:$0xff]  }
 0x228   :  { %2033 = vmatprep.subr.bf16.mxu0 %v5563_v2  ;;  %2115 = vmatprep.subr.bf16.mxu1 %v5566_v3  ;;  %v5647_v2 = vld [vmem:[#allocation6 + $0x964] ss:$16 sps:$4 sm:$0xff]   ;;  %v5650_v3 = vld [vmem:[#allocation6 + $0x96c] ss:$16 sps:$4 sm:$0xff]  }
 0x22b   :  { %2034 = vmatpush1.bf16.msra.mxu0 %v5561_v4  ;;  %2116 = vmatpush1.bf16.msra.mxu1 %v5564_v5  ;;  %v5645_v4 = vld [vmem:[#allocation6 + $0x960] ss:$16 sps:$4 sm:$0xff]   ;;  %v5648_v5 = vld [vmem:[#allocation6 + $0x968] ss:$16 sps:$4 sm:$0xff]  }
 0x22c   :  { %2035 = vmatprep.subr.bf16.mxu0 %v5569_v6  ;;  %2117 = vmatprep.subr.bf16.mxu1 %v5572_v7  ;;  %v5653_v6 = vld [vmem:[#allocation6 + $0x984] ss:$16 sps:$4 sm:$0xff]   ;;  %v5656_v7 = vld [vmem:[#allocation6 + $0x98c] ss:$16 sps:$4 sm:$0xff]  }
 0x22f   :  { %2036 = vmatpush1.bf16.msra.mxu0 %v5567_v8  ;;  %2118 = vmatpush1.bf16.msra.mxu1 %v5570_v49  ;;  %v5651_v8 = vld [vmem:[#allocation6 + $0x980] ss:$16 sps:$4 sm:$0xff]   ;;  %v5654_v49 = vld [vmem:[#allocation6 + $0x988] ss:$16 sps:$4 sm:$0xff]  }
 0x230   :  { %2037 = vmatprep.subr.bf16.mxu0 %v5575_v9  ;;  %2119 = vmatprep.subr.bf16.mxu1 %v5578_v46  ;;  %v5659_v9 = vld [vmem:[#allocation6 + $0x9a4] ss:$16 sps:$4 sm:$0xff]   ;;  %v5662_v46 = vld [vmem:[#allocation6 + $0x9ac] ss:$16 sps:$4 sm:$0xff]  }
 0x233   :  { %2038 = vmatpush1.bf16.msra.mxu0 %v5573_v47  ;;  %2120 = vmatpush1.bf16.msra.mxu1 %v5576_v10  ;;  %v5660_v47 = vld [vmem:[#allocation6 + $0x9a8] ss:$16 sps:$4 sm:$0xff]   ;;  %v5663_v10 = vld [vmem:[#allocation6 + $0x9c0] ss:$16 sps:$4 sm:$0xff]  }
 0x234   :  { %3067 = vmatprep.subr.bf16.mxu0 %v5581_v13  ;;  %3149 = vmatprep.subr.bf16.mxu1 %v5584_v14  ;;  %v5668_v13 = vld [vmem:[#allocation6 + $0x9cc] ss:$16 sps:$4 sm:$0xff]   ;;  %v5671_v14 = vld [vmem:[#allocation6 + $0x9e4] ss:$16 sps:$4 sm:$0xff]  }
 0x236   :  { %2040 = vmatmul.mubr.bf16.vlgmr.msra.gmra.mrb[4].mxu0 %v1195_v12  ;;  %2122 = vmatmul.mubr.bf16.vlgmr.msra.gmra.mrb[4].mxu1 %v1195_v12  ;;  %v5666_v12 = vld [vmem:[#allocation6 + $0x9c8] ss:$16 sps:$4 sm:$0xff]  }
 0x237   :  { %3068 = vmatpush1.bf16.msra.mxu0 %v5579_v15  ;;  %3150 = vmatpush1.bf16.msra.mxu1 %v5582_v16  ;;  %v5674_v15 = vld [vmem:[#allocation6 + $0x9ec] ss:$16 sps:$4 sm:$0xff]   ;;  %v5669_v16 = vld [vmem:[#allocation6 + $0x9e0] ss:$16 sps:$4 sm:$0xff]  }
 0x238   :  { %3069 = vmatprep.subr.bf16.mxu0 %v5587_v17  ;;  %3151 = vmatprep.subr.bf16.mxu1 %v5590_v18  ;;  %v5672_v17 = vld [vmem:[#allocation6 + $0x9e8] ss:$16 sps:$4 sm:$0xff]   ;;  %v5677_v18 = vld [vmem:[#allocation6 + $0xa04] ss:$16 sps:$4 sm:$0xff]  }
 0x23b   :  { %3070 = vmatpush1.bf16.msra.mxu0 %v5585_v19  ;;  %3152 = vmatpush1.bf16.msra.mxu1 %v5588_v20  ;;  %v5680_v19 = vld [vmem:[#allocation6 + $0xa0c] ss:$16 sps:$4 sm:$0xff]  }
 0x23c   :  { %3071 = vmatprep.subr.bf16.mxu0 %v5593_v0  ;;  %3153 = vmatprep.subr.bf16.mxu1 %v5596_v21 }
 0x23f   :  { %3072 = vmatpush1.bf16.msra.mxu0 %v5591_v22  ;;  %3154 = vmatpush1.bf16.msra.mxu1 %v5594_v23 }
 0x240   :  { %3073 = vmatprep.subr.bf16.mxu0 %v5599_v24  ;;  %3155 = vmatprep.subr.bf16.mxu1 %v5602_v25 }
 0x243   :  { %3074 = vmatpush1.bf16.msra.mxu0 %v5597_v26  ;;  %3156 = vmatpush1.bf16.msra.mxu1 %v5600_v27 }
 0x244   :  { %3075 = vmatprep.subr.bf16.mxu0 %v5605_v28  ;;  %3157 = vmatprep.subr.bf16.mxu1 %v5608_v30 }
 0x247   :  { %3076 = vmatpush1.bf16.msra.mxu0 %v5603_v31  ;;  %3158 = vmatpush1.bf16.msra.mxu1 %v5606_v32 }
 0x248   :  { %3077 = vmatprep.subr.bf16.mxu0 %v5611_v33  ;;  %3159 = vmatprep.subr.bf16.mxu1 %v5614_v34 }
 0x24b   :  { %3078 = vmatpush1.bf16.msra.mxu0 %v5609_v35  ;;  %3160 = vmatpush1.bf16.msra.mxu1 %v5612_v36 }
 0x24c   :  { %3079 = vmatprep.subr.bf16.mxu0 %v5617_v37  ;;  %3161 = vmatprep.subr.bf16.mxu1 %v5620_v39 }
 0x24f   :  { %3080 = vmatpush1.bf16.msra.mxu0 %v5615_v41  ;;  %3162 = vmatpush1.bf16.msra.mxu1 %v5618_v44 }
 0x250   :  { %3081 = vmatprep.subr.bf16.mxu0 %v5623_v45  ;;  %3163 = vmatprep.subr.bf16.mxu1 %v5626_v50 }
 0x253   :  { %3082 = vmatpush1.bf16.msra.mxu0 %v5621_v51  ;;  %3164 = vmatpush1.bf16.msra.mxu1 %v5624_v52 }
 0x254   :  { %3083 = vmatprep.subr.bf16.mxu0 %v5629_v53  ;;  %3165 = vmatprep.subr.bf16.mxu1 %v5632_v54 }
 0x257   :  { %3084 = vmatpush1.bf16.msra.mxu0 %v5627_v55  ;;  %3166 = vmatpush1.bf16.msra.mxu1 %v5630_v56 }
 0x258   :  { %3085 = vmatprep.subr.bf16.mxu0 %v5635_v57  ;;  %3167 = vmatprep.subr.bf16.mxu1 %v5638_v58 }
 0x25b   :  { %3086 = vmatpush1.bf16.msra.mxu0 %v5633_v59  ;;  %3168 = vmatpush1.bf16.msra.mxu1 %v5636_v60 }
 0x25c   :  { %3087 = vmatprep.subr.bf16.mxu0 %v5641_v61  ;;  %3169 = vmatprep.subr.bf16.mxu1 %v5644_v62 }
 0x25f   :  { %3088 = vmatpush1.bf16.msra.mxu0 %v5639_v63  ;;  %3170 = vmatpush1.bf16.msra.mxu1 %v5642_v1 }
 0x260   :  { %3089 = vmatprep.subr.bf16.mxu0 %v5647_v2  ;;  %3171 = vmatprep.subr.bf16.mxu1 %v5650_v3 }
 0x263   :  { %3090 = vmatpush1.bf16.msra.mxu0 %v5645_v4  ;;  %3172 = vmatpush1.bf16.msra.mxu1 %v5648_v5 }
 0x264   :  { %3091 = vmatprep.subr.bf16.mxu0 %v5653_v6  ;;  %3173 = vmatprep.subr.bf16.mxu1 %v5656_v7 }
 0x267   :  { %3092 = vmatpush1.bf16.msra.mxu0 %v5651_v8  ;;  %3174 = vmatpush1.bf16.msra.mxu1 %v5654_v49 }
 0x268   :  { %3093 = vmatprep.subr.bf16.mxu0 %v5659_v9  ;;  %3175 = vmatprep.subr.bf16.mxu1 %v5662_v46 }
 0x26b   :  { %3094 = vmatpush1.bf16.msra.mxu0 %v5657_v48  ;;  %3176 = vmatpush1.bf16.msra.mxu1 %v5660_v47 }
 0x26c   :  { %3095 = vmatprep.subr.bf16.mxu0 %v5665_v11  ;;  %3177 = vmatprep.subr.bf16.mxu1 %v5668_v13 }
 0x26f   :  { %3096 = vmatpush1.bf16.msra.mxu0 %v5663_v10  ;;  %3178 = vmatpush1.bf16.msra.mxu1 %v5666_v12 }
 0x270   :  { %3097 = vmatprep.subr.bf16.mxu0 %v5671_v14  ;;  %3179 = vmatprep.subr.bf16.mxu1 %v5674_v15 }
 0x273   :  { %3098 = vmatpush1.bf16.msra.mxu0 %v5669_v16  ;;  %3180 = vmatpush1.bf16.msra.mxu1 %v5672_v17 }
 0x274   :  { %3108 = vmatprep.subr.bf16.mxu0 %v5677_v18  ;;  %3190 = vmatprep.subr.bf16.mxu1 %v5680_v19 }
 0x309   :  { %v2041_v20 = vpop.f32.mrb[4].mxu0  ;;  %v2123_v0 = vpop.f32.mrb[4].mxu1 }
 0x30a   :  { %v2130_v21 = vrot.slane %v2041_v20, 4  ;;  %v2142_v22 = vrot.slane %v2123_v0, 4  ;;  %v2043_v23 = vpop.f32.mrb[5].mxu0  ;;  %v2125_v24 = vpop.f32.mrb[5].mxu1 }
 0x30b   :  { %v2136_v25 = vrot.slane %v2043_v23, 4  ;;  %v2148_v26 = vrot.slane %v2125_v24, 4  ;;  %v2045_v27 = vpop.f32.mrb[6].mxu0  ;;  %v2127_v28 = vpop.f32.mrb[6].mxu1 }
 0x30c   :  { %v2131_v30 = vadd.f32 %v2130_v21, %v2041_v20  ;;  %v2143_v31 = vadd.f32 %v2142_v22, %v2123_v0  ;;  %v2046_v32 = vpop.f32.mrb[7].mxu0  ;;  %v2128_v33 = vpop.f32.mrb[7].mxu1 }
 0x30d   :  { %v2137_v34 = vadd.f32 %v2136_v25, %v2043_v23  ;;  %v2149_v35 = vadd.f32 %v2148_v26, %v2125_v24 }
 0x30e   :  { %v2132_v36 = vrot.slane %v2131_v30, 2  ;;  %v2144_v37 = vrot.slane %v2143_v31, 2 }
 0x30f   :  { %v2138_v39 = vrot.slane %v2137_v34, 2  ;;  %v2150_v41 = vrot.slane %v2149_v35, 2 }
 0x310   :  { %v2133_v44 = vadd.f32 %v2132_v36, %v2131_v30  ;;  %v2145_v45 = vadd.f32 %v2144_v37, %v2143_v31 }
 0x311   :  { %v2139_v50 = vadd.f32 %v2138_v39, %v2137_v34  ;;  %v2151_v51 = vadd.f32 %v2150_v41, %v2149_v35 }
 0x312   :  { %v2134_v52 = vrot.slane %v2133_v44, 1  ;;  %v2146_v53 = vrot.slane %v2145_v45, 1 }
 0x313   :  { %v2140_v54 = vrot.slane %v2139_v50, 1  ;;  %v2152_v55 = vrot.slane %v2151_v51, 1 }
 0x314   :  { %v2135_v56 = vadd.f32 %v2134_v52, %v2133_v44  ;;  %v2147_v57 = vadd.f32 %v2146_v53, %v2145_v45 }
 0x315   :  { %v2141_v58 = vadd.f32 %v2140_v54, %v2139_v50  ;;  %v2153_v59 = vadd.f32 %v2152_v55, %v2151_v51  ;;  %v2195_v54 = vld [vmem:[#allocation8 + $0x4] sm:$0xf] }
 0x316   :  { %v2154_v60 = vmul.f32 0.125, %v2135_v56  ;;  %v2156_v61 = vmul.f32 0.125, %v2147_v57  ;;  %v2260_v56 = vld [vmem:[#allocation9 + $0x4] sm:$0xf] }
 0x317   :  { %v2155_v62 = vmul.f32 0.125, %v2141_v58  ;;  %v2157_v63 = vmul.f32 0.125, %v2153_v59  ;;  %v2269_v58 = vrot.slane %v2260_v56, %v6274_v40  ;;  %v2265_v59 = vrot.slane %v2260_v56, %v6276_v42 }
 0x318   :  { %v6296_v1 = vsub.f32 %v2041_v20, %v2154_v60  ;;  %v6298_v2 = vsub.f32 %v2123_v0, %v2156_v61  ;;  %v2277_v60 = vrot.slane %v2260_v56, %v6271_v38  ;;  %v2273_v61 = vrot.slane %v2260_v56, %v6278_v43  ;;  %v5723_v56 = vld [vmem:[#allocation6 + $0xb00] ss:$16 sps:$4 sm:$0xff]  }
 0x319   :  { %v6300_v3 = vsub.f32 %v2043_v23, %v2155_v62  ;;  %v2161_v4 = vsub.f32 %v2125_v24, %v2157_v63 }
 0x31a   :  { %v2162_v5 = vmul.f32 %v6296_v1, %v6296_v1  ;;  %v2164_v6 = vmul.f32 %v6298_v2, %v6298_v2 }
 0x31b   :  { %v2163_v7 = vmul.f32 %v6300_v3, %v6300_v3  ;;  %v2165_v8 = vmul.f32 %v2161_v4, %v2161_v4 }
 0x31c   :  { %v2166_v49 = vrot.slane %v2162_v5, 4  ;;  %v2178_v9 = vrot.slane %v2164_v6, 4 }
 0x31d   :  { %v2172_v46 = vrot.slane %v2163_v7, 4  ;;  %v2184_v48 = vrot.slane %v2165_v8, 4 }
 0x31e   :  { %v2167_v47 = vadd.f32 %v2166_v49, %v2162_v5  ;;  %v2179_v10 = vadd.f32 %v2178_v9, %v2164_v6 }
 0x31f   :  { %v2173_v11 = vadd.f32 %v2172_v46, %v2163_v7  ;;  %v2185_v12 = vadd.f32 %v2184_v48, %v2165_v8 }
 0x320   :  { %v2168_v13 = vrot.slane %v2167_v47, 2  ;;  %v2180_v14 = vrot.slane %v2179_v10, 2 }
 0x321   :  { %v2174_v15 = vrot.slane %v2173_v11, 2  ;;  %v2186_v16 = vrot.slane %v2185_v12, 2 }
 0x322   :  { %v2169_v17 = vadd.f32 %v2168_v13, %v2167_v47  ;;  %v2181_v18 = vadd.f32 %v2180_v14, %v2179_v10 }
 0x323   :  { %v2175_v19 = vadd.f32 %v2174_v15, %v2173_v11  ;;  %v2187_v20 = vadd.f32 %v2186_v16, %v2185_v12 }
 0x324   :  { %v2170_v0 = vrot.slane %v2169_v17, 1  ;;  %v2182_v21 = vrot.slane %v2181_v18, 1 }
 0x325   :  { %v2176_v22 = vrot.slane %v2175_v19, 1  ;;  %v2188_v23 = vrot.slane %v2187_v20, 1 }
 0x326   :  { %v2171_v24 = vadd.f32 %v2170_v0, %v2169_v17  ;;  %v2183_v25 = vadd.f32 %v2182_v21, %v2181_v18  ;;  %v5675_v18 = vld [vmem:[#allocation6 + $0xa00] ss:$16 sps:$4 sm:$0xff]   ;;  %v5684_v0 = vld [vmem:[#allocation6 + $0xa28] ss:$16 sps:$4 sm:$0xff]   ;;  %v5689_v21 = vld [vmem:[#allocation6 + $0xa44] ss:$16 sps:$4 sm:$0xff]  }
 0x327   :  { %v2177_v26 = vadd.f32 %v2176_v22, %v2175_v19  ;;  %v2189_v27 = vadd.f32 %v2188_v23, %v2187_v20  ;;  %v5681_v20 = vld [vmem:[#allocation6 + $0xa20] ss:$16 sps:$4 sm:$0xff]   ;;  %v5692_v22 = vld [vmem:[#allocation6 + $0xa4c] ss:$16 sps:$4 sm:$0xff]  }
 0x328   :  { %v2190_v28 = vmul.f32 0.125, %v2171_v24  ;;  %v2192_v30 = vmul.f32 0.125, %v2183_v25  ;;  %v5687_v23 = vld [vmem:[#allocation6 + $0xa40] ss:$16 sps:$4 sm:$0xff]   ;;  %v5690_v24 = vld [vmem:[#allocation6 + $0xa48] ss:$16 sps:$4 sm:$0xff]  }
 0x329   :  { %v2191_v31 = vmul.f32 0.125, %v2177_v26  ;;  %v2193_v32 = vmul.f32 0.125, %v2189_v27  ;;  %v5695_v25 = vld [vmem:[#allocation6 + $0xa64] ss:$16 sps:$4 sm:$0xff]   ;;  %v5698_v26 = vld [vmem:[#allocation6 + $0xa6c] ss:$16 sps:$4 sm:$0xff]  }
 0x32a   :  { %v2196_v33 = vadd.f32 1e-05, %v2190_v28  ;;  %v2198_v34 = vadd.f32 1e-05, %v2192_v30  ;;  %v5693_v27 = vld [vmem:[#allocation6 + $0xa60] ss:$16 sps:$4 sm:$0xff]  }
 0x32b   :  { %v2197_v35 = vadd.f32 1e-05, %v2191_v31  ;;  %v2199_v36 = vadd.f32 1e-05, %v2193_v32  ;;  %v5696_v28 = vld [vmem:[#allocation6 + $0xa68] ss:$16 sps:$4 sm:$0xff]  }
 0x32c   :  { %5971 = vrsqrt.f32 %v2196_v33  ;;  %v5701_v30 = vld [vmem:[#allocation6 + $0xa84] ss:$16 sps:$4 sm:$0xff]   ;;  %v5704_v31 = vld [vmem:[#allocation6 + $0xa8c] ss:$16 sps:$4 sm:$0xff]   ;;  %v5699_v32 = vld [vmem:[#allocation6 + $0xa80] ss:$16 sps:$4 sm:$0xff]  }
 0x32d   :  { %5973 = vrsqrt.f32 %v2198_v34  ;;  %v5702_v33 = vld [vmem:[#allocation6 + $0xa88] ss:$16 sps:$4 sm:$0xff]   ;;  %v5707_v34 = vld [vmem:[#allocation6 + $0xaa4] ss:$16 sps:$4 sm:$0xff]  }
 0x32e   :  { %5975 = vrsqrt.f32 %v2197_v35  ;;  %v5710_v35 = vld [vmem:[#allocation6 + $0xaac] ss:$16 sps:$4 sm:$0xff]  }
 0x32f   :  { %5977 = vrsqrt.f32 %v2199_v36  ;;  %v5705_v36 = vld [vmem:[#allocation6 + $0xaa0] ss:$16 sps:$4 sm:$0xff]  }
 0x336   :  { %v5972_v37 = vpop.eup %5971 }
 0x337   :  { %v5974_v39 = vpop.eup %5973 }
 0x338   :  { %v5976_v41 = vpop.eup %5975 }
 0x339   :  { %v5978_v44 = vpop.eup %5977  ;;  %v2208_v45 = vcombine.low %v5972_v37, %v5976_v41  ;;  %v5708_v37 = vld [vmem:[#allocation6 + $0xaa8] ss:$16 sps:$4 sm:$0xff]   ;;  %v5716_v41 = vld [vmem:[#allocation6 + $0xacc] ss:$16 sps:$4 sm:$0xff]  }
 0x33a   :  { %v2209_v50 = vcombine.low %v5974_v39, %v5978_v44  ;;  %v5713_v39 = vld [vmem:[#allocation6 + $0xac4] ss:$16 sps:$4 sm:$0xff]   ;;  %v5711_v44 = vld [vmem:[#allocation6 + $0xac0] ss:$16 sps:$4 sm:$0xff]  }
 0x33b   :  { %v2216_v51 = vrot.slane %v2208_v45, %v6267_v29  ;;  %v5714_v45 = vld [vmem:[#allocation6 + $0xac8] ss:$16 sps:$4 sm:$0xff]  }
 0x33c   :  { %v2223_v52 = vrot.slane %v2209_v50, %v6267_v29  ;;  %v5719_v50 = vld [vmem:[#allocation6 + $0xae4] ss:$16 sps:$4 sm:$0xff]  }
 0x33e   :  { %v2224_v53 = vcombine.low %v2216_v51, %v2223_v52  ;;  %v5722_v51 = vld [vmem:[#allocation6 + $0xaec] ss:$16 sps:$4 sm:$0xff]   ;;  %v5717_v52 = vld [vmem:[#allocation6 + $0xae0] ss:$16 sps:$4 sm:$0xff]  }
 0x340   :  { %v2231_v55 = vrot.slane %v2224_v53, %v6267_v29  ;;  %v5720_v53 = vld [vmem:[#allocation6 + $0xae8] ss:$16 sps:$4 sm:$0xff]  }
 0x342   :  { %v2233_v57 = vmul.f32 %v2231_v55, %v2195_v54  ;;  %v5725_v54 = vld [vmem:[#allocation6 + $0xb04] ss:$16 sps:$4 sm:$0xff]   ;;  %v5728_v55 = vld [vmem:[#allocation6 + $0xb0c] ss:$16 sps:$4 sm:$0xff]  }
 0x344   :  { %v2250_v62 = vrot.slane %v2233_v57, %v6271_v38  ;;  %v2242_v63 = vrot.slane %v2233_v57, %v6274_v40  ;;  %v2238_v5 = vrot.slane %v2233_v57, %v6276_v42  ;;  %v2246_v6 = vrot.slane %v2233_v57, %v6278_v43  ;;  %v5726_v57 = vld [vmem:[#allocation6 + $0xb08] ss:$16 sps:$4 sm:$0xff]  }
 0x346   :  { %v2258_v7 = vmul.f32 %v2250_v62, %v2161_v4  ;;  %v2256_v8 = vmul.f32 %v2242_v63, %v6300_v3  ;;  %v2255_v49 = vmul.f32 %v2238_v5, %v6296_v1  ;;  %v2257_v9 = vmul.f32 %v2246_v6, %v6298_v2  ;;  %v5678_v4 = vld [vmem:[#allocation6 + $0xa08] ss:$16 sps:$4 sm:$0xff]   ;;  %v5683_v1 = vld [vmem:[#allocation6 + $0xa24] ss:$16 sps:$4 sm:$0xff]   ;;  %v5686_v3 = vld [vmem:[#allocation6 + $0xa2c] ss:$16 sps:$4 sm:$0xff]  }
 0x347   :  { %v5737_v62 = vld [vmem:[#allocation6 + $0xb44] ss:$16 sps:$4 sm:$0xff]   ;;  %v5740_v63 = vld [vmem:[#allocation6 + $0xb4c] ss:$16 sps:$4 sm:$0xff]   ;;  %v5735_v5 = vld [vmem:[#allocation6 + $0xb40] ss:$16 sps:$4 sm:$0xff]  }
 0x348   :  { %v2283_v46 = vadd.f32 %v2269_v58, %v2256_v8  ;;  %v2282_v48 = vadd.f32 %v2265_v59, %v2255_v49  ;;  %v2285_v47 = vadd.f32 %v2277_v60, %v2258_v7  ;;  %v6322_v10 = vadd.f32 %v2273_v61, %v2257_v9  ;;  %v5731_v58 = vld [vmem:[#allocation6 + $0xb24] ss:$16 sps:$4 sm:$0xff]   ;;  %v5734_v59 = vld [vmem:[#allocation6 + $0xb2c] ss:$16 sps:$4 sm:$0xff]   ;;  %v5729_v60 = vld [vmem:[#allocation6 + $0xb20] ss:$16 sps:$4 sm:$0xff]  }
 0x349   :  { %v5732_v61 = vld [vmem:[#allocation6 + $0xb28] ss:$16 sps:$4 sm:$0xff]   ;;  %v5743_v7 = vld [vmem:[#allocation6 + $0xb64] ss:$16 sps:$4 sm:$0xff]   ;;  %v5746_v8 = vld [vmem:[#allocation6 + $0xb6c] ss:$16 sps:$4 sm:$0xff]  }
 0x34a   :  { %v2287_v11 = vmul.f32 0.2, %v2283_v46  ;;  %v2286_v12 = vmul.f32 0.2, %v2282_v48  ;;  %v2289_v13 = vmul.f32 0.2, %v2285_v47 }
 0x34b   :  { %v5738_v6 = vld [vmem:[#allocation6 + $0xb48] ss:$16 sps:$4 sm:$0xff]   ;;  %v5741_v49 = vld [vmem:[#allocation6 + $0xb60] ss:$16 sps:$4 sm:$0xff]  }
 0x34c   :  { %v2291_v14 = vmax.f32 %v2283_v46, %v2287_v11  ;;  %v2290_v15 = vmax.f32 %v2282_v48, %v2286_v12  ;;  %v2293_v16 = vmax.f32 %v2285_v47, %v2289_v13  ;;  %v5744_v9 = vld [vmem:[#allocation6 + $0xb68] ss:$16 sps:$4 sm:$0xff]   ;;  %v5749_v46 = vld [vmem:[#allocation6 + $0xb84] ss:$16 sps:$4 sm:$0xff]   ;;  %v5752_v48 = vld [vmem:[#allocation6 + $0xb8c] ss:$16 sps:$4 sm:$0xff]  }
 0x34d   :  { %v5747_v47 = vld [vmem:[#allocation6 + $0xb80] ss:$16 sps:$4 sm:$0xff]   ;;  %v5750_v11 = vld [vmem:[#allocation6 + $0xb88] ss:$16 sps:$4 sm:$0xff]   ;;  %v5755_v12 = vld [vmem:[#allocation6 + $0xba4] ss:$16 sps:$4 sm:$0xff]  }
 0x34e   :  { %v2295_v17 = vpack.c.bf16 %v2291_v14, %v2291_v14  ;;  %v2294_v19 = vpack.c.bf16 %v2290_v15, %v2290_v15  ;;  %v2297_v2 = vpack.c.bf16 %v2293_v16, %v2293_v16  ;;  %v5758_v13 = vld [vmem:[#allocation6 + $0xbac] ss:$16 sps:$4 sm:$0xff]   ;;  %v5753_v14 = vld [vmem:[#allocation6 + $0xba0] ss:$16 sps:$4 sm:$0xff]   ;;  %v5756_v15 = vld [vmem:[#allocation6 + $0xba8] ss:$16 sps:$4 sm:$0xff]  }
 0x34f   :  { %v5761_v16 = vld [vmem:[#allocation6 + $0xbc4] ss:$16 sps:$4 sm:$0xff]  }
 0x350   :  { %3099 = vmatprep.mubr.bf16.mxu0 %v2295_v17  ;;  %3181 = vmatprep.mubr.bf16.mxu1 %v2295_v17  ;;  %v5764_v17 = vld [vmem:[#allocation6 + $0xbcc] ss:$16 sps:$4 sm:$0xff]  }
 0x351   :  { %3100 = vmatmul.mubr.bf16.vlgmr.msra.gmra.mrb[8].mxu0 %v2294_v19  ;;  %3182 = vmatmul.mubr.bf16.vlgmr.msra.gmra.mrb[8].mxu1 %v2294_v19  ;;  %v5767_v19 = vld [vmem:[#allocation6 + $0xbe4] ss:$16 sps:$4 sm:$0xff]  }
 0x352   :  { %3109 = vmatpush1.bf16.msra.mxu0 %v5675_v18  ;;  %3191 = vmatpush1.bf16.msra.mxu1 %v5678_v4  ;;  %v5759_v18 = vld [vmem:[#allocation6 + $0xbc0] ss:$16 sps:$4 sm:$0xff]   ;;  %v5762_v4 = vld [vmem:[#allocation6 + $0xbc8] ss:$16 sps:$4 sm:$0xff]  }
 0x353   :  { %3140 = vmatprep.mubr.bf16.mxu0 %v2297_v2  ;;  %3222 = vmatprep.mubr.bf16.mxu1 %v2297_v2  ;;  %v5765_v2 = vld [vmem:[#allocation6 + $0xbe0] ss:$16 sps:$4 sm:$0xff]  }
 0x354   :  { %3110 = vmatprep.subr.bf16.mxu0 %v5683_v1  ;;  %3192 = vmatprep.subr.bf16.mxu1 %v5686_v3  ;;  %v5770_v1 = vld [vmem:[#allocation6 + $0xbec] ss:$16 sps:$4 sm:$0xff]   ;;  %v2288_v3 = vmul.f32 0.2, %v6322_v10 }
 0x356   :  { %3111 = vmatpush1.bf16.msra.mxu0 %v5681_v20  ;;  %3193 = vmatpush1.bf16.msra.mxu1 %v5684_v0  ;;  %v5768_v20 = vld [vmem:[#allocation6 + $0xbe8] ss:$16 sps:$4 sm:$0xff]   ;;  %v2292_v0 = vmax.f32 %v6322_v10, %v2288_v3  ;;  %v5785_v10 = vld [vmem:[#allocation6 + $0xc44] ss:$16 sps:$4 sm:$0xff]   ;;  %v5849_v3 = vld [vmem:[#allocation6 + $0xda0] ss:$16 sps:$4 sm:$0xff]  }
 0x357   :  { %3112 = vmatprep.subr.bf16.mxu0 %v5689_v21  ;;  %3194 = vmatprep.subr.bf16.mxu1 %v5692_v22  ;;  %v5773_v22 = vld [vmem:[#allocation6 + $0xc04] ss:$16 sps:$4 sm:$0xff]  }
 0x358   :  { %v2296_v21 = vpack.c.bf16 %v2292_v0, %v2292_v0  ;;  %v5857_v0 = vld [vmem:[#allocation6 + $0xdc4] ss:$16 sps:$4 sm:$0xff]  }
 0x35a   :  { %3113 = vmatpush1.bf16.msra.mxu0 %v5687_v23  ;;  %3195 = vmatpush1.bf16.msra.mxu1 %v5690_v24  ;;  %v5776_v23 = vld [vmem:[#allocation6 + $0xc0c] ss:$16 sps:$4 sm:$0xff]   ;;  %v5771_v24 = vld [vmem:[#allocation6 + $0xc00] ss:$16 sps:$4 sm:$0xff]  }
 0x35b   :  { %3114 = vmatprep.subr.bf16.mxu0 %v5695_v25  ;;  %3196 = vmatprep.subr.bf16.mxu1 %v5698_v26  ;;  %v5774_v25 = vld [vmem:[#allocation6 + $0xc08] ss:$16 sps:$4 sm:$0xff]   ;;  %v5779_v26 = vld [vmem:[#allocation6 + $0xc24] ss:$16 sps:$4 sm:$0xff]  }
 0x35e   :  { %3115 = vmatpush1.bf16.msra.mxu0 %v5693_v27  ;;  %3197 = vmatpush1.bf16.msra.mxu1 %v5696_v28  ;;  %v5782_v27 = vld [vmem:[#allocation6 + $0xc2c] ss:$16 sps:$4 sm:$0xff]   ;;  %v5777_v28 = vld [vmem:[#allocation6 + $0xc20] ss:$16 sps:$4 sm:$0xff]  }
 0x35f   :  { %3116 = vmatprep.subr.bf16.mxu0 %v5701_v30  ;;  %3198 = vmatprep.subr.bf16.mxu1 %v5704_v31  ;;  %v5780_v30 = vld [vmem:[#allocation6 + $0xc28] ss:$16 sps:$4 sm:$0xff]   ;;  %v5788_v31 = vld [vmem:[#allocation6 + $0xc4c] ss:$16 sps:$4 sm:$0xff]  }
 0x362   :  { %3117 = vmatpush1.bf16.msra.mxu0 %v5699_v32  ;;  %3199 = vmatpush1.bf16.msra.mxu1 %v5702_v33  ;;  %v5783_v32 = vld [vmem:[#allocation6 + $0xc40] ss:$16 sps:$4 sm:$0xff]   ;;  %v5786_v33 = vld [vmem:[#allocation6 + $0xc48] ss:$16 sps:$4 sm:$0xff]  }
 0x363   :  { %3118 = vmatprep.subr.bf16.mxu0 %v5707_v34  ;;  %3200 = vmatprep.subr.bf16.mxu1 %v5710_v35  ;;  %v5791_v34 = vld [vmem:[#allocation6 + $0xc64] ss:$16 sps:$4 sm:$0xff]   ;;  %v5794_v35 = vld [vmem:[#allocation6 + $0xc6c] ss:$16 sps:$4 sm:$0xff]  }
 0x366   :  { %3119 = vmatpush1.bf16.msra.mxu0 %v5705_v36  ;;  %3201 = vmatpush1.bf16.msra.mxu1 %v5708_v37  ;;  %v5789_v36 = vld [vmem:[#allocation6 + $0xc60] ss:$16 sps:$4 sm:$0xff]   ;;  %v5792_v37 = vld [vmem:[#allocation6 + $0xc68] ss:$16 sps:$4 sm:$0xff]  }
 0x367   :  { %3120 = vmatprep.subr.bf16.mxu0 %v5713_v39  ;;  %3202 = vmatprep.subr.bf16.mxu1 %v5716_v41  ;;  %v5797_v39 = vld [vmem:[#allocation6 + $0xc84] ss:$16 sps:$4 sm:$0xff]   ;;  %v5800_v41 = vld [vmem:[#allocation6 + $0xc8c] ss:$16 sps:$4 sm:$0xff]  }
 0x36a   :  { %3121 = vmatpush1.bf16.msra.mxu0 %v5711_v44  ;;  %3203 = vmatpush1.bf16.msra.mxu1 %v5714_v45  ;;  %v5795_v44 = vld [vmem:[#allocation6 + $0xc80] ss:$16 sps:$4 sm:$0xff]   ;;  %v5798_v45 = vld [vmem:[#allocation6 + $0xc88] ss:$16 sps:$4 sm:$0xff]  }
 0x36b   :  { %3122 = vmatprep.subr.bf16.mxu0 %v5719_v50  ;;  %3204 = vmatprep.subr.bf16.mxu1 %v5722_v51  ;;  %v5803_v50 = vld [vmem:[#allocation6 + $0xca4] ss:$16 sps:$4 sm:$0xff]   ;;  %v5806_v51 = vld [vmem:[#allocation6 + $0xcac] ss:$16 sps:$4 sm:$0xff]  }
 0x36e   :  { %3123 = vmatpush1.bf16.msra.mxu0 %v5717_v52  ;;  %3205 = vmatpush1.bf16.msra.mxu1 %v5720_v53  ;;  %v5801_v52 = vld [vmem:[#allocation6 + $0xca0] ss:$16 sps:$4 sm:$0xff]   ;;  %v5804_v53 = vld [vmem:[#allocation6 + $0xca8] ss:$16 sps:$4 sm:$0xff]  }
 0x36f   :  { %3124 = vmatprep.subr.bf16.mxu0 %v5725_v54  ;;  %3206 = vmatprep.subr.bf16.mxu1 %v5728_v55  ;;  %v5809_v54 = vld [vmem:[#allocation6 + $0xcc4] ss:$16 sps:$4 sm:$0xff]   ;;  %v5812_v55 = vld [vmem:[#allocation6 + $0xccc] ss:$16 sps:$4 sm:$0xff]  }
 0x372   :  { %3125 = vmatpush1.bf16.msra.mxu0 %v5723_v56  ;;  %3207 = vmatpush1.bf16.msra.mxu1 %v5726_v57  ;;  %v5807_v56 = vld [vmem:[#allocation6 + $0xcc0] ss:$16 sps:$4 sm:$0xff]   ;;  %v5810_v57 = vld [vmem:[#allocation6 + $0xcc8] ss:$16 sps:$4 sm:$0xff]  }
 0x373   :  { %3126 = vmatprep.subr.bf16.mxu0 %v5731_v58  ;;  %3208 = vmatprep.subr.bf16.mxu1 %v5734_v59  ;;  %v5815_v58 = vld [vmem:[#allocation6 + $0xce4] ss:$16 sps:$4 sm:$0xff]   ;;  %v5818_v59 = vld [vmem:[#allocation6 + $0xcec] ss:$16 sps:$4 sm:$0xff]  }
 0x376   :  { %3127 = vmatpush1.bf16.msra.mxu0 %v5729_v60  ;;  %3209 = vmatpush1.bf16.msra.mxu1 %v5732_v61  ;;  %v5813_v60 = vld [vmem:[#allocation6 + $0xce0] ss:$16 sps:$4 sm:$0xff]   ;;  %v5816_v61 = vld [vmem:[#allocation6 + $0xce8] ss:$16 sps:$4 sm:$0xff]  }
 0x377   :  { %3128 = vmatprep.subr.bf16.mxu0 %v5737_v62  ;;  %3210 = vmatprep.subr.bf16.mxu1 %v5740_v63  ;;  %v5821_v62 = vld [vmem:[#allocation6 + $0xd04] ss:$16 sps:$4 sm:$0xff]   ;;  %v5824_v63 = vld [vmem:[#allocation6 + $0xd0c] ss:$16 sps:$4 sm:$0xff]  }
 0x37a   :  { %3129 = vmatpush1.bf16.msra.mxu0 %v5735_v5  ;;  %3211 = vmatpush1.bf16.msra.mxu1 %v5738_v6  ;;  %v5819_v5 = vld [vmem:[#allocation6 + $0xd00] ss:$16 sps:$4 sm:$0xff]   ;;  %v5822_v6 = vld [vmem:[#allocation6 + $0xd08] ss:$16 sps:$4 sm:$0xff]  }
 0x37b   :  { %3130 = vmatprep.subr.bf16.mxu0 %v5743_v7  ;;  %3212 = vmatprep.subr.bf16.mxu1 %v5746_v8  ;;  %v5827_v7 = vld [vmem:[#allocation6 + $0xd24] ss:$16 sps:$4 sm:$0xff]   ;;  %v5830_v8 = vld [vmem:[#allocation6 + $0xd2c] ss:$16 sps:$4 sm:$0xff]  }
 0x37e   :  { %3131 = vmatpush1.bf16.msra.mxu0 %v5741_v49  ;;  %3213 = vmatpush1.bf16.msra.mxu1 %v5744_v9  ;;  %v5825_v49 = vld [vmem:[#allocation6 + $0xd20] ss:$16 sps:$4 sm:$0xff]   ;;  %v5828_v9 = vld [vmem:[#allocation6 + $0xd28] ss:$16 sps:$4 sm:$0xff]  }
 0x37f   :  { %3132 = vmatprep.subr.bf16.mxu0 %v5749_v46  ;;  %3214 = vmatprep.subr.bf16.mxu1 %v5752_v48  ;;  %v5833_v46 = vld [vmem:[#allocation6 + $0xd44] ss:$16 sps:$4 sm:$0xff]   ;;  %v5836_v48 = vld [vmem:[#allocation6 + $0xd4c] ss:$16 sps:$4 sm:$0xff]  }
 0x382   :  { %3133 = vmatpush1.bf16.msra.mxu0 %v5747_v47  ;;  %3215 = vmatpush1.bf16.msra.mxu1 %v5750_v11  ;;  %v5831_v47 = vld [vmem:[#allocation6 + $0xd40] ss:$16 sps:$4 sm:$0xff]   ;;  %v5834_v11 = vld [vmem:[#allocation6 + $0xd48] ss:$16 sps:$4 sm:$0xff]  }
 0x383   :  { %3134 = vmatprep.subr.bf16.mxu0 %v5755_v12  ;;  %3216 = vmatprep.subr.bf16.mxu1 %v5758_v13  ;;  %v5839_v12 = vld [vmem:[#allocation6 + $0xd64] ss:$16 sps:$4 sm:$0xff]   ;;  %v5842_v13 = vld [vmem:[#allocation6 + $0xd6c] ss:$16 sps:$4 sm:$0xff]  }
 0x386   :  { %3135 = vmatpush1.bf16.msra.mxu0 %v5753_v14  ;;  %3217 = vmatpush1.bf16.msra.mxu1 %v5756_v15  ;;  %v5837_v14 = vld [vmem:[#allocation6 + $0xd60] ss:$16 sps:$4 sm:$0xff]   ;;  %v5840_v15 = vld [vmem:[#allocation6 + $0xd68] ss:$16 sps:$4 sm:$0xff]  }
 0x387   :  { %3136 = vmatprep.subr.bf16.mxu0 %v5761_v16  ;;  %3218 = vmatprep.subr.bf16.mxu1 %v5764_v17  ;;  %v5845_v16 = vld [vmem:[#allocation6 + $0xd84] ss:$16 sps:$4 sm:$0xff]   ;;  %v5848_v17 = vld [vmem:[#allocation6 + $0xd8c] ss:$16 sps:$4 sm:$0xff]  }
 0x38a   :  { %3137 = vmatpush1.bf16.msra.mxu0 %v5759_v18  ;;  %3219 = vmatpush1.bf16.msra.mxu1 %v5762_v4  ;;  %v5843_v18 = vld [vmem:[#allocation6 + $0xd80] ss:$16 sps:$4 sm:$0xff]   ;;  %v5846_v4 = vld [vmem:[#allocation6 + $0xd88] ss:$16 sps:$4 sm:$0xff]  }
 0x38b   :  { %3138 = vmatprep.subr.bf16.mxu0 %v5767_v19  ;;  %3220 = vmatprep.subr.bf16.mxu1 %v5770_v1  ;;  %v5851_v19 = vld [vmem:[#allocation6 + $0xda4] ss:$16 sps:$4 sm:$0xff]   ;;  %v5854_v1 = vld [vmem:[#allocation6 + $0xdac] ss:$16 sps:$4 sm:$0xff]  }
 0x38e   :  { %3139 = vmatpush1.bf16.msra.mxu0 %v5765_v2  ;;  %3221 = vmatpush1.bf16.msra.mxu1 %v5768_v20  ;;  %v5852_v2 = vld [vmem:[#allocation6 + $0xda8] ss:$16 sps:$4 sm:$0xff]   ;;  %v5855_v20 = vld [vmem:[#allocation6 + $0xdc0] ss:$16 sps:$4 sm:$0xff]  }
 0x38f   :  { %4168 = vmatprep.subr.bf16.mxu0 %v5773_v22  ;;  %4250 = vmatprep.subr.bf16.mxu1 %v5776_v23  ;;  %v5860_v22 = vld [vmem:[#allocation6 + $0xdcc] ss:$16 sps:$4 sm:$0xff]   ;;  %v5863_v23 = vld [vmem:[#allocation6 + $0xde4] ss:$16 sps:$4 sm:$0xff]  }
 0x391   :  { %3141 = vmatmul.mubr.bf16.vlgmr.msra.gmra.mrb[8].mxu0 %v2296_v21  ;;  %3223 = vmatmul.mubr.bf16.vlgmr.msra.gmra.mrb[8].mxu1 %v2296_v21  ;;  %v5858_v21 = vld [vmem:[#allocation6 + $0xdc8] ss:$16 sps:$4 sm:$0xff]  }
 0x392   :  { %4169 = vmatpush1.bf16.msra.mxu0 %v5771_v24  ;;  %4251 = vmatpush1.bf16.msra.mxu1 %v5774_v25  ;;  %v5866_v24 = vld [vmem:[#allocation6 + $0xdec] ss:$16 sps:$4 sm:$0xff]   ;;  %v5861_v25 = vld [vmem:[#allocation6 + $0xde0] ss:$16 sps:$4 sm:$0xff]  }
 0x393   :  { %4170 = vmatprep.subr.bf16.mxu0 %v5779_v26  ;;  %4252 = vmatprep.subr.bf16.mxu1 %v5782_v27  ;;  %v5864_v26 = vld [vmem:[#allocation6 + $0xde8] ss:$16 sps:$4 sm:$0xff]   ;;  %v5869_v27 = vld [vmem:[#allocation6 + $0xe04] ss:$16 sps:$4 sm:$0xff]  }
 0x396   :  { %4171 = vmatpush1.bf16.msra.mxu0 %v5777_v28  ;;  %4253 = vmatpush1.bf16.msra.mxu1 %v5780_v30  ;;  %v5872_v28 = vld [vmem:[#allocation6 + $0xe0c] ss:$16 sps:$4 sm:$0xff]  }
 0x397   :  { %4172 = vmatprep.subr.bf16.mxu0 %v5785_v10  ;;  %4254 = vmatprep.subr.bf16.mxu1 %v5788_v31 }
 0x39a   :  { %4173 = vmatpush1.bf16.msra.mxu0 %v5783_v32  ;;  %4255 = vmatpush1.bf16.msra.mxu1 %v5786_v33 }
 0x39b   :  { %4174 = vmatprep.subr.bf16.mxu0 %v5791_v34  ;;  %4256 = vmatprep.subr.bf16.mxu1 %v5794_v35 }
 0x39e   :  { %4175 = vmatpush1.bf16.msra.mxu0 %v5789_v36  ;;  %4257 = vmatpush1.bf16.msra.mxu1 %v5792_v37 }
 0x39f   :  { %4176 = vmatprep.subr.bf16.mxu0 %v5797_v39  ;;  %4258 = vmatprep.subr.bf16.mxu1 %v5800_v41 }
 0x3a2   :  { %4177 = vmatpush1.bf16.msra.mxu0 %v5795_v44  ;;  %4259 = vmatpush1.bf16.msra.mxu1 %v5798_v45 }
 0x3a3   :  { %4178 = vmatprep.subr.bf16.mxu0 %v5803_v50  ;;  %4260 = vmatprep.subr.bf16.mxu1 %v5806_v51 }
 0x3a6   :  { %4179 = vmatpush1.bf16.msra.mxu0 %v5801_v52  ;;  %4261 = vmatpush1.bf16.msra.mxu1 %v5804_v53 }
 0x3a7   :  { %4180 = vmatprep.subr.bf16.mxu0 %v5809_v54  ;;  %4262 = vmatprep.subr.bf16.mxu1 %v5812_v55 }
 0x3aa   :  { %4181 = vmatpush1.bf16.msra.mxu0 %v5807_v56  ;;  %4263 = vmatpush1.bf16.msra.mxu1 %v5810_v57 }
 0x3ab   :  { %4182 = vmatprep.subr.bf16.mxu0 %v5815_v58  ;;  %4264 = vmatprep.subr.bf16.mxu1 %v5818_v59 }
 0x3ae   :  { %4183 = vmatpush1.bf16.msra.mxu0 %v5813_v60  ;;  %4265 = vmatpush1.bf16.msra.mxu1 %v5816_v61 }
 0x3af   :  { %4184 = vmatprep.subr.bf16.mxu0 %v5821_v62  ;;  %4266 = vmatprep.subr.bf16.mxu1 %v5824_v63 }
 0x3b2   :  { %4185 = vmatpush1.bf16.msra.mxu0 %v5819_v5  ;;  %4267 = vmatpush1.bf16.msra.mxu1 %v5822_v6 }
 0x3b3   :  { %4186 = vmatprep.subr.bf16.mxu0 %v5827_v7  ;;  %4268 = vmatprep.subr.bf16.mxu1 %v5830_v8 }
 0x3b6   :  { %4187 = vmatpush1.bf16.msra.mxu0 %v5825_v49  ;;  %4269 = vmatpush1.bf16.msra.mxu1 %v5828_v9 }
 0x3b7   :  { %4188 = vmatprep.subr.bf16.mxu0 %v5833_v46  ;;  %4270 = vmatprep.subr.bf16.mxu1 %v5836_v48 }
 0x3ba   :  { %4189 = vmatpush1.bf16.msra.mxu0 %v5831_v47  ;;  %4271 = vmatpush1.bf16.msra.mxu1 %v5834_v11 }
 0x3bb   :  { %4190 = vmatprep.subr.bf16.mxu0 %v5839_v12  ;;  %4272 = vmatprep.subr.bf16.mxu1 %v5842_v13 }
 0x3be   :  { %4191 = vmatpush1.bf16.msra.mxu0 %v5837_v14  ;;  %4273 = vmatpush1.bf16.msra.mxu1 %v5840_v15 }
 0x3bf   :  { %4192 = vmatprep.subr.bf16.mxu0 %v5845_v16  ;;  %4274 = vmatprep.subr.bf16.mxu1 %v5848_v17 }
 0x3c2   :  { %4193 = vmatpush1.bf16.msra.mxu0 %v5843_v18  ;;  %4275 = vmatpush1.bf16.msra.mxu1 %v5846_v4 }
 0x3c3   :  { %4194 = vmatprep.subr.bf16.mxu0 %v5851_v19  ;;  %4276 = vmatprep.subr.bf16.mxu1 %v5854_v1 }
 0x3c6   :  { %4195 = vmatpush1.bf16.msra.mxu0 %v5849_v3  ;;  %4277 = vmatpush1.bf16.msra.mxu1 %v5852_v2 }
 0x3c7   :  { %4196 = vmatprep.subr.bf16.mxu0 %v5857_v0  ;;  %4278 = vmatprep.subr.bf16.mxu1 %v5860_v22 }
 0x3ca   :  { %4197 = vmatpush1.bf16.msra.mxu0 %v5855_v20  ;;  %4279 = vmatpush1.bf16.msra.mxu1 %v5858_v21 }
 0x3cb   :  { %4198 = vmatprep.subr.bf16.mxu0 %v5863_v23  ;;  %4280 = vmatprep.subr.bf16.mxu1 %v5866_v24 }
 0x3ce   :  { %4199 = vmatpush1.bf16.msra.mxu0 %v5861_v25  ;;  %4281 = vmatpush1.bf16.msra.mxu1 %v5864_v26 }
 0x3cf   :  { %4209 = vmatprep.subr.bf16.mxu0 %v5869_v27  ;;  %4291 = vmatprep.subr.bf16.mxu1 %v5872_v28 }
 0x464   :  { %v3142_v30 = vpop.f32.mrb[8].mxu0  ;;  %v3224_v10 = vpop.f32.mrb[8].mxu1 }
 0x465   :  { %v3231_v31 = vrot.slane %v3142_v30, 4  ;;  %v3243_v32 = vrot.slane %v3224_v10, 4  ;;  %v3144_v33 = vpop.f32.mrb[9].mxu0  ;;  %v3226_v34 = vpop.f32.mrb[9].mxu1 }
 0x466   :  { %v3237_v35 = vrot.slane %v3144_v33, 4  ;;  %v3249_v36 = vrot.slane %v3226_v34, 4  ;;  %v3146_v37 = vpop.f32.mrb[10].mxu0  ;;  %v3228_v39 = vpop.f32.mrb[10].mxu1 }
 0x467   :  { %v3232_v41 = vadd.f32 %v3231_v31, %v3142_v30  ;;  %v3244_v44 = vadd.f32 %v3243_v32, %v3224_v10  ;;  %v3147_v45 = vpop.f32.mrb[11].mxu0  ;;  %v3229_v50 = vpop.f32.mrb[11].mxu1 }
 0x468   :  { %v3238_v51 = vadd.f32 %v3237_v35, %v3144_v33  ;;  %v3250_v52 = vadd.f32 %v3249_v36, %v3226_v34 }
 0x469   :  { %v3233_v53 = vrot.slane %v3232_v41, 2  ;;  %v3245_v54 = vrot.slane %v3244_v44, 2 }
 0x46a   :  { %v3239_v55 = vrot.slane %v3238_v51, 2  ;;  %v3251_v56 = vrot.slane %v3250_v52, 2 }
 0x46b   :  { %v3234_v57 = vadd.f32 %v3233_v53, %v3232_v41  ;;  %v3246_v58 = vadd.f32 %v3245_v54, %v3244_v44 }
 0x46c   :  { %v3240_v59 = vadd.f32 %v3239_v55, %v3238_v51  ;;  %v3252_v60 = vadd.f32 %v3251_v56, %v3250_v52 }
 0x46d   :  { %v3235_v61 = vrot.slane %v3234_v57, 1  ;;  %v3247_v62 = vrot.slane %v3246_v58, 1 }
 0x46e   :  { %v3241_v63 = vrot.slane %v3240_v59, 1  ;;  %v3253_v5 = vrot.slane %v3252_v60, 1 }
 0x46f   :  { %v3236_v6 = vadd.f32 %v3235_v61, %v3234_v57  ;;  %v3248_v7 = vadd.f32 %v3247_v62, %v3246_v58 }
 0x470   :  { %v3242_v8 = vadd.f32 %v3241_v63, %v3240_v59  ;;  %v3254_v49 = vadd.f32 %v3253_v5, %v3252_v60  ;;  %v3296_v63 = vld [vmem:[#allocation8 + $0x8] sm:$0xf] }
 0x471   :  { %v3255_v9 = vmul.f32 0.125, %v3236_v6  ;;  %v3257_v46 = vmul.f32 0.125, %v3248_v7  ;;  %v3361_v6 = vld [vmem:[#allocation9 + $0x8] sm:$0xf] }
 0x472   :  { %v3256_v48 = vmul.f32 0.125, %v3242_v8  ;;  %v3258_v47 = vmul.f32 0.125, %v3254_v49  ;;  %v3370_v8 = vrot.slane %v3361_v6, %v6274_v40  ;;  %v3366_v49 = vrot.slane %v3361_v6, %v6276_v42 }
 0x473   :  { %v6326_v11 = vsub.f32 %v3142_v30, %v3255_v9  ;;  %v6328_v12 = vsub.f32 %v3224_v10, %v3257_v46  ;;  %v3378_v9 = vrot.slane %v3361_v6, %v6271_v38  ;;  %v3374_v46 = vrot.slane %v3361_v6, %v6278_v43  ;;  %v5915_v6 = vld [vmem:[#allocation6 + $0xf00] ss:$16 sps:$4 sm:$0xff]  }
 0x474   :  { %v6330_v13 = vsub.f32 %v3144_v33, %v3256_v48  ;;  %v3262_v14 = vsub.f32 %v3226_v34, %v3258_v47 }
 0x475   :  { %v3263_v15 = vmul.f32 %v6326_v11, %v6326_v11  ;;  %v3265_v16 = vmul.f32 %v6328_v12, %v6328_v12 }
 0x476   :  { %v3264_v17 = vmul.f32 %v6330_v13, %v6330_v13  ;;  %v3266_v18 = vmul.f32 %v3262_v14, %v3262_v14 }
 0x477   :  { %v3267_v4 = vrot.slane %v3263_v15, 4  ;;  %v3279_v19 = vrot.slane %v3265_v16, 4 }
 0x478   :  { %v3273_v1 = vrot.slane %v3264_v17, 4  ;;  %v3285_v3 = vrot.slane %v3266_v18, 4 }
 0x479   :  { %v3268_v2 = vadd.f32 %v3267_v4, %v3263_v15  ;;  %v3280_v20 = vadd.f32 %v3279_v19, %v3265_v16 }
 0x47a   :  { %v3274_v0 = vadd.f32 %v3273_v1, %v3264_v17  ;;  %v3286_v21 = vadd.f32 %v3285_v3, %v3266_v18 }
 0x47b   :  { %v3269_v22 = vrot.slane %v3268_v2, 2  ;;  %v3281_v23 = vrot.slane %v3280_v20, 2 }
 0x47c   :  { %v3275_v24 = vrot.slane %v3274_v0, 2  ;;  %v3287_v25 = vrot.slane %v3286_v21, 2 }
 0x47d   :  { %v3270_v26 = vadd.f32 %v3269_v22, %v3268_v2  ;;  %v3282_v27 = vadd.f32 %v3281_v23, %v3280_v20 }
 0x47e   :  { %v3276_v28 = vadd.f32 %v3275_v24, %v3274_v0  ;;  %v3288_v30 = vadd.f32 %v3287_v25, %v3286_v21 }
 0x47f   :  { %v3271_v10 = vrot.slane %v3270_v26, 1  ;;  %v3283_v31 = vrot.slane %v3282_v27, 1 }
 0x480   :  { %v3277_v32 = vrot.slane %v3276_v28, 1  ;;  %v3289_v33 = vrot.slane %v3288_v30, 1 }
 0x481   :  { %v3272_v34 = vadd.f32 %v3271_v10, %v3270_v26  ;;  %v3284_v35 = vadd.f32 %v3283_v31, %v3282_v27  ;;  %v5867_v27 = vld [vmem:[#allocation6 + $0xe00] ss:$16 sps:$4 sm:$0xff]   ;;  %v5876_v10 = vld [vmem:[#allocation6 + $0xe28] ss:$16 sps:$4 sm:$0xff]   ;;  %v5881_v31 = vld [vmem:[#allocation6 + $0xe44] ss:$16 sps:$4 sm:$0xff]  }
 0x482   :  { %v3278_v36 = vadd.f32 %v3277_v32, %v3276_v28  ;;  %v3290_v37 = vadd.f32 %v3289_v33, %v3288_v30  ;;  %v5873_v30 = vld [vmem:[#allocation6 + $0xe20] ss:$16 sps:$4 sm:$0xff]   ;;  %v5884_v32 = vld [vmem:[#allocation6 + $0xe4c] ss:$16 sps:$4 sm:$0xff]  }
 0x483   :  { %v3291_v39 = vmul.f32 0.125, %v3272_v34  ;;  %v3293_v41 = vmul.f32 0.125, %v3284_v35  ;;  %v5879_v33 = vld [vmem:[#allocation6 + $0xe40] ss:$16 sps:$4 sm:$0xff]   ;;  %v5882_v34 = vld [vmem:[#allocation6 + $0xe48] ss:$16 sps:$4 sm:$0xff]  }
 0x484   :  { %v3292_v44 = vmul.f32 0.125, %v3278_v36  ;;  %v3294_v45 = vmul.f32 0.125, %v3290_v37  ;;  %v5887_v35 = vld [vmem:[#allocation6 + $0xe64] ss:$16 sps:$4 sm:$0xff]   ;;  %v5890_v36 = vld [vmem:[#allocation6 + $0xe6c] ss:$16 sps:$4 sm:$0xff]  }
 0x485   :  { %v3297_v50 = vadd.f32 1e-05, %v3291_v39  ;;  %v3299_v51 = vadd.f32 1e-05, %v3293_v41  ;;  %v5885_v37 = vld [vmem:[#allocation6 + $0xe60] ss:$16 sps:$4 sm:$0xff]  }
 0x486   :  { %v3298_v52 = vadd.f32 1e-05, %v3292_v44  ;;  %v3300_v53 = vadd.f32 1e-05, %v3294_v45  ;;  %v5888_v39 = vld [vmem:[#allocation6 + $0xe68] ss:$16 sps:$4 sm:$0xff]  }
 0x487   :  { %5979 = vrsqrt.f32 %v3297_v50  ;;  %v5893_v41 = vld [vmem:[#allocation6 + $0xe84] ss:$16 sps:$4 sm:$0xff]   ;;  %v5896_v44 = vld [vmem:[#allocation6 + $0xe8c] ss:$16 sps:$4 sm:$0xff]   ;;  %v5891_v45 = vld [vmem:[#allocation6 + $0xe80] ss:$16 sps:$4 sm:$0xff]  }
 0x488   :  { %5981 = vrsqrt.f32 %v3299_v51  ;;  %v5894_v50 = vld [vmem:[#allocation6 + $0xe88] ss:$16 sps:$4 sm:$0xff]   ;;  %v5899_v51 = vld [vmem:[#allocation6 + $0xea4] ss:$16 sps:$4 sm:$0xff]  }
 0x489   :  { %5983 = vrsqrt.f32 %v3298_v52  ;;  %v5902_v52 = vld [vmem:[#allocation6 + $0xeac] ss:$16 sps:$4 sm:$0xff]  }
 0x48a   :  { %5985 = vrsqrt.f32 %v3300_v53  ;;  %v5897_v53 = vld [vmem:[#allocation6 + $0xea0] ss:$16 sps:$4 sm:$0xff]  }
 0x491   :  { %v5980_v54 = vpop.eup %5979 }
 0x492   :  { %v5982_v55 = vpop.eup %5981 }
 0x493   :  { %v5984_v56 = vpop.eup %5983 }
 0x494   :  { %v5986_v57 = vpop.eup %5985  ;;  %v3309_v58 = vcombine.low %v5980_v54, %v5984_v56  ;;  %v5900_v54 = vld [vmem:[#allocation6 + $0xea8] ss:$16 sps:$4 sm:$0xff]   ;;  %v5908_v56 = vld [vmem:[#allocation6 + $0xecc] ss:$16 sps:$4 sm:$0xff]  }
 0x495   :  { %v3310_v59 = vcombine.low %v5982_v55, %v5986_v57  ;;  %v5905_v55 = vld [vmem:[#allocation6 + $0xec4] ss:$16 sps:$4 sm:$0xff]   ;;  %v5903_v57 = vld [vmem:[#allocation6 + $0xec0] ss:$16 sps:$4 sm:$0xff]  }
 0x496   :  { %v3317_v60 = vrot.slane %v3309_v58, %v6267_v29  ;;  %v5906_v58 = vld [vmem:[#allocation6 + $0xec8] ss:$16 sps:$4 sm:$0xff]  }
 0x497   :  { %v3324_v61 = vrot.slane %v3310_v59, %v6267_v29  ;;  %v5911_v59 = vld [vmem:[#allocation6 + $0xee4] ss:$16 sps:$4 sm:$0xff]  }
 0x499   :  { %v3325_v62 = vcombine.low %v3317_v60, %v3324_v61  ;;  %v5914_v60 = vld [vmem:[#allocation6 + $0xeec] ss:$16 sps:$4 sm:$0xff]   ;;  %v5909_v61 = vld [vmem:[#allocation6 + $0xee0] ss:$16 sps:$4 sm:$0xff]  }
 0x49b   :  { %v3332_v5 = vrot.slane %v3325_v62, %v6267_v29  ;;  %v5912_v62 = vld [vmem:[#allocation6 + $0xee8] ss:$16 sps:$4 sm:$0xff]  }
 0x49d   :  { %v3334_v7 = vmul.f32 %v3332_v5, %v3296_v63  ;;  %v5917_v63 = vld [vmem:[#allocation6 + $0xf04] ss:$16 sps:$4 sm:$0xff]   ;;  %v5920_v5 = vld [vmem:[#allocation6 + $0xf0c] ss:$16 sps:$4 sm:$0xff]  }
 0x49f   :  { %v3351_v48 = vrot.slane %v3334_v7, %v6271_v38  ;;  %v3343_v47 = vrot.slane %v3334_v7, %v6274_v40  ;;  %v3339_v15 = vrot.slane %v3334_v7, %v6276_v42  ;;  %v3347_v16 = vrot.slane %v3334_v7, %v6278_v43  ;;  %v5918_v7 = vld [vmem:[#allocation6 + $0xf08] ss:$16 sps:$4 sm:$0xff]  }
 0x4a1   :  { %v3359_v17 = vmul.f32 %v3351_v48, %v3262_v14  ;;  %v3357_v18 = vmul.f32 %v3343_v47, %v6330_v13  ;;  %v3356_v4 = vmul.f32 %v3339_v15, %v6326_v11  ;;  %v3358_v19 = vmul.f32 %v3347_v16, %v6328_v12  ;;  %v5870_v14 = vld [vmem:[#allocation6 + $0xe08] ss:$16 sps:$4 sm:$0xff]   ;;  %v5875_v11 = vld [vmem:[#allocation6 + $0xe24] ss:$16 sps:$4 sm:$0xff]   ;;  %v5878_v13 = vld [vmem:[#allocation6 + $0xe2c] ss:$16 sps:$4 sm:$0xff]  }
 0x4a2   :  { %v5929_v48 = vld [vmem:[#allocation6 + $0xf44] ss:$16 sps:$4 sm:$0xff]   ;;  %v5932_v47 = vld [vmem:[#allocation6 + $0xf4c] ss:$16 sps:$4 sm:$0xff]   ;;  %v5927_v15 = vld [vmem:[#allocation6 + $0xf40] ss:$16 sps:$4 sm:$0xff]  }
 0x4a3   :  { %v3384_v1 = vadd.f32 %v3370_v8, %v3357_v18  ;;  %v3383_v3 = vadd.f32 %v3366_v49, %v3356_v4  ;;  %v3386_v2 = vadd.f32 %v3378_v9, %v3359_v17  ;;  %v6352_v20 = vadd.f32 %v3374_v46, %v3358_v19  ;;  %v5923_v8 = vld [vmem:[#allocation6 + $0xf24] ss:$16 sps:$4 sm:$0xff]   ;;  %v5926_v49 = vld [vmem:[#allocation6 + $0xf2c] ss:$16 sps:$4 sm:$0xff]   ;;  %v5921_v9 = vld [vmem:[#allocation6 + $0xf20] ss:$16 sps:$4 sm:$0xff]  }
 0x4a4   :  { %v5924_v46 = vld [vmem:[#allocation6 + $0xf28] ss:$16 sps:$4 sm:$0xff]   ;;  %v5935_v17 = vld [vmem:[#allocation6 + $0xf64] ss:$16 sps:$4 sm:$0xff]   ;;  %v5938_v18 = vld [vmem:[#allocation6 + $0xf6c] ss:$16 sps:$4 sm:$0xff]  }
 0x4a5   :  { %v3388_v0 = vmul.f32 0.2, %v3384_v1  ;;  %v3387_v21 = vmul.f32 0.2, %v3383_v3  ;;  %v3390_v22 = vmul.f32 0.2, %v3386_v2 }
 0x4a6   :  { %v5930_v16 = vld [vmem:[#allocation6 + $0xf48] ss:$16 sps:$4 sm:$0xff]   ;;  %v5933_v4 = vld [vmem:[#allocation6 + $0xf60] ss:$16 sps:$4 sm:$0xff]  }
 0x4a7   :  { %v3392_v23 = vmax.f32 %v3384_v1, %v3388_v0  ;;  %v3391_v24 = vmax.f32 %v3383_v3, %v3387_v21  ;;  %v3394_v25 = vmax.f32 %v3386_v2, %v3390_v22  ;;  %v5936_v19 = vld [vmem:[#allocation6 + $0xf68] ss:$16 sps:$4 sm:$0xff]   ;;  %v5941_v1 = vld [vmem:[#allocation6 + $0xf84] ss:$16 sps:$4 sm:$0xff]   ;;  %v5944_v3 = vld [vmem:[#allocation6 + $0xf8c] ss:$16 sps:$4 sm:$0xff]  }
 0x4a8   :  { %v5939_v2 = vld [vmem:[#allocation6 + $0xf80] ss:$16 sps:$4 sm:$0xff]   ;;  %v5942_v0 = vld [vmem:[#allocation6 + $0xf88] ss:$16 sps:$4 sm:$0xff]   ;;  %v5947_v21 = vld [vmem:[#allocation6 + $0xfa4] ss:$16 sps:$4 sm:$0xff]  }
 0x4a9   :  { %v3396_v26 = vpack.c.bf16 %v3392_v23, %v3392_v23  ;;  %v3395_v28 = vpack.c.bf16 %v3391_v24, %v3391_v24  ;;  %v3398_v12 = vpack.c.bf16 %v3394_v25, %v3394_v25  ;;  %v5950_v22 = vld [vmem:[#allocation6 + $0xfac] ss:$16 sps:$4 sm:$0xff]   ;;  %v5945_v23 = vld [vmem:[#allocation6 + $0xfa0] ss:$16 sps:$4 sm:$0xff]   ;;  %v5948_v24 = vld [vmem:[#allocation6 + $0xfa8] ss:$16 sps:$4 sm:$0xff]  }
 0x4aa   :  { %v5953_v25 = vld [vmem:[#allocation6 + $0xfc4] ss:$16 sps:$4 sm:$0xff]  }
 0x4ab   :  { %4200 = vmatprep.mubr.bf16.mxu0 %v3396_v26  ;;  %4282 = vmatprep.mubr.bf16.mxu1 %v3396_v26  ;;  %v5956_v26 = vld [vmem:[#allocation6 + $0xfcc] ss:$16 sps:$4 sm:$0xff]  }
 0x4ac   :  { %4201 = vmatmul.mubr.bf16.vlgmr.msra.gmra.mrb[12].mxu0 %v3395_v28  ;;  %4283 = vmatmul.mubr.bf16.vlgmr.msra.gmra.mrb[12].mxu1 %v3395_v28  ;;  %v5959_v28 = vld [vmem:[#allocation6 + $0xfe4] ss:$16 sps:$4 sm:$0xff]  }
 0x4ad   :  { %4210 = vmatpush1.bf16.msra.mxu0 %v5867_v27  ;;  %4292 = vmatpush1.bf16.msra.mxu1 %v5870_v14  ;;  %v5951_v27 = vld [vmem:[#allocation6 + $0xfc0] ss:$16 sps:$4 sm:$0xff]   ;;  %v5954_v14 = vld [vmem:[#allocation6 + $0xfc8] ss:$16 sps:$4 sm:$0xff]  }
 0x4ae   :  { %4241 = vmatprep.mubr.bf16.mxu0 %v3398_v12  ;;  %4323 = vmatprep.mubr.bf16.mxu1 %v3398_v12  ;;  %v5957_v12 = vld [vmem:[#allocation6 + $0xfe0] ss:$16 sps:$4 sm:$0xff]  }
 0x4af   :  { %4211 = vmatprep.subr.bf16.mxu0 %v5875_v11  ;;  %4293 = vmatprep.subr.bf16.mxu1 %v5878_v13  ;;  %v5962_v11 = vld [vmem:[#allocation6 + $0xfec] ss:$16 sps:$4 sm:$0xff]   ;;  %v3389_v13 = vmul.f32 0.2, %v6352_v20 }
 0x4b1   :  { %4212 = vmatpush1.bf16.msra.mxu0 %v5873_v30  ;;  %4294 = vmatpush1.bf16.msra.mxu1 %v5876_v10  ;;  %v5960_v30 = vld [vmem:[#allocation6 + $0xfe8] ss:$16 sps:$4 sm:$0xff]   ;;  %v3393_v10 = vmax.f32 %v6352_v20, %v3389_v13 }
 0x4b2   :  { %4213 = vmatprep.subr.bf16.mxu0 %v5881_v31  ;;  %4295 = vmatprep.subr.bf16.mxu1 %v5884_v32  ;;  %v6356_v32 = vld.sshfl [vmem:[#allocation11] sm:$0x33 pattern:$0x75316420] }
 0x4b3   :  { %v3397_v31 = vpack.c.bf16 %v3393_v10, %v3393_v10 }
 0x4b5   :  { %4214 = vmatpush1.bf16.msra.mxu0 %v5879_v33  ;;  %4296 = vmatpush1.bf16.msra.mxu1 %v5882_v34  ;;  %v4511_v33 = vcombine.high %v6356_v32, %v6356_v32 }
 0x4b6   :  { %4215 = vmatprep.subr.bf16.mxu0 %v5887_v35  ;;  %4297 = vmatprep.subr.bf16.mxu1 %v5890_v36 }
 0x4b7   :  { %v4525_v34 = vrot.slane %v4511_v33, %v6267_v29 }
 0x4b9   :  { %4216 = vmatpush1.bf16.msra.mxu0 %v5885_v37  ;;  %4298 = vmatpush1.bf16.msra.mxu1 %v5888_v39  ;;  %v4527_v35 = vcombine.high %v4525_v34, %v4525_v34 }
 0x4ba   :  { %4217 = vmatprep.subr.bf16.mxu0 %v5893_v41  ;;  %4299 = vmatprep.subr.bf16.mxu1 %v5896_v44 }
 0x4bd   :  { %4218 = vmatpush1.bf16.msra.mxu0 %v5891_v45  ;;  %4300 = vmatpush1.bf16.msra.mxu1 %v5894_v50 }
 0x4be   :  { %4219 = vmatprep.subr.bf16.mxu0 %v5899_v51  ;;  %4301 = vmatprep.subr.bf16.mxu1 %v5902_v52 }
 0x4c1   :  { %4220 = vmatpush1.bf16.msra.mxu0 %v5897_v53  ;;  %4302 = vmatpush1.bf16.msra.mxu1 %v5900_v54 }
 0x4c2   :  { %4221 = vmatprep.subr.bf16.mxu0 %v5905_v55  ;;  %4303 = vmatprep.subr.bf16.mxu1 %v5908_v56 }
 0x4c5   :  { %4222 = vmatpush1.bf16.msra.mxu0 %v5903_v57  ;;  %4304 = vmatpush1.bf16.msra.mxu1 %v5906_v58 }
 0x4c6   :  { %4223 = vmatprep.subr.bf16.mxu0 %v5911_v59  ;;  %4305 = vmatprep.subr.bf16.mxu1 %v5914_v60 }
 0x4c9   :  { %4224 = vmatpush1.bf16.msra.mxu0 %v5909_v61  ;;  %4306 = vmatpush1.bf16.msra.mxu1 %v5912_v62 }
 0x4ca   :  { %4225 = vmatprep.subr.bf16.mxu0 %v5917_v63  ;;  %4307 = vmatprep.subr.bf16.mxu1 %v5920_v5 }
 0x4cd   :  { %4226 = vmatpush1.bf16.msra.mxu0 %v5915_v6  ;;  %4308 = vmatpush1.bf16.msra.mxu1 %v5918_v7 }
 0x4ce   :  { %4227 = vmatprep.subr.bf16.mxu0 %v5923_v8  ;;  %4309 = vmatprep.subr.bf16.mxu1 %v5926_v49 }
 0x4d1   :  { %4228 = vmatpush1.bf16.msra.mxu0 %v5921_v9  ;;  %4310 = vmatpush1.bf16.msra.mxu1 %v5924_v46 }
 0x4d2   :  { %4229 = vmatprep.subr.bf16.mxu0 %v5929_v48  ;;  %4311 = vmatprep.subr.bf16.mxu1 %v5932_v47 }
 0x4d5   :  { %4230 = vmatpush1.bf16.msra.mxu0 %v5927_v15  ;;  %4312 = vmatpush1.bf16.msra.mxu1 %v5930_v16 }
 0x4d6   :  { %4231 = vmatprep.subr.bf16.mxu0 %v5935_v17  ;;  %4313 = vmatprep.subr.bf16.mxu1 %v5938_v18 }
 0x4d9   :  { %4232 = vmatpush1.bf16.msra.mxu0 %v5933_v4  ;;  %4314 = vmatpush1.bf16.msra.mxu1 %v5936_v19 }
 0x4da   :  { %4233 = vmatprep.subr.bf16.mxu0 %v5941_v1  ;;  %4315 = vmatprep.subr.bf16.mxu1 %v5944_v3 }
 0x4dd   :  { %4234 = vmatpush1.bf16.msra.mxu0 %v5939_v2  ;;  %4316 = vmatpush1.bf16.msra.mxu1 %v5942_v0 }
 0x4de   :  { %4235 = vmatprep.subr.bf16.mxu0 %v5947_v21  ;;  %4317 = vmatprep.subr.bf16.mxu1 %v5950_v22 }
 0x4e1   :  { %4236 = vmatpush1.bf16.msra.mxu0 %v5945_v23  ;;  %4318 = vmatpush1.bf16.msra.mxu1 %v5948_v24 }
 0x4e2   :  { %4237 = vmatprep.subr.bf16.mxu0 %v5953_v25  ;;  %4319 = vmatprep.subr.bf16.mxu1 %v5956_v26 }
 0x4e5   :  { %4238 = vmatpush1.bf16.msra.mxu0 %v5951_v27  ;;  %4320 = vmatpush1.bf16.msra.mxu1 %v5954_v14 }
 0x4e6   :  { %4239 = vmatprep.subr.bf16.mxu0 %v5959_v28  ;;  %4321 = vmatprep.subr.bf16.mxu1 %v5962_v11 }
 0x4e9   :  { %4240 = vmatpush1.bf16.msra.mxu0 %v5957_v12  ;;  %4322 = vmatpush1.bf16.msra.mxu1 %v5960_v30 }
 0x4ec   :  { %4242 = vmatmul.mubr.bf16.vlgmr.msra.gmra.mrb[12].mxu0 %v3397_v31  ;;  %4324 = vmatmul.mubr.bf16.vlgmr.msra.gmra.mrb[12].mxu1 %v3397_v31 }
 0x4ed   :  { %4564 = vmatprep.mubr.bf16.mxu1 %v4525_v34  ;;  %4604 = vmatprep.mubr.bf16.mxu0 %v4527_v35 }
 0x5bf   :  { %v4243_v36 = vpop.f32.mrb[12].mxu0  ;;  %v4325_v37 = vpop.f32.mrb[12].mxu1 }
 0x5c0   :  { %v4332_v39 = vrot.slane %v4243_v36, 4  ;;  %v4344_v41 = vrot.slane %v4325_v37, 4  ;;  %v4245_v20 = vpop.f32.mrb[13].mxu0  ;;  %v4327_v44 = vpop.f32.mrb[13].mxu1 }
 0x5c1   :  { %v4338_v45 = vrot.slane %v4245_v20, 4  ;;  %v4350_v50 = vrot.slane %v4327_v44, 4  ;;  %v4247_v51 = vpop.f32.mrb[14].mxu0  ;;  %v4329_v52 = vpop.f32.mrb[14].mxu1 }
 0x5c2   :  { %v4333_v53 = vadd.f32 %v4332_v39, %v4243_v36  ;;  %v4345_v54 = vadd.f32 %v4344_v41, %v4325_v37  ;;  %v4248_v55 = vpop.f32.mrb[15].mxu0  ;;  %v4330_v56 = vpop.f32.mrb[15].mxu1 }
 0x5c3   :  { %v4339_v57 = vadd.f32 %v4338_v45, %v4245_v20  ;;  %v4351_v58 = vadd.f32 %v4350_v50, %v4327_v44 }
 0x5c4   :  { %v4334_v59 = vrot.slane %v4333_v53, 2  ;;  %v4346_v60 = vrot.slane %v4345_v54, 2 }
 0x5c5   :  { %v4340_v61 = vrot.slane %v4339_v57, 2  ;;  %v4352_v62 = vrot.slane %v4351_v58, 2 }
 0x5c6   :  { %v4335_v63 = vadd.f32 %v4334_v59, %v4333_v53  ;;  %v4347_v5 = vadd.f32 %v4346_v60, %v4345_v54 }
 0x5c7   :  { %v4341_v6 = vadd.f32 %v4340_v61, %v4339_v57  ;;  %v4353_v7 = vadd.f32 %v4352_v62, %v4351_v58 }
 0x5c8   :  { %v4336_v8 = vrot.slane %v4335_v63, 1  ;;  %v4348_v49 = vrot.slane %v4347_v5, 1 }
 0x5c9   :  { %v4342_v9 = vrot.slane %v4341_v6, 1  ;;  %v4354_v46 = vrot.slane %v4353_v7, 1 }
 0x5ca   :  { %v4337_v48 = vadd.f32 %v4336_v8, %v4335_v63  ;;  %v4349_v47 = vadd.f32 %v4348_v49, %v4347_v5 }
 0x5cb   :  { %v4343_v15 = vadd.f32 %v4342_v9, %v4341_v6  ;;  %v4355_v16 = vadd.f32 %v4354_v46, %v4353_v7  ;;  %v4397_v46 = vld [vmem:[#allocation8 + $0xc] sm:$0xf] }
 0x5cc   :  { %v4356_v17 = vmul.f32 0.125, %v4337_v48  ;;  %v4358_v18 = vmul.f32 0.125, %v4349_v47  ;;  %v4462_v47 = vld [vmem:[#allocation9 + $0xc] sm:$0xf] }
 0x5cd   :  { %v4357_v4 = vmul.f32 0.125, %v4343_v15  ;;  %v4359_v19 = vmul.f32 0.125, %v4355_v16  ;;  %v4471_v16 = vrot.slane %v4462_v47, %v6274_v40 }
 0x5ce   :  { %v6361_v1 = vsub.f32 %v4243_v36, %v4356_v17  ;;  %v6363_v3 = vsub.f32 %v4325_v37, %v4358_v18  ;;  %v4479_v17 = vrot.slane %v4462_v47, %v6271_v38  ;;  %v4467_v18 = vrot.slane %v4462_v47, %v6276_v42 }
 0x5cf   :  { %v6365_v2 = vsub.f32 %v4245_v20, %v4357_v4  ;;  %v4363_v0 = vsub.f32 %v4327_v44, %v4359_v19  ;;  %v4475_v4 = vrot.slane %v4462_v47, %v6278_v43 }
 0x5d0   :  { %v4364_v21 = vmul.f32 %v6361_v1, %v6361_v1  ;;  %v4366_v22 = vmul.f32 %v6363_v3, %v6363_v3 }
 0x5d1   :  { %v4365_v23 = vmul.f32 %v6365_v2, %v6365_v2  ;;  %v4367_v24 = vmul.f32 %v4363_v0, %v4363_v0 }
 0x5d2   :  { %v4368_v25 = vrot.slane %v4364_v21, 4  ;;  %v4380_v26 = vrot.slane %v4366_v22, 4 }
 0x5d3   :  { %v4374_v27 = vrot.slane %v4365_v23, 4  ;;  %v4386_v14 = vrot.slane %v4367_v24, 4 }
 0x5d4   :  { %v4369_v28 = vadd.f32 %v4368_v25, %v4364_v21  ;;  %v4381_v11 = vadd.f32 %v4380_v26, %v4366_v22 }
 0x5d5   :  { %v4375_v13 = vadd.f32 %v4374_v27, %v4365_v23  ;;  %v4387_v12 = vadd.f32 %v4386_v14, %v4367_v24 }
 0x5d6   :  { %v4370_v30 = vrot.slane %v4369_v28, 2  ;;  %v4382_v10 = vrot.slane %v4381_v11, 2 }
 0x5d7   :  { %v4376_v31 = vrot.slane %v4375_v13, 2  ;;  %v4388_v33 = vrot.slane %v4387_v12, 2 }
 0x5d8   :  { %v4371_v34 = vadd.f32 %v4370_v30, %v4369_v28  ;;  %v4383_v35 = vadd.f32 %v4382_v10, %v4381_v11 }
 0x5d9   :  { %v4377_v36 = vadd.f32 %v4376_v31, %v4375_v13  ;;  %v4389_v37 = vadd.f32 %v4388_v33, %v4387_v12 }
 0x5da   :  { %v4372_v39 = vrot.slane %v4371_v34, 1  ;;  %v4384_v41 = vrot.slane %v4383_v35, 1 }
 0x5db   :  { %v4378_v20 = vrot.slane %v4377_v36, 1  ;;  %v4390_v44 = vrot.slane %v4389_v37, 1 }
 0x5dc   :  { %v4373_v45 = vadd.f32 %v4372_v39, %v4371_v34  ;;  %v4385_v50 = vadd.f32 %v4384_v41, %v4383_v35  ;;  %v4502_v35 = vstv %s6409_s5  ;;  %s6109_s5 = scalar_lea.vmem %s4627_s3, 16 }
 0x5dd   :  { %v4379_v51 = vadd.f32 %v4378_v20, %v4377_v36  ;;  %v4391_v52 = vadd.f32 %v4390_v44, %v4389_v37  ;;  %p6110_p12 = scmp.ne.s32.totalorder %s4627_s3, %s6109_s5  ;;  %p6115_p0 = scmp.lt.s32.totalorder %s6113_s10, %s6109_s5 }
 0x5de   :  { %v4392_v53 = vmul.f32 0.125, %v4373_v45  ;;  %v4394_v54 = vmul.f32 0.125, %v4385_v50 }
 0x5df   :  { %v4393_v55 = vmul.f32 0.125, %v4379_v51  ;;  %v4395_v56 = vmul.f32 0.125, %v4391_v52  ;;  %p6116_p1 = por %p6115_p0, %p6114_p13 }
 0x5e0   :  { %v4398_v57 = vadd.f32 1e-05, %v4392_v53  ;;  %v4400_v58 = vadd.f32 1e-05, %v4394_v54 }
 0x5e1   :  { %v4399_v59 = vadd.f32 1e-05, %v4393_v55  ;;  %v4401_v60 = vadd.f32 1e-05, %v4395_v56  ;;  %p6117_p2 = pnand %p6116_p1, %p6110_p12 }
 0x5e2   :  { %5987 = vrsqrt.f32 %v4398_v57 }
 0x5e3   :  { %5989 = vrsqrt.f32 %v4400_v58 }
 0x5e4   :  { %5991 = vrsqrt.f32 %v4399_v59 }
 0x5e5   :  { %5993 = vrsqrt.f32 %v4401_v60 }
 0x5ec   :  { %v5988_v61 = vpop.eup %5987 }
 0x5ed   :  { %v5990_v62 = vpop.eup %5989 }
 0x5ee   :  { %v5992_v63 = vpop.eup %5991 }
 0x5ef   :  { %v5994_v5 = vpop.eup %5993  ;;  %v4410_v6 = vcombine.low %v5988_v61, %v5992_v63 }
 0x5f0   :  { %v4411_v7 = vcombine.low %v5990_v62, %v5994_v5 }
 0x5f1   :  { %v4418_v8 = vrot.slane %v4410_v6, %v6267_v29 }
 0x5f2   :  { %v4425_v49 = vrot.slane %v4411_v7, %v6267_v29 }
 0x5f4   :  { %v4426_v9 = vcombine.low %v4418_v8, %v4425_v49 }
 0x5f6   :  { %v4433_v48 = vrot.slane %v4426_v9, %v6267_v29 }
 0x5f8   :  { %v4435_v15 = vmul.f32 %v4433_v48, %v4397_v46 }
 0x5fa   :  { %v4452_v19 = vrot.slane %v4435_v15, %v6271_v38  ;;  %v4444_v21 = vrot.slane %v4435_v15, %v6274_v40  ;;  %v4440_v22 = vrot.slane %v4435_v15, %v6276_v42  ;;  %v4448_v23 = vrot.slane %v4435_v15, %v6278_v43 }
 0x5fc   :  { %v4460_v24 = vmul.f32 %v4452_v19, %v4363_v0  ;;  %v4458_v25 = vmul.f32 %v4444_v21, %v6365_v2  ;;  %v4457_v26 = vmul.f32 %v4440_v22, %v6361_v1  ;;  %v4459_v27 = vmul.f32 %v4448_v23, %v6363_v3 }
 0x5fd   :  { %v4518_v1 = vrot.slane %v6356_v32, %v6267_v29 }
 0x5fe   :  { %v4485_v14 = vadd.f32 %v4471_v16, %v4458_v25  ;;  %v4487_v28 = vadd.f32 %v4479_v17, %v4460_v24  ;;  %v4484_v11 = vadd.f32 %v4467_v18, %v4457_v26  ;;  %v4486_v13 = vadd.f32 %v4475_v4, %v4459_v27 }
 0x5ff   :  { %v4526_v3 = vcombine.high %v4518_v1, %v4518_v1 }
 0x600   :  { %v4489_v12 = vmul.f32 0.2, %v4485_v14  ;;  %v4491_v30 = vmul.f32 0.2, %v4487_v28  ;;  %v4488_v38 = vmul.f32 0.2, %v4484_v11 }
 0x601   :  { %v4490_v10 = vmul.f32 0.2, %v4486_v13 }
 0x602   :  { %v4493_v40 = vmax.f32 %v4485_v14, %v4489_v12  ;;  %v4495_v31 = vmax.f32 %v4487_v28, %v4491_v30  ;;  %v4492_v42 = vmax.f32 %v4484_v11, %v4488_v38 }
 0x603   :  { %v4494_v33 = vmax.f32 %v4486_v13, %v4490_v10 }
 0x604   :  { %v4497_v43 = vpack.c.bf16 %v4493_v40, %v4493_v40  ;;  %v4499_v0 = vpack.c.bf16 %v4495_v31, %v4495_v31  ;;  %v4496_v34 = vpack.c.bf16 %v4492_v42, %v4492_v42 }
 0x605   :  { %v4498_v2 = vpack.c.bf16 %v4494_v33, %v4494_v33 }
 0x606   :  { %4532 = vmatprep.subr.bf16.mxu1 %v4497_v43  ;;  %4572 = vmatprep.subr.bf16.mxu0 %v4499_v0 }
 0x607   :  { %4533 = vmatpush1.bf16.xpose.msra.mxu1 %v4496_v34  ;;  %4573 = vmatpush1.bf16.xpose.msra.mxu0 %v4498_v2 }
 0x60e   :  { %4565 = vmatmul.mubr.bf16.vlgmr.msra.gmra.mrb[16].mxu1 %v4518_v1  ;;  %4605 = vmatmul.mubr.bf16.vlgmr.msra.gmra.mrb[16].mxu0 %v4526_v3 }
 0x6e1   :  { %v4566_v36 = vpop.f32.mrb[16].mxu1  ;;  %v4606_v37 = vpop.f32.mrb[16].mxu0 }
 0x6e2   :  { %v4567_v39 = vadd.f32 %v4566_v36, %v4502_v35  ;;  %v4568_v41 = vpop.f32.mrb[17].mxu1  ;;  %v4608_v20 = vpop.f32.mrb[17].mxu0 }
 0x6e3   :  { %v4569_v44 = vpop.f32.mrb[18].mxu1  ;;  %v4609_v45 = vpop.f32.mrb[18].mxu0 }
 0x6e4   :  { %v4607_v50 = vadd.f32 %v4606_v37, %v4567_v39  ;;  %v4570_v51 = vpop.f32.mrb[19].mxu1  ;;  %v4610_v52 = vpop.f32.mrb[19].mxu0 }
 0x6e6   :  { %v4612_v29 = vsub.f32 0.0, %v4607_v50 }
 0x6e8   :  { %v4613_v32 = vmul.f32 1.442695, %v4612_v29 }
 0x6ea   :  { %5995 = vpow2.f32 %v4613_v32 }
 0x6f4   :  { %v5996_v53 = vpop.eup %5995 }
 0x6f5   :  { %v4615_v54 = vadd.f32 1.0, %v5996_v53 }
 0x6f7   :  { %5997 = vrcp.f32 %v4615_v54 }
 0x701   :  { %v5998_v55 = vpop.eup %5997 }
 0x702   :  { %4619 = vst.msk [vmem:[#allocation12] sm:$0x1] %vm4618_vm0, %v5998_v55 }
 0x703   :  { %6120 = shalt.err (!%p6117_p2)
}
 0x704   :  { %s6121_s13 = scalar_lea.hbm %s6410_s6, 16 }
 0x705   :  { %p6122_p3 = scmp.ne.s32.totalorder %s6410_s6, %s6121_s13  ;;  %p6125_p4 = scmp.lt.u32.totalorder %s6121_s13, %s6410_s6 }
 0x707   :  { %p6127_p5 = pnand %p6125_p4, %p6122_p3 }
 0x709   :  { %6130 = shalt.err (!%p6127_p5)
}
 0x70a   :  { %4629 = dma.vmem_to_hbm [thread:$0]  %s4627_s3, 16, %s6410_s6, [#allocation5]  }
 0x70b   :  { %6137 = dma.done.wait [#allocation5], 16  }
 0x70c   :  { %6138 = vsyncadd [#allocation5], 4294967280 }
 0x70d   :  { %4633 = vsyncpa [#allocation4], 1 }
 0x70e   :  { %4634 = vsyncpa [#allocation7], 1 }
 0x70f   :  { %4635 = vsyncpa [#allocation10], 1 }
 0x710   :  { %4636 = vsyncpa [#allocation5], 1 }

</bundles_post_ra>
